<compile_context>
chip_gen: v7x
topology: tpu7x:2x2x1
jax: 0.10.0
libtpu: 0.0.40
codegen_flags: <defaults>
</compile_context>

<pallas_src>
import functools
import math

import jax
import jax.numpy as jnp
from jax import lax
from jax.experimental import pallas as pl
from jax.experimental.pallas import tpu as pltpu

_VMEM_LIMIT = 32 * 1024 * 1024      # <= v7x 64 MiB physical VMEM
_BN_EPS = 1e-5


def _round_up(x, m):
    return (x + m - 1) // m * m


def _pick_tile(dim, prefs):
    """Largest preferred tile that divides `dim`, else the full extent."""
    for p in prefs:
        if dim % p == 0:
            return p
    return dim


# ----------------------- tiled MXU matmul (+bias[,relu]) ----------------------

def _matmul_bias_kernel(x_ref, w_ref, b_ref, o_ref, acc_ref, *, relu):
    @pl.when(pl.program_id(2) == 0)
    def _():
        acc_ref[...] = jnp.zeros_like(acc_ref)

    acc_ref[...] += jnp.dot(x_ref[...], w_ref[...],
                            preferred_element_type=jnp.float32)

    @pl.when(pl.program_id(2) == pl.num_programs(2) - 1)
    def _():
        y = acc_ref[...] + b_ref[...]
        if relu:
            y = jnp.maximum(y, 0.0)
        o_ref[...] = y.astype(o_ref.dtype)


@functools.lru_cache(maxsize=None)
def _matmul_call(m, k, n, tm, tk, tn, relu):
    gm, gn, gk = m // tm, n // tn, k // tk
    cost = pl.CostEstimate(flops=2 * m * k * n, transcendentals=0,
                           bytes_accessed=2 * (m * k + k * n) + 4 * m * n)
    return pl.pallas_call(
        functools.partial(_matmul_bias_kernel, relu=relu),
        out_shape=jax.ShapeDtypeStruct((m, n), jnp.float32),
        grid_spec=pltpu.PrefetchScalarGridSpec(
            num_scalar_prefetch=0,
            grid=(gm, gn, gk),
            in_specs=[pl.BlockSpec((tm, tk), lambda i, j, kk: (i, kk)),
                      pl.BlockSpec((tk, tn), lambda i, j, kk: (kk, j)),
                      pl.BlockSpec((1, tn), lambda i, j, kk: (0, j))],
            out_specs=pl.BlockSpec((tm, tn), lambda i, j, kk: (i, j)),
            scratch_shapes=[pltpu.VMEM((tm, tn), jnp.float32)]),
        compiler_params=pltpu.CompilerParams(
            dimension_semantics=("parallel", "parallel", "arbitrary"),
            vmem_limit_bytes=_VMEM_LIMIT),
        cost_estimate=cost,
    )


def matmul_bias(x, w, b, *, relu=False):
    """(M,K)@(K,N)+b with bf16 MXU inputs and f32 accumulation."""
    m, k = x.shape
    k2, n = w.shape
    assert k == k2
    tm = _pick_tile(m, (256, 128))
    if tm > 2048:                      # unaligned large M: tile + pad instead
        tm = 128
    mp = _round_up(m, tm)
    tk = _pick_tile(k, (512, 256, 128))
    tn = _pick_tile(n, (256, 128))
    xp = x if mp == m else jnp.pad(x, ((0, mp - m), (0, 0)))
    out = _matmul_call(mp, k, n, tm, tk, tn, relu)(
        xp.astype(jnp.bfloat16), w.astype(jnp.bfloat16),
        b.reshape(1, n).astype(jnp.float32))
    return out if mp == m else out[:m]


def conv1x1_bias(x_nhwc, w, b, *, stride=1):
    """1x1 convolution (+bias) as a tiled Pallas matmul. w: (1,1,Cin,Cout)."""
    if stride > 1:
        x_nhwc = x_nhwc[:, ::stride, ::stride, :]
    n, h, wd, cin = x_nhwc.shape
    cout = w.shape[-1]
    y = matmul_bias(x_nhwc.reshape(n * h * wd, cin), w.reshape(cin, cout), b)
    return y.reshape(n, h, wd, cout)


# ------------------- direct 3x3 conv (tap-accumulating kernel) -----------------

def _conv3x3_kernel(x_ref, w_ref, b_ref, o_ref, *, stride, oh, ow, cin, cout):
    # x_ref: (s*s, PH, PW, Cin) phase-split padded input for one batch element
    # w_ref: (9, Cin, Cout); b_ref: (1, Cout); o_ref: (1, OH*OW, Cout)
    acc = jnp.zeros((oh * ow, cout), jnp.float32)
    for di in range(3):
        for dj in range(3):
            phase = (di % stride) * stride + (dj % stride)
            pi, qi = di // stride, dj // stride
            tap = x_ref[phase, pi:pi + oh, qi:qi + ow, :]        # (OH, OW, Cin)
            acc = acc + jnp.dot(tap.reshape(oh * ow, cin), w_ref[di * 3 + dj],
                                preferred_element_type=jnp.float32)
    o_ref[0] = acc + b_ref[...]


@functools.lru_cache(maxsize=None)
def _conv3x3_call(n, ss, ph, pw, cin, cout, oh, ow, stride):
    cost = pl.CostEstimate(
        flops=2 * n * oh * ow * 9 * cin * cout, transcendentals=0,
        bytes_accessed=2 * (n * ss * ph * pw * cin + 9 * cin * cout)
        + 4 * n * oh * ow * cout)
    return pl.pallas_call(
        functools.partial(_conv3x3_kernel, stride=stride, oh=oh, ow=ow,
                          cin=cin, cout=cout),
        out_shape=jax.ShapeDtypeStruct((n, oh * ow, cout), jnp.float32),
        grid_spec=pltpu.PrefetchScalarGridSpec(
            num_scalar_prefetch=0,
            grid=(n,),
            in_specs=[pl.BlockSpec((ss, ph, pw, cin), lambda i: (i, 0, 0, 0)),
                      pl.BlockSpec((9, cin, cout), lambda i: (0, 0, 0)),
                      pl.BlockSpec((1, cout), lambda i: (0, 0))],
            out_specs=pl.BlockSpec((1, oh * ow, cout), lambda i: (i, 0, 0))),
        compiler_params=pltpu.CompilerParams(
            dimension_semantics=("parallel",), vmem_limit_bytes=_VMEM_LIMIT),
        cost_estimate=cost,
    )


def conv3x3_bias(x_nhwc, w, b, *, stride):
    """3x3 conv, padding=1, arbitrary stride; no im2col HBM materialization."""
    n, h, wd, cin = x_nhwc.shape
    cout = w.shape[-1]
    oh = (h + 2 - 3) // stride + 1
    ow = (wd + 2 - 3) // stride + 1
    xp = jnp.pad(x_nhwc, ((0, 0), (1, 1), (1, 1), (0, 0)))
    if stride == 1:
        phases = xp[:, None]                                   # (N,1,H+2,W+2,Cin)
    else:
        # Space-to-depth phase split so every in-kernel tap slice is contiguous.
        parts = []
        for p in range(stride):
            for q in range(stride):
                t = xp[:, p::stride, q::stride, :][:, :oh + 1, :ow + 1, :]
                t = jnp.pad(t, ((0, 0), (0, oh + 1 - t.shape[1]),
                                (0, ow + 1 - t.shape[2]), (0, 0)))
                parts.append(t)
        phases = jnp.stack(parts, axis=1)                      # (N,s*s,OH+1,OW+1,Cin)
    ss, ph, pw = phases.shape[1], phases.shape[2], phases.shape[3]
    phases4 = phases.reshape(n * ss, ph, pw, cin).astype(jnp.bfloat16)
    w9 = w.reshape(9, cin, cout).astype(jnp.bfloat16)
    b2 = b.reshape(1, cout).astype(jnp.float32)
    out = _conv3x3_call(n, ss, ph, pw, cin, cout, oh, ow, stride)(phases4, w9, b2)
    return out.reshape(n, oh, ow, cout)


# ------------------ BatchNorm (training-mode, tiled two-pass) ------------------

def _bn_stats_kernel(x_ref, s_ref, ss_ref):
    @pl.when(pl.program_id(0) == 0)
    def _():
        s_ref[...] = jnp.zeros_like(s_ref)
        ss_ref[...] = jnp.zeros_like(ss_ref)
    x = x_ref[...]
    s_ref[...] += jnp.sum(x, axis=0, keepdims=True)
    ss_ref[...] += jnp.sum(x * x, axis=0, keepdims=True)


@functools.lru_cache(maxsize=None)
def _bn_stats_call(m, c, tm):
    return pl.pallas_call(
        _bn_stats_kernel,
        out_shape=(jax.ShapeDtypeStruct((1, c), jnp.float32),
                   jax.ShapeDtypeStruct((1, c), jnp.float32)),
        grid_spec=pltpu.PrefetchScalarGridSpec(
            num_scalar_prefetch=0,
            grid=(m // tm,),
            in_specs=[pl.BlockSpec((tm, c), lambda i: (i, 0))],
            out_specs=[pl.BlockSpec((1, c), lambda i: (0, 0)),
                       pl.BlockSpec((1, c), lambda i: (0, 0))]),
        compiler_params=pltpu.CompilerParams(
            dimension_semantics=("arbitrary",), vmem_limit_bytes=_VMEM_LIMIT),
    )


def _bn_scale_shift(s_ref, ss_ref, g_ref, b_ref, count, eps):
    inv = 1.0 / count
    mean = s_ref[...] * inv
    var = jnp.maximum(ss_ref[...] * inv - mean * mean, 0.0)  # biased var (train BN)
    scale = g_ref[...] * lax.rsqrt(var + eps)
    shift = b_ref[...] - mean * scale
    return scale, shift


def _bn_apply_kernel(x_ref, s_ref, ss_ref, g_ref, b_ref, o_ref, *, count, eps, relu):
    scale, shift = _bn_scale_shift(s_ref, ss_ref, g_ref, b_ref, count, eps)
    y = x_ref[...] * scale + shift
    if relu:
        y = jnp.maximum(y, 0.0)
    o_ref[...] = y


def _bn_apply_res_kernel(x_ref, s_ref, ss_ref, g_ref, b_ref, r_ref, o_ref,
                         *, count, eps):
    scale, shift = _bn_scale_shift(s_ref, ss_ref, g_ref, b_ref, count, eps)
    o_ref[...] = jnp.maximum(x_ref[...] * scale + shift + r_ref[...], 0.0)


@functools.lru_cache(maxsize=None)
def _bn_apply_call(m, c, tm, count, eps, relu, with_residual):
    vec = pl.BlockSpec((1, c), lambda i: (0, 0))
    tile = pl.BlockSpec((tm, c), lambda i: (i, 0))
    if with_residual:
        kern = functools.partial(_bn_apply_res_kernel, count=count, eps=eps)
        in_specs = [tile, vec, vec, vec, vec, tile]
    else:
        kern = functools.partial(_bn_apply_kernel, count=count, eps=eps, relu=relu)
        in_specs = [tile, vec, vec, vec, vec]
    return pl.pallas_call(
        kern,
        out_shape=jax.ShapeDtypeStruct((m, c), jnp.float32),
        grid_spec=pltpu.PrefetchScalarGridSpec(
            num_scalar_prefetch=0,
            grid=(m // tm,),
            in_specs=in_specs,
            out_specs=tile),
        compiler_params=pltpu.CompilerParams(
            dimension_semantics=("parallel",), vmem_limit_bytes=_VMEM_LIMIT),
    )


def batchnorm(x_nhwc, gamma, beta, *, relu, residual=None, eps=_BN_EPS):
    """Training-mode BatchNorm2d (current-batch stats); ReLU fused; if
    `residual` is given, residual add + ReLU are fused into the apply pass."""
    n, h, w, c = x_nhwc.shape
    m = n * h * w
    tm = _pick_tile(m, (1024, 512, 256, 128))
    if tm > 4096:                      # unaligned large M: tile + pad instead
        tm = 128
    mp = _round_up(m, tm)
    x2 = x_nhwc.reshape(m, c)
    x2p = x2 if mp == m else jnp.pad(x2, ((0, mp - m), (0, 0)))
    s, ssq = _bn_stats_call(mp, c, tm)(x2p)    # zero-padded rows add 0 to sums
    g2 = gamma.reshape(1, c).astype(jnp.float32)
    b2 = beta.reshape(1, c).astype(jnp.float32)
    if residual is None:
        out = _bn_apply_call(mp, c, tm, m, eps, relu, False)(x2p, s, ssq, g2, b2)
    else:
        r2 = residual.reshape(m, c).astype(jnp.float32)
        r2p = r2 if mp == m else jnp.pad(r2, ((0, mp - m), (0, 0)))
        out = _bn_apply_call(mp, c, tm, m, eps, True, True)(x2p, s, ssq, g2, b2, r2p)
    out = out if mp == m else out[:m]
    return out.reshape(n, h, w, c)


# ------------------------------ params + forward -------------------------------

def init_params(key, input_channels, bottleneck_channels, stride):
    expansion = 4
    out_channels = bottleneck_channels * expansion

    def conv_init(k, kh, kw, cin, cout):
        kw_key, kb_key = jax.random.split(k)
        scale = 1.0 / math.sqrt(kh * kw * cin)
        return {"w": jax.random.normal(kw_key, (kh, kw, cin, cout), jnp.float32) * scale,
                "b": jax.random.normal(kb_key, (cout,), jnp.float32) * scale}

    def bn_init(c):
        return {"g": jnp.ones((c,), jnp.float32), "b": jnp.zeros((c,), jnp.float32)}

    ks = jax.random.split(key, 4)
    params = {
        "reduce": conv_init(ks[0], 1, 1, input_channels, bottleneck_channels),
        "bn1": bn_init(bottleneck_channels),
        "extract": conv_init(ks[1], 3, 3, bottleneck_channels, bottleneck_channels),
        "bn2": bn_init(bottleneck_channels),
        "restore": conv_init(ks[2], 1, 1, bottleneck_channels, out_channels),
        "bn3": bn_init(out_channels),
    }
    if stride != 1 or input_channels != out_channels:
        params["proj"] = conv_init(ks[3], 1, 1, input_channels, out_channels)
        params["proj_bn"] = bn_init(out_channels)
    return params


def bottleneck_forward(params, x_nchw, *, stride):
    """Forward pass of EnhancedBottleneckBlock."""
    x = jnp.transpose(x_nchw.astype(jnp.float32), (0, 2, 3, 1))   # NCHW -> NHWC

    # compressed = relu(bn1(1x1 reduce(x)))
    y = conv1x1_bias(x, params["reduce"]["w"], params["reduce"]["b"])
    y = batchnorm(y, params["bn1"]["g"], params["bn1"]["b"], relu=True)

    # features = relu(bn2(3x3 extract(compressed)))
    y = conv3x3_bias(y, params["extract"]["w"], params["extract"]["b"], stride=stride)
    y = batchnorm(y, params["bn2"]["g"], params["bn2"]["b"], relu=True)

    # restored = bn3(1x1 restore(features))   (bn3 fused with add+relu below)
    y = conv1x1_bias(y, params["restore"]["w"], params["restore"]["b"])

    # identity path
    if "proj" in params:
        sc = conv1x1_bias(x, params["proj"]["w"], params["proj"]["b"], stride=stride)
        sc = batchnorm(sc, params["proj_bn"]["g"], params["proj_bn"]["b"], relu=False)
    else:
        sc = x

    # out = relu(bn3(restored) + shortcut)   -- one fused Pallas pass
    out = batchnorm(y, params["bn3"]["g"], params["bn3"]["b"], relu=True, residual=sc)
    return jnp.transpose(out, (0, 3, 1, 2))                       # NHWC -> NCHW


# ------------------------------------ main -------------------------------------

if __name__ == "__main__":
    batch, in_channels, spatial = 2, 64, 16
    bottleneck_channels, stride = 32, 2

    key = jax.random.PRNGKey(0)
    k_params, k_x = jax.random.split(key)
    params = init_params(k_params, in_channels, bottleneck_channels, stride)
    x = jax.random.normal(k_x, (batch, in_channels, spatial, spatial), jnp.float32)

    fwd = jax.jit(functools.partial(bottleneck_forward, stride=stride))
    out = fwd(params, x)
    jax.block_until_ready(out)

    out_channels = bottleneck_channels * 4
    out_spatial = (spatial - 1) // stride + 1
    assert out.shape == (batch, out_channels, out_spatial, out_spatial), out.shape
    assert bool(jnp.all(jnp.isfinite(out)))
    assert bool(jnp.all(out >= 0.0))          # final ReLU
    print("KERNEL_OK")
</pallas_src>

<mosaic_0001>
module attributes {stable_mosaic.version = 11 : i64} {
  func.func @_bn_stats_kernel(%arg0: i32, %arg1: memref<512x32xf32, #tpu.memory_space<vmem>>, %arg2: memref<1x32xf32, #tpu.memory_space<vmem>>, %arg3: memref<1x32xf32, #tpu.memory_space<vmem>>) attributes {dimension_semantics = [#tpu.dimension_semantics<arbitrary>], iteration_bounds = array<i64: 1>, scalar_prefetch = 0 : i64, scratch_operands = 0 : i64, tpu.core_type = #tpu.core_type<tc>, window_params = [{transform_indices = @transform_0, window_bounds = array<i64: 512, 32>}, {pipeline_mode = #tpu.pipeline_mode<synchronous>, transform_indices = @transform_1, window_bounds = array<i64: 1, 32>}, {pipeline_mode = #tpu.pipeline_mode<synchronous>, transform_indices = @transform_2, window_bounds = array<i64: 1, 32>}]} {
    %c0_i32 = arith.constant 0 : i32
    %0 = arith.cmpi eq, %arg0, %c0_i32 : i32
    %1 = arith.extui %0 : i1 to i32
    %c0_i32_0 = arith.constant 0 : i32
    %2 = arith.cmpi ne, %1, %c0_i32_0 : i32
    scf.if %2 {
      %cst_11 = arith.constant 0.000000e+00 : f32
      %15 = vector.broadcast %cst_11 : f32 to vector<1x32xf32>
      %c0_12 = arith.constant 0 : index
      %c0_13 = arith.constant 0 : index
      %16 = vector.load %arg2[%c0_12, %c0_13] : memref<1x32xf32, #tpu.memory_space<vmem>>, vector<1x32xf32>
      tpu.vector_store %arg2[%c0_12, %c0_13], %15 {strides = array<i32>} : memref<1x32xf32, #tpu.memory_space<vmem>>, vector<1x32xf32>,
      %cst_14 = arith.constant 0.000000e+00 : f32
      %17 = vector.broadcast %cst_14 : f32 to vector<1x32xf32>
      %c0_15 = arith.constant 0 : index
      %c0_16 = arith.constant 0 : index
      %18 = vector.load %arg3[%c0_15, %c0_16] : memref<1x32xf32, #tpu.memory_space<vmem>>, vector<1x32xf32>
      tpu.vector_store %arg3[%c0_15, %c0_16], %17 {strides = array<i32>} : memref<1x32xf32, #tpu.memory_space<vmem>>, vector<1x32xf32>,
    } else {
    }
    %c0 = arith.constant 0 : index
    %c0_1 = arith.constant 0 : index
    %3 = vector.load %arg1[%c0, %c0_1] : memref<512x32xf32, #tpu.memory_space<vmem>>, vector<512x32xf32>
    %c0_2 = arith.constant 0 : index
    %c0_3 = arith.constant 0 : index
    %4 = vector.load %arg2[%c0_2, %c0_3] : memref<1x32xf32, #tpu.memory_space<vmem>>, vector<1x32xf32>
    %cst = arith.constant dense<0.000000e+00> : vector<32xf32>
    %5 = vector.multi_reduction <add>, %3, %cst [0] : vector<512x32xf32> to vector<32xf32>
    %6 = vector.shape_cast %5 : vector<32xf32> to vector<1x32xf32>
    %7 = arith.addf %4, %6 : vector<1x32xf32>
    %c0_4 = arith.constant 0 : index
    %c0_5 = arith.constant 0 : index
    %8 = vector.load %arg2[%c0_4, %c0_5] : memref<1x32xf32, #tpu.memory_space<vmem>>, vector<1x32xf32>
    tpu.vector_store %arg2[%c0_4, %c0_5], %7 {strides = array<i32>} : memref<1x32xf32, #tpu.memory_space<vmem>>, vector<1x32xf32>,
    %c0_6 = arith.constant 0 : index
    %c0_7 = arith.constant 0 : index
    %9 = vector.load %arg3[%c0_6, %c0_7] : memref<1x32xf32, #tpu.memory_space<vmem>>, vector<1x32xf32>
    %10 = arith.mulf %3, %3 : vector<512x32xf32>
    %cst_8 = arith.constant dense<0.000000e+00> : vector<32xf32>
    %11 = vector.multi_reduction <add>, %10, %cst_8 [0] : vector<512x32xf32> to vector<32xf32>
    %12 = vector.shape_cast %11 : vector<32xf32> to vector<1x32xf32>
    %13 = arith.addf %9, %12 : vector<1x32xf32>
    %c0_9 = arith.constant 0 : index
    %c0_10 = arith.constant 0 : index
    %14 = vector.load %arg3[%c0_9, %c0_10] : memref<1x32xf32, #tpu.memory_space<vmem>>, vector<1x32xf32>
    tpu.vector_store %arg3[%c0_9, %c0_10], %13 {strides = array<i32>} : memref<1x32xf32, #tpu.memory_space<vmem>>, vector<1x32xf32>,
    return
  }
  func.func @transform_0(%arg0: i32) -> (i32, i32) {
    %c0_i32 = arith.constant 0 : i32
    %c0_i32_0 = arith.constant 0 : i32
    return %arg0, %c0_i32 : i32, i32
  }
  func.func @transform_1(%arg0: i32) -> (i32, i32) {
    %c0_i32 = arith.constant 0 : i32
    %c0_i32_0 = arith.constant 0 : i32
    %c0_i32_1 = arith.constant 0 : i32
    return %c0_i32, %c0_i32_0 : i32, i32
  }
  func.func @transform_2(%arg0: i32) -> (i32, i32) {
    %c0_i32 = arith.constant 0 : i32
    %c0_i32_0 = arith.constant 0 : i32
    %c0_i32_1 = arith.constant 0 : i32
    return %c0_i32, %c0_i32_0 : i32, i32
  }
}

module attributes {stable_mosaic.version = 11 : i64} {
  func.func @_matmul_bias_kernel(%arg0: i32, %arg1: i32, %arg2: i32, %arg3: memref<256x64xbf16, #tpu.memory_space<vmem>>, %arg4: memref<64x32xbf16, #tpu.memory_space<vmem>>, %arg5: memref<1x32xf32, #tpu.memory_space<vmem>>, %arg6: memref<256x32xf32, #tpu.memory_space<vmem>>, %arg7: memref<256x32xf32, #tpu.memory_space<vmem>>) attributes {dimension_semantics = [#tpu.dimension_semantics<parallel>, #tpu.dimension_semantics<parallel>, #tpu.dimension_semantics<arbitrary>], iteration_bounds = array<i64: 2, 1, 1>, scalar_prefetch = 0 : i64, scratch_operands = 1 : i64, tpu.core_type = #tpu.core_type<tc>, window_params = [{transform_indices = @transform_0, window_bounds = array<i64: 256, 64>}, {transform_indices = @transform_1, window_bounds = array<i64: 64, 32>}, {transform_indices = @transform_2, window_bounds = array<i64: 1, 32>}, {transform_indices = @transform_3, window_bounds = array<i64: 256, 32>}]} {
    %c0_i32 = arith.constant 0 : i32
    %0 = arith.cmpi eq, %arg2, %c0_i32 : i32
    %1 = arith.extui %0 : i1 to i32
    %c0_i32_0 = arith.constant 0 : i32
    %2 = arith.cmpi ne, %1, %c0_i32_0 : i32
    scf.if %2 {
      %cst_10 = arith.constant 0.000000e+00 : f32
      %12 = vector.broadcast %cst_10 : f32 to vector<256x32xf32>
      %c0_11 = arith.constant 0 : index
      %c0_12 = arith.constant 0 : index
      %13 = vector.load %arg7[%c0_11, %c0_12] : memref<256x32xf32, #tpu.memory_space<vmem>>, vector<256x32xf32>
      tpu.vector_store %arg7[%c0_11, %c0_12], %12 {strides = array<i32>} : memref<256x32xf32, #tpu.memory_space<vmem>>, vector<256x32xf32>,
    } else {
    }
    %c0 = arith.constant 0 : index
    %c0_1 = arith.constant 0 : index
    %3 = vector.load %arg7[%c0, %c0_1] : memref<256x32xf32, #tpu.memory_space<vmem>>, vector<256x32xf32>
    %c0_2 = arith.constant 0 : index
    %c0_3 = arith.constant 0 : index
    %4 = vector.load %arg3[%c0_2, %c0_3] : memref<256x64xbf16, #tpu.memory_space<vmem>>, vector<256x64xbf16>
    %c0_4 = arith.constant 0 : index
    %c0_5 = arith.constant 0 : index
    %5 = vector.load %arg4[%c0_4, %c0_5] : memref<64x32xbf16, #tpu.memory_space<vmem>>, vector<64x32xbf16>
    %cst = arith.constant dense<0.000000e+00> : vector<256x32xf32>
    %6 = tpu.matmul %4, %5, %cst {dimension_numbers = #tpu.dot_dimension_numbers<[1], [0], [0], [1], [0, 0, 1, 1], [], []>} : vector<256x64xbf16>, vector<64x32xbf16>, vector<256x32xf32> -> vector<256x32xf32>
    %7 = arith.addf %3, %6 : vector<256x32xf32>
    %c0_6 = arith.constant 0 : index
    %c0_7 = arith.constant 0 : index
    %8 = vector.load %arg7[%c0_6, %c0_7] : memref<256x32xf32, #tpu.memory_space<vmem>>, vector<256x32xf32>
    tpu.vector_store %arg7[%c0_6, %c0_7], %7 {strides = array<i32>} : memref<256x32xf32, #tpu.memory_space<vmem>>, vector<256x32xf32>,
    %c0_i32_8 = arith.constant 0 : i32
    %9 = arith.cmpi eq, %arg2, %c0_i32_8 : i32
    %10 = arith.extui %9 : i1 to i32
    %c0_i32_9 = arith.constant 0 : i32
    %11 = arith.cmpi ne, %10, %c0_i32_9 : i32
    scf.if %11 {
      %c0_10 = arith.constant 0 : index
      %c0_11 = arith.constant 0 : index
      %12 = vector.load %arg7[%c0_10, %c0_11] : memref<256x32xf32, #tpu.memory_space<vmem>>, vector<256x32xf32>
      %c0_12 = arith.constant 0 : index
      %c0_13 = arith.constant 0 : index
      %13 = vector.load %arg5[%c0_12, %c0_13] : memref<1x32xf32, #tpu.memory_space<vmem>>, vector<1x32xf32>
      %14 = vector.broadcast %13 : vector<1x32xf32> to vector<256x32xf32>
      %15 = arith.addf %12, %14 : vector<256x32xf32>
      %c0_14 = arith.constant 0 : index
      %c0_15 = arith.constant 0 : index
      %16 = vector.load %arg6[%c0_14, %c0_15] : memref<256x32xf32, #tpu.memory_space<vmem>>, vector<256x32xf32>
      tpu.vector_store %arg6[%c0_14, %c0_15], %15 {strides = array<i32>} : memref<256x32xf32, #tpu.memory_space<vmem>>, vector<256x32xf32>,
    } else {
    }
    return
  }
  func.func @transform_0(%arg0: i32, %arg1: i32, %arg2: i32) -> (i32, i32) {
    %c0_i32 = arith.constant 0 : i32
    return %arg0, %arg2 : i32, i32
  }
  func.func @transform_1(%arg0: i32, %arg1: i32, %arg2: i32) -> (i32, i32) {
    %c0_i32 = arith.constant 0 : i32
    return %arg2, %arg1 : i32, i32
  }
  func.func @transform_2(%arg0: i32, %arg1: i32, %arg2: i32) -> (i32, i32) {
    %c0_i32 = arith.constant 0 : i32
    %c0_i32_0 = arith.constant 0 : i32
    return %c0_i32, %arg1 : i32, i32
  }
  func.func @transform_3(%arg0: i32, %arg1: i32, %arg2: i32) -> (i32, i32) {
    %c0_i32 = arith.constant 0 : i32
    return %arg0, %arg1 : i32, i32
  }
}

module attributes {stable_mosaic.version = 11 : i64} {
  func.func @_bn_apply_kernel(%arg0: i32, %arg1: memref<512x32xf32, #tpu.memory_space<vmem>>, %arg2: memref<1x32xf32, #tpu.memory_space<vmem>>, %arg3: memref<1x32xf32, #tpu.memory_space<vmem>>, %arg4: memref<1x32xf32, #tpu.memory_space<vmem>>, %arg5: memref<1x32xf32, #tpu.memory_space<vmem>>, %arg6: memref<512x32xf32, #tpu.memory_space<vmem>>) attributes {dimension_semantics = [#tpu.dimension_semantics<parallel>], iteration_bounds = array<i64: 1>, scalar_prefetch = 0 : i64, scratch_operands = 0 : i64, tpu.core_type = #tpu.core_type<tc>, window_params = [{transform_indices = @transform_0, window_bounds = array<i64: 512, 32>}, {pipeline_mode = #tpu.pipeline_mode<synchronous>, transform_indices = @transform_1, window_bounds = array<i64: 1, 32>}, {pipeline_mode = #tpu.pipeline_mode<synchronous>, transform_indices = @transform_2, window_bounds = array<i64: 1, 32>}, {pipeline_mode = #tpu.pipeline_mode<synchronous>, transform_indices = @transform_3, window_bounds = array<i64: 1, 32>}, {pipeline_mode = #tpu.pipeline_mode<synchronous>, transform_indices = @transform_4, window_bounds = array<i64: 1, 32>}, {transform_indices = @transform_5, window_bounds = array<i64: 512, 32>}]} {
    %c0 = arith.constant 0 : index
    %c0_0 = arith.constant 0 : index
    %0 = vector.load %arg2[%c0, %c0_0] : memref<1x32xf32, #tpu.memory_space<vmem>>, vector<1x32xf32>
    %cst = arith.constant 0.001953125 : f32
    %1 = vector.broadcast %cst : f32 to vector<1x32xf32>
    %2 = arith.mulf %0, %1 : vector<1x32xf32>
    %c0_1 = arith.constant 0 : index
    %c0_2 = arith.constant 0 : index
    %3 = vector.load %arg3[%c0_1, %c0_2] : memref<1x32xf32, #tpu.memory_space<vmem>>, vector<1x32xf32>
    %cst_3 = arith.constant 0.001953125 : f32
    %4 = vector.broadcast %cst_3 : f32 to vector<1x32xf32>
    %5 = arith.mulf %3, %4 : vector<1x32xf32>
    %6 = arith.mulf %2, %2 : vector<1x32xf32>
    %7 = arith.subf %5, %6 : vector<1x32xf32>
    %cst_4 = arith.constant 0.000000e+00 : f32
    %8 = vector.broadcast %cst_4 : f32 to vector<1x32xf32>
    %9 = arith.maximumf %7, %8 : vector<1x32xf32>
    %c0_5 = arith.constant 0 : index
    %c0_6 = arith.constant 0 : index
    %10 = vector.load %arg4[%c0_5, %c0_6] : memref<1x32xf32, #tpu.memory_space<vmem>>, vector<1x32xf32>
    %cst_7 = arith.constant 9.99999974E-6 : f32
    %11 = vector.broadcast %cst_7 : f32 to vector<1x32xf32>
    %12 = arith.addf %9, %11 : vector<1x32xf32>
    %13 = math.rsqrt %12 : vector<1x32xf32>
    %14 = arith.mulf %10, %13 : vector<1x32xf32>
    %c0_8 = arith.constant 0 : index
    %c0_9 = arith.constant 0 : index
    %15 = vector.load %arg5[%c0_8, %c0_9] : memref<1x32xf32, #tpu.memory_space<vmem>>, vector<1x32xf32>
    %16 = arith.mulf %2, %14 : vector<1x32xf32>
    %17 = arith.subf %15, %16 : vector<1x32xf32>
    %c0_10 = arith.constant 0 : index
    %c0_11 = arith.constant 0 : index
    %18 = vector.load %arg1[%c0_10, %c0_11] : memref<512x32xf32, #tpu.memory_space<vmem>>, vector<512x32xf32>
    %19 = vector.broadcast %14 : vector<1x32xf32> to vector<512x32xf32>
    %20 = arith.mulf %18, %19 : vector<512x32xf32>
    %21 = vector.broadcast %17 : vector<1x32xf32> to vector<512x32xf32>
    %22 = arith.addf %20, %21 : vector<512x32xf32>
    %cst_12 = arith.constant 0.000000e+00 : f32
    %23 = vector.broadcast %cst_12 : f32 to vector<512x32xf32>
    %24 = arith.maximumf %22, %23 : vector<512x32xf32>
    %c0_13 = arith.constant 0 : index
    %c0_14 = arith.constant 0 : index
    %25 = vector.load %arg6[%c0_13, %c0_14] : memref<512x32xf32, #tpu.memory_space<vmem>>, vector<512x32xf32>
    tpu.vector_store %arg6[%c0_13, %c0_14], %24 {strides = array<i32>} : memref<512x32xf32, #tpu.memory_space<vmem>>, vector<512x32xf32>,
    return
  }
  func.func @transform_0(%arg0: i32) -> (i32, i32) {
    %c0_i32 = arith.constant 0 : i32
    %c0_i32_0 = arith.constant 0 : i32
    return %arg0, %c0_i32 : i32, i32
  }
  func.func @transform_1(%arg0: i32) -> (i32, i32) {
    %c0_i32 = arith.constant 0 : i32
    %c0_i32_0 = arith.constant 0 : i32
    %c0_i32_1 = arith.constant 0 : i32
    return %c0_i32, %c0_i32_0 : i32, i32
  }
  func.func @transform_2(%arg0: i32) -> (i32, i32) {
    %c0_i32 = arith.constant 0 : i32
    %c0_i32_0 = arith.constant 0 : i32
    %c0_i32_1 = arith.constant 0 : i32
    return %c0_i32, %c0_i32_0 : i32, i32
  }
  func.func @transform_3(%arg0: i32) -> (i32, i32) {
    %c0_i32 = arith.constant 0 : i32
    %c0_i32_0 = arith.constant 0 : i32
    %c0_i32_1 = arith.constant 0 : i32
    return %c0_i32, %c0_i32_0 : i32, i32
  }
  func.func @transform_4(%arg0: i32) -> (i32, i32) {
    %c0_i32 = arith.constant 0 : i32
    %c0_i32_0 = arith.constant 0 : i32
    %c0_i32_1 = arith.constant 0 : i32
    return %c0_i32, %c0_i32_0 : i32, i32
  }
  func.func @transform_5(%arg0: i32) -> (i32, i32) {
    %c0_i32 = arith.constant 0 : i32
    %c0_i32_0 = arith.constant 0 : i32
    return %arg0, %c0_i32 : i32, i32
  }
}

module attributes {stable_mosaic.version = 11 : i64} {
  func.func @_conv3x3_kernel(%arg0: i32, %arg1: memref<4x9x9x32xbf16, #tpu.memory_space<vmem>>, %arg2: memref<9x32x32xbf16, #tpu.memory_space<vmem>>, %arg3: memref<1x32xf32, #tpu.memory_space<vmem>>, %arg4: memref<1x64x32xf32, #tpu.memory_space<vmem>>) attributes {dimension_semantics = [#tpu.dimension_semantics<parallel>], iteration_bounds = array<i64: 2>, scalar_prefetch = 0 : i64, scratch_operands = 0 : i64, tpu.core_type = #tpu.core_type<tc>, window_params = [{transform_indices = @transform_0, window_bounds = array<i64: 4, 9, 9, 32>}, {pipeline_mode = #tpu.pipeline_mode<synchronous>, transform_indices = @transform_1, window_bounds = array<i64: 9, 32, 32>}, {pipeline_mode = #tpu.pipeline_mode<synchronous>, transform_indices = @transform_2, window_bounds = array<i64: 1, 32>}, {transform_indices = @transform_3, window_bounds = array<i64: 1, 64, 32>}]} {
    %cst = arith.constant 0.000000e+00 : f32
    %0 = vector.broadcast %cst : f32 to vector<64x32xf32>
    %c0 = arith.constant 0 : index
    %c0_0 = arith.constant 0 : index
    %c0_1 = arith.constant 0 : index
    %c0_2 = arith.constant 0 : index
    %1 = vector.load %arg1[%c0, %c0_0, %c0_1, %c0_2] : memref<4x9x9x32xbf16, #tpu.memory_space<vmem>>, vector<1x8x8x32xbf16>
    %2 = vector.shape_cast %1 : vector<1x8x8x32xbf16> to vector<8x8x32xbf16>
    %3 = vector.shape_cast %2 : vector<8x8x32xbf16> to vector<64x32xbf16>
    %c0_3 = arith.constant 0 : index
    %c0_4 = arith.constant 0 : index
    %c0_5 = arith.constant 0 : index
    %4 = vector.load %arg2[%c0_3, %c0_4, %c0_5] : memref<9x32x32xbf16, #tpu.memory_space<vmem>>, vector<1x32x32xbf16>
    %5 = vector.shape_cast %4 : vector<1x32x32xbf16> to vector<32x32xbf16>
    %cst_6 = arith.constant dense<0.000000e+00> : vector<64x32xf32>
    %6 = tpu.matmul %3, %5, %cst_6 {dimension_numbers = #tpu.dot_dimension_numbers<[1], [0], [0], [1], [0, 0, 1, 1], [], []>} : vector<64x32xbf16>, vector<32x32xbf16>, vector<64x32xf32> -> vector<64x32xf32>
    %7 = arith.addf %0, %6 : vector<64x32xf32>
    %c1 = arith.constant 1 : index
    %c0_7 = arith.constant 0 : index
    %c0_8 = arith.constant 0 : index
    %c0_9 = arith.constant 0 : index
    %8 = vector.load %arg1[%c1, %c0_7, %c0_8, %c0_9] : memref<4x9x9x32xbf16, #tpu.memory_space<vmem>>, vector<1x8x8x32xbf16>
    %9 = vector.shape_cast %8 : vector<1x8x8x32xbf16> to vector<8x8x32xbf16>
    %10 = vector.shape_cast %9 : vector<8x8x32xbf16> to vector<64x32xbf16>
    %c1_10 = arith.constant 1 : index
    %c0_11 = arith.constant 0 : index
    %c0_12 = arith.constant 0 : index
    %11 = vector.load %arg2[%c1_10, %c0_11, %c0_12] : memref<9x32x32xbf16, #tpu.memory_space<vmem>>, vector<1x32x32xbf16>
    %12 = vector.shape_cast %11 : vector<1x32x32xbf16> to vector<32x32xbf16>
    %cst_13 = arith.constant dense<0.000000e+00> : vector<64x32xf32>
    %13 = tpu.matmul %10, %12, %cst_13 {dimension_numbers = #tpu.dot_dimension_numbers<[1], [0], [0], [1], [0, 0, 1, 1], [], []>} : vector<64x32xbf16>, vector<32x32xbf16>, vector<64x32xf32> -> vector<64x32xf32>
    %14 = arith.addf %7, %13 : vector<64x32xf32>
    %c0_14 = arith.constant 0 : index
    %c0_15 = arith.constant 0 : index
    %c1_16 = arith.constant 1 : index
    %c0_17 = arith.constant 0 : index
    %15 = vector.load %arg1[%c0_14, %c0_15, %c1_16, %c0_17] : memref<4x9x9x32xbf16, #tpu.memory_space<vmem>>, vector<1x8x8x32xbf16>
    %16 = vector.shape_cast %15 : vector<1x8x8x32xbf16> to vector<8x8x32xbf16>
    %17 = vector.shape_cast %16 : vector<8x8x32xbf16> to vector<64x32xbf16>
    %c2 = arith.constant 2 : index
    %c0_18 = arith.constant 0 : index
    %c0_19 = arith.constant 0 : index
    %18 = vector.load %arg2[%c2, %c0_18, %c0_19] : memref<9x32x32xbf16, #tpu.memory_space<vmem>>, vector<1x32x32xbf16>
    %19 = vector.shape_cast %18 : vector<1x32x32xbf16> to vector<32x32xbf16>
    %cst_20 = arith.constant dense<0.000000e+00> : vector<64x32xf32>
    %20 = tpu.matmul %17, %19, %cst_20 {dimension_numbers = #tpu.dot_dimension_numbers<[1], [0], [0], [1], [0, 0, 1, 1], [], []>} : vector<64x32xbf16>, vector<32x32xbf16>, vector<64x32xf32> -> vector<64x32xf32>
    %21 = arith.addf %14, %20 : vector<64x32xf32>
    %c2_21 = arith.constant 2 : index
    %c0_22 = arith.constant 0 : index
    %c0_23 = arith.constant 0 : index
    %c0_24 = arith.constant 0 : index
    %22 = vector.load %arg1[%c2_21, %c0_22, %c0_23, %c0_24] : memref<4x9x9x32xbf16, #tpu.memory_space<vmem>>, vector<1x8x8x32xbf16>
    %23 = vector.shape_cast %22 : vector<1x8x8x32xbf16> to vector<8x8x32xbf16>
    %24 = vector.shape_cast %23 : vector<8x8x32xbf16> to vector<64x32xbf16>
    %c3 = arith.constant 3 : index
    %c0_25 = arith.constant 0 : index
    %c0_26 = arith.constant 0 : index
    %25 = vector.load %arg2[%c3, %c0_25, %c0_26] : memref<9x32x32xbf16, #tpu.memory_space<vmem>>, vector<1x32x32xbf16>
    %26 = vector.shape_cast %25 : vector<1x32x32xbf16> to vector<32x32xbf16>
    %cst_27 = arith.constant dense<0.000000e+00> : vector<64x32xf32>
    %27 = tpu.matmul %24, %26, %cst_27 {dimension_numbers = #tpu.dot_dimension_numbers<[1], [0], [0], [1], [0, 0, 1, 1], [], []>} : vector<64x32xbf16>, vector<32x32xbf16>, vector<64x32xf32> -> vector<64x32xf32>
    %28 = arith.addf %21, %27 : vector<64x32xf32>
    %c3_28 = arith.constant 3 : index
    %c0_29 = arith.constant 0 : index
    %c0_30 = arith.constant 0 : index
    %c0_31 = arith.constant 0 : index
    %29 = vector.load %arg1[%c3_28, %c0_29, %c0_30, %c0_31] : memref<4x9x9x32xbf16, #tpu.memory_space<vmem>>, vector<1x8x8x32xbf16>
    %30 = vector.shape_cast %29 : vector<1x8x8x32xbf16> to vector<8x8x32xbf16>
    %31 = vector.shape_cast %30 : vector<8x8x32xbf16> to vector<64x32xbf16>
    %c4 = arith.constant 4 : index
    %c0_32 = arith.constant 0 : index
    %c0_33 = arith.constant 0 : index
    %32 = vector.load %arg2[%c4, %c0_32, %c0_33] : memref<9x32x32xbf16, #tpu.memory_space<vmem>>, vector<1x32x32xbf16>
    %33 = vector.shape_cast %32 : vector<1x32x32xbf16> to vector<32x32xbf16>
    %cst_34 = arith.constant dense<0.000000e+00> : vector<64x32xf32>
    %34 = tpu.matmul %31, %33, %cst_34 {dimension_numbers = #tpu.dot_dimension_numbers<[1], [0], [0], [1], [0, 0, 1, 1], [], []>} : vector<64x32xbf16>, vector<32x32xbf16>, vector<64x32xf32> -> vector<64x32xf32>
    %35 = arith.addf %28, %34 : vector<64x32xf32>
    %c2_35 = arith.constant 2 : index
    %c0_36 = arith.constant 0 : index
    %c1_37 = arith.constant 1 : index
    %c0_38 = arith.constant 0 : index
    %36 = vector.load %arg1[%c2_35, %c0_36, %c1_37, %c0_38] : memref<4x9x9x32xbf16, #tpu.memory_space<vmem>>, vector<1x8x8x32xbf16>
    %37 = vector.shape_cast %36 : vector<1x8x8x32xbf16> to vector<8x8x32xbf16>
    %38 = vector.shape_cast %37 : vector<8x8x32xbf16> to vector<64x32xbf16>
    %c5 = arith.constant 5 : index
    %c0_39 = arith.constant 0 : index
    %c0_40 = arith.constant 0 : index
    %39 = vector.load %arg2[%c5, %c0_39, %c0_40] : memref<9x32x32xbf16, #tpu.memory_space<vmem>>, vector<1x32x32xbf16>
    %40 = vector.shape_cast %39 : vector<1x32x32xbf16> to vector<32x32xbf16>
    %cst_41 = arith.constant dense<0.000000e+00> : vector<64x32xf32>
    %41 = tpu.matmul %38, %40, %cst_41 {dimension_numbers = #tpu.dot_dimension_numbers<[1], [0], [0], [1], [0, 0, 1, 1], [], []>} : vector<64x32xbf16>, vector<32x32xbf16>, vector<64x32xf32> -> vector<64x32xf32>
    %42 = arith.addf %35, %41 : vector<64x32xf32>
    %c0_42 = arith.constant 0 : index
    %c1_43 = arith.constant 1 : index
    %c0_44 = arith.constant 0 : index
    %c0_45 = arith.constant 0 : index
    %43 = vector.load %arg1[%c0_42, %c1_43, %c0_44, %c0_45] : memref<4x9x9x32xbf16, #tpu.memory_space<vmem>>, vector<1x8x8x32xbf16>
    %44 = vector.shape_cast %43 : vector<1x8x8x32xbf16> to vector<8x8x32xbf16>
    %45 = vector.shape_cast %44 : vector<8x8x32xbf16> to vector<64x32xbf16>
    %c6 = arith.constant 6 : index
    %c0_46 = arith.constant 0 : index
    %c0_47 = arith.constant 0 : index
    %46 = vector.load %arg2[%c6, %c0_46, %c0_47] : memref<9x32x32xbf16, #tpu.memory_space<vmem>>, vector<1x32x32xbf16>
    %47 = vector.shape_cast %46 : vector<1x32x32xbf16> to vector<32x32xbf16>
    %cst_48 = arith.constant dense<0.000000e+00> : vector<64x32xf32>
    %48 = tpu.matmul %45, %47, %cst_48 {dimension_numbers = #tpu.dot_dimension_numbers<[1], [0], [0], [1], [0, 0, 1, 1], [], []>} : vector<64x32xbf16>, vector<32x32xbf16>, vector<64x32xf32> -> vector<64x32xf32>
    %49 = arith.addf %42, %48 : vector<64x32xf32>
    %c1_49 = arith.constant 1 : index
    %c1_50 = arith.constant 1 : index
    %c0_51 = arith.constant 0 : index
    %c0_52 = arith.constant 0 : index
    %50 = vector.load %arg1[%c1_49, %c1_50, %c0_51, %c0_52] : memref<4x9x9x32xbf16, #tpu.memory_space<vmem>>, vector<1x8x8x32xbf16>
    %51 = vector.shape_cast %50 : vector<1x8x8x32xbf16> to vector<8x8x32xbf16>
    %52 = vector.shape_cast %51 : vector<8x8x32xbf16> to vector<64x32xbf16>
    %c7 = arith.constant 7 : index
    %c0_53 = arith.constant 0 : index
    %c0_54 = arith.constant 0 : index
    %53 = vector.load %arg2[%c7, %c0_53, %c0_54] : memref<9x32x32xbf16, #tpu.memory_space<vmem>>, vector<1x32x32xbf16>
    %54 = vector.shape_cast %53 : vector<1x32x32xbf16> to vector<32x32xbf16>
    %cst_55 = arith.constant dense<0.000000e+00> : vector<64x32xf32>
    %55 = tpu.matmul %52, %54, %cst_55 {dimension_numbers = #tpu.dot_dimension_numbers<[1], [0], [0], [1], [0, 0, 1, 1], [], []>} : vector<64x32xbf16>, vector<32x32xbf16>, vector<64x32xf32> -> vector<64x32xf32>
    %56 = arith.addf %49, %55 : vector<64x32xf32>
    %c0_56 = arith.constant 0 : index
    %c1_57 = arith.constant 1 : index
    %c1_58 = arith.constant 1 : index
    %c0_59 = arith.constant 0 : index
    %57 = vector.load %arg1[%c0_56, %c1_57, %c1_58, %c0_59] : memref<4x9x9x32xbf16, #tpu.memory_space<vmem>>, vector<1x8x8x32xbf16>
    %58 = vector.shape_cast %57 : vector<1x8x8x32xbf16> to vector<8x8x32xbf16>
    %59 = vector.shape_cast %58 : vector<8x8x32xbf16> to vector<64x32xbf16>
    %c8 = arith.constant 8 : index
    %c0_60 = arith.constant 0 : index
    %c0_61 = arith.constant 0 : index
    %60 = vector.load %arg2[%c8, %c0_60, %c0_61] : memref<9x32x32xbf16, #tpu.memory_space<vmem>>, vector<1x32x32xbf16>
    %61 = vector.shape_cast %60 : vector<1x32x32xbf16> to vector<32x32xbf16>
    %cst_62 = arith.constant dense<0.000000e+00> : vector<64x32xf32>
    %62 = tpu.matmul %59, %61, %cst_62 {dimension_numbers = #tpu.dot_dimension_numbers<[1], [0], [0], [1], [0, 0, 1, 1], [], []>} : vector<64x32xbf16>, vector<32x32xbf16>, vector<64x32xf32> -> vector<64x32xf32>
    %63 = arith.addf %56, %62 : vector<64x32xf32>
    %c0_63 = arith.constant 0 : index
    %c0_64 = arith.constant 0 : index
    %64 = vector.load %arg3[%c0_63, %c0_64] : memref<1x32xf32, #tpu.memory_space<vmem>>, vector<1x32xf32>
    %65 = vector.broadcast %64 : vector<1x32xf32> to vector<64x32xf32>
    %66 = arith.addf %63, %65 : vector<64x32xf32>
    %c0_65 = arith.constant 0 : index
    %c0_66 = arith.constant 0 : index
    %c0_67 = arith.constant 0 : index
    %67 = vector.load %arg4[%c0_65, %c0_66, %c0_67] : memref<1x64x32xf32, #tpu.memory_space<vmem>>, vector<1x64x32xf32>
    %68 = vector.shape_cast %67 : vector<1x64x32xf32> to vector<64x32xf32>
    %69 = vector.shape_cast %66 : vector<64x32xf32> to vector<1x64x32xf32>
    tpu.vector_store %arg4[%c0_65, %c0_66, %c0_67], %69 {strides = array<i32>} : memref<1x64x32xf32, #tpu.memory_space<vmem>>, vector<1x64x32xf32>,
    return
  }
  func.func @transform_0(%arg0: i32) -> (i32, i32, i32, i32) {
    %c0_i32 = arith.constant 0 : i32
    %c0_i32_0 = arith.constant 0 : i32
    %c0_i32_1 = arith.constant 0 : i32
    %c0_i32_2 = arith.constant 0 : i32
    return %arg0, %c0_i32, %c0_i32_0, %c0_i32_1 : i32, i32, i32, i32
  }
  func.func @transform_1(%arg0: i32) -> (i32, i32, i32) {
    %c0_i32 = arith.constant 0 : i32
    %c0_i32_0 = arith.constant 0 : i32
    %c0_i32_1 = arith.constant 0 : i32
    %c0_i32_2 = arith.constant 0 : i32
    return %c0_i32, %c0_i32_0, %c0_i32_1 : i32, i32, i32
  }
  func.func @transform_2(%arg0: i32) -> (i32, i32) {
    %c0_i32 = arith.constant 0 : i32
    %c0_i32_0 = arith.constant 0 : i32
    %c0_i32_1 = arith.constant 0 : i32
    return %c0_i32, %c0_i32_0 : i32, i32
  }
  func.func @transform_3(%arg0: i32) -> (i32, i32, i32) {
    %c0_i32 = arith.constant 0 : i32
    %c0_i32_0 = arith.constant 0 : i32
    %c0_i32_1 = arith.constant 0 : i32
    return %arg0, %c0_i32, %c0_i32_0 : i32, i32, i32
  }
}

module attributes {stable_mosaic.version = 11 : i64} {
  func.func @_bn_apply_kernel(%arg0: i32, %arg1: memref<128x32xf32, #tpu.memory_space<vmem>>, %arg2: memref<1x32xf32, #tpu.memory_space<vmem>>, %arg3: memref<1x32xf32, #tpu.memory_space<vmem>>, %arg4: memref<1x32xf32, #tpu.memory_space<vmem>>, %arg5: memref<1x32xf32, #tpu.memory_space<vmem>>, %arg6: memref<128x32xf32, #tpu.memory_space<vmem>>) attributes {dimension_semantics = [#tpu.dimension_semantics<parallel>], iteration_bounds = array<i64: 1>, scalar_prefetch = 0 : i64, scratch_operands = 0 : i64, tpu.core_type = #tpu.core_type<tc>, window_params = [{transform_indices = @transform_0, window_bounds = array<i64: 128, 32>}, {pipeline_mode = #tpu.pipeline_mode<synchronous>, transform_indices = @transform_1, window_bounds = array<i64: 1, 32>}, {pipeline_mode = #tpu.pipeline_mode<synchronous>, transform_indices = @transform_2, window_bounds = array<i64: 1, 32>}, {pipeline_mode = #tpu.pipeline_mode<synchronous>, transform_indices = @transform_3, window_bounds = array<i64: 1, 32>}, {pipeline_mode = #tpu.pipeline_mode<synchronous>, transform_indices = @transform_4, window_bounds = array<i64: 1, 32>}, {transform_indices = @transform_5, window_bounds = array<i64: 128, 32>}]} {
    %c0 = arith.constant 0 : index
    %c0_0 = arith.constant 0 : index
    %0 = vector.load %arg2[%c0, %c0_0] : memref<1x32xf32, #tpu.memory_space<vmem>>, vector<1x32xf32>
    %cst = arith.constant 7.812500e-03 : f32
    %1 = vector.broadcast %cst : f32 to vector<1x32xf32>
    %2 = arith.mulf %0, %1 : vector<1x32xf32>
    %c0_1 = arith.constant 0 : index
    %c0_2 = arith.constant 0 : index
    %3 = vector.load %arg3[%c0_1, %c0_2] : memref<1x32xf32, #tpu.memory_space<vmem>>, vector<1x32xf32>
    %cst_3 = arith.constant 7.812500e-03 : f32
    %4 = vector.broadcast %cst_3 : f32 to vector<1x32xf32>
    %5 = arith.mulf %3, %4 : vector<1x32xf32>
    %6 = arith.mulf %2, %2 : vector<1x32xf32>
    %7 = arith.subf %5, %6 : vector<1x32xf32>
    %cst_4 = arith.constant 0.000000e+00 : f32
    %8 = vector.broadcast %cst_4 : f32 to vector<1x32xf32>
    %9 = arith.maximumf %7, %8 : vector<1x32xf32>
    %c0_5 = arith.constant 0 : index
    %c0_6 = arith.constant 0 : index
    %10 = vector.load %arg4[%c0_5, %c0_6] : memref<1x32xf32, #tpu.memory_space<vmem>>, vector<1x32xf32>
    %cst_7 = arith.constant 9.99999974E-6 : f32
    %11 = vector.broadcast %cst_7 : f32 to vector<1x32xf32>
    %12 = arith.addf %9, %11 : vector<1x32xf32>
    %13 = math.rsqrt %12 : vector<1x32xf32>
    %14 = arith.mulf %10, %13 : vector<1x32xf32>
    %c0_8 = arith.constant 0 : index
    %c0_9 = arith.constant 0 : index
    %15 = vector.load %arg5[%c0_8, %c0_9] : memref<1x32xf32, #tpu.memory_space<vmem>>, vector<1x32xf32>
    %16 = arith.mulf %2, %14 : vector<1x32xf32>
    %17 = arith.subf %15, %16 : vector<1x32xf32>
    %c0_10 = arith.constant 0 : index
    %c0_11 = arith.constant 0 : index
    %18 = vector.load %arg1[%c0_10, %c0_11] : memref<128x32xf32, #tpu.memory_space<vmem>>, vector<128x32xf32>
    %19 = vector.broadcast %14 : vector<1x32xf32> to vector<128x32xf32>
    %20 = arith.mulf %18, %19 : vector<128x32xf32>
    %21 = vector.broadcast %17 : vector<1x32xf32> to vector<128x32xf32>
    %22 = arith.addf %20, %21 : vector<128x32xf32>
    %cst_12 = arith.constant 0.000000e+00 : f32
    %23 = vector.broadcast %cst_12 : f32 to vector<128x32xf32>
    %24 = arith.maximumf %22, %23 : vector<128x32xf32>
    %c0_13 = arith.constant 0 : index
    %c0_14 = arith.constant 0 : index
    %25 = vector.load %arg6[%c0_13, %c0_14] : memref<128x32xf32, #tpu.memory_space<vmem>>, vector<128x32xf32>
    tpu.vector_store %arg6[%c0_13, %c0_14], %24 {strides = array<i32>} : memref<128x32xf32, #tpu.memory_space<vmem>>, vector<128x32xf32>,
    return
  }
  func.func @transform_0(%arg0: i32) -> (i32, i32) {
    %c0_i32 = arith.constant 0 : i32
    %c0_i32_0 = arith.constant 0 : i32
    return %arg0, %c0_i32 : i32, i32
  }
  func.func @transform_1(%arg0: i32) -> (i32, i32) {
    %c0_i32 = arith.constant 0 : i32
    %c0_i32_0 = arith.constant 0 : i32
    %c0_i32_1 = arith.constant 0 : i32
    return %c0_i32, %c0_i32_0 : i32, i32
  }
  func.func @transform_2(%arg0: i32) -> (i32, i32) {
    %c0_i32 = arith.constant 0 : i32
    %c0_i32_0 = arith.constant 0 : i32
    %c0_i32_1 = arith.constant 0 : i32
    return %c0_i32, %c0_i32_0 : i32, i32
  }
  func.func @transform_3(%arg0: i32) -> (i32, i32) {
    %c0_i32 = arith.constant 0 : i32
    %c0_i32_0 = arith.constant 0 : i32
    %c0_i32_1 = arith.constant 0 : i32
    return %c0_i32, %c0_i32_0 : i32, i32
  }
  func.func @transform_4(%arg0: i32) -> (i32, i32) {
    %c0_i32 = arith.constant 0 : i32
    %c0_i32_0 = arith.constant 0 : i32
    %c0_i32_1 = arith.constant 0 : i32
    return %c0_i32, %c0_i32_0 : i32, i32
  }
  func.func @transform_5(%arg0: i32) -> (i32, i32) {
    %c0_i32 = arith.constant 0 : i32
    %c0_i32_0 = arith.constant 0 : i32
    return %arg0, %c0_i32 : i32, i32
  }
}

module attributes {stable_mosaic.version = 11 : i64} {
  func.func @_bn_stats_kernel(%arg0: i32, %arg1: memref<128x32xf32, #tpu.memory_space<vmem>>, %arg2: memref<1x32xf32, #tpu.memory_space<vmem>>, %arg3: memref<1x32xf32, #tpu.memory_space<vmem>>) attributes {dimension_semantics = [#tpu.dimension_semantics<arbitrary>], iteration_bounds = array<i64: 1>, scalar_prefetch = 0 : i64, scratch_operands = 0 : i64, tpu.core_type = #tpu.core_type<tc>, window_params = [{transform_indices = @transform_0, window_bounds = array<i64: 128, 32>}, {pipeline_mode = #tpu.pipeline_mode<synchronous>, transform_indices = @transform_1, window_bounds = array<i64: 1, 32>}, {pipeline_mode = #tpu.pipeline_mode<synchronous>, transform_indices = @transform_2, window_bounds = array<i64: 1, 32>}]} {
    %c0_i32 = arith.constant 0 : i32
    %0 = arith.cmpi eq, %arg0, %c0_i32 : i32
    %1 = arith.extui %0 : i1 to i32
    %c0_i32_0 = arith.constant 0 : i32
    %2 = arith.cmpi ne, %1, %c0_i32_0 : i32
    scf.if %2 {
      %cst_11 = arith.constant 0.000000e+00 : f32
      %15 = vector.broadcast %cst_11 : f32 to vector<1x32xf32>
      %c0_12 = arith.constant 0 : index
      %c0_13 = arith.constant 0 : index
      %16 = vector.load %arg2[%c0_12, %c0_13] : memref<1x32xf32, #tpu.memory_space<vmem>>, vector<1x32xf32>
      tpu.vector_store %arg2[%c0_12, %c0_13], %15 {strides = array<i32>} : memref<1x32xf32, #tpu.memory_space<vmem>>, vector<1x32xf32>,
      %cst_14 = arith.constant 0.000000e+00 : f32
      %17 = vector.broadcast %cst_14 : f32 to vector<1x32xf32>
      %c0_15 = arith.constant 0 : index
      %c0_16 = arith.constant 0 : index
      %18 = vector.load %arg3[%c0_15, %c0_16] : memref<1x32xf32, #tpu.memory_space<vmem>>, vector<1x32xf32>
      tpu.vector_store %arg3[%c0_15, %c0_16], %17 {strides = array<i32>} : memref<1x32xf32, #tpu.memory_space<vmem>>, vector<1x32xf32>,
    } else {
    }
    %c0 = arith.constant 0 : index
    %c0_1 = arith.constant 0 : index
    %3 = vector.load %arg1[%c0, %c0_1] : memref<128x32xf32, #tpu.memory_space<vmem>>, vector<128x32xf32>
    %c0_2 = arith.constant 0 : index
    %c0_3 = arith.constant 0 : index
    %4 = vector.load %arg2[%c0_2, %c0_3] : memref<1x32xf32, #tpu.memory_space<vmem>>, vector<1x32xf32>
    %cst = arith.constant dense<0.000000e+00> : vector<32xf32>
    %5 = vector.multi_reduction <add>, %3, %cst [0] : vector<128x32xf32> to vector<32xf32>
    %6 = vector.shape_cast %5 : vector<32xf32> to vector<1x32xf32>
    %7 = arith.addf %4, %6 : vector<1x32xf32>
    %c0_4 = arith.constant 0 : index
    %c0_5 = arith.constant 0 : index
    %8 = vector.load %arg2[%c0_4, %c0_5] : memref<1x32xf32, #tpu.memory_space<vmem>>, vector<1x32xf32>
    tpu.vector_store %arg2[%c0_4, %c0_5], %7 {strides = array<i32>} : memref<1x32xf32, #tpu.memory_space<vmem>>, vector<1x32xf32>,
    %c0_6 = arith.constant 0 : index
    %c0_7 = arith.constant 0 : index
    %9 = vector.load %arg3[%c0_6, %c0_7] : memref<1x32xf32, #tpu.memory_space<vmem>>, vector<1x32xf32>
    %10 = arith.mulf %3, %3 : vector<128x32xf32>
    %cst_8 = arith.constant dense<0.000000e+00> : vector<32xf32>
    %11 = vector.multi_reduction <add>, %10, %cst_8 [0] : vector<128x32xf32> to vector<32xf32>
    %12 = vector.shape_cast %11 : vector<32xf32> to vector<1x32xf32>
    %13 = arith.addf %9, %12 : vector<1x32xf32>
    %c0_9 = arith.constant 0 : index
    %c0_10 = arith.constant 0 : index
    %14 = vector.load %arg3[%c0_9, %c0_10] : memref<1x32xf32, #tpu.memory_space<vmem>>, vector<1x32xf32>
    tpu.vector_store %arg3[%c0_9, %c0_10], %13 {strides = array<i32>} : memref<1x32xf32, #tpu.memory_space<vmem>>, vector<1x32xf32>,
    return
  }
  func.func @transform_0(%arg0: i32) -> (i32, i32) {
    %c0_i32 = arith.constant 0 : i32
    %c0_i32_0 = arith.constant 0 : i32
    return %arg0, %c0_i32 : i32, i32
  }
  func.func @transform_1(%arg0: i32) -> (i32, i32) {
    %c0_i32 = arith.constant 0 : i32
    %c0_i32_0 = arith.constant 0 : i32
    %c0_i32_1 = arith.constant 0 : i32
    return %c0_i32, %c0_i32_0 : i32, i32
  }
  func.func @transform_2(%arg0: i32) -> (i32, i32) {
    %c0_i32 = arith.constant 0 : i32
    %c0_i32_0 = arith.constant 0 : i32
    %c0_i32_1 = arith.constant 0 : i32
    return %c0_i32, %c0_i32_0 : i32, i32
  }
}

module attributes {stable_mosaic.version = 11 : i64} {
  func.func @_matmul_bias_kernel(%arg0: i32, %arg1: i32, %arg2: i32, %arg3: memref<128x32xbf16, #tpu.memory_space<vmem>>, %arg4: memref<32x128xbf16, #tpu.memory_space<vmem>>, %arg5: memref<1x128xf32, #tpu.memory_space<vmem>>, %arg6: memref<128x128xf32, #tpu.memory_space<vmem>>, %arg7: memref<128x128xf32, #tpu.memory_space<vmem>>) attributes {dimension_semantics = [#tpu.dimension_semantics<parallel>, #tpu.dimension_semantics<parallel>, #tpu.dimension_semantics<arbitrary>], iteration_bounds = array<i64: 1, 1, 1>, scalar_prefetch = 0 : i64, scratch_operands = 1 : i64, tpu.core_type = #tpu.core_type<tc>, window_params = [{transform_indices = @transform_0, window_bounds = array<i64: 128, 32>}, {transform_indices = @transform_1, window_bounds = array<i64: 32, 128>}, {transform_indices = @transform_2, window_bounds = array<i64: 1, 128>}, {transform_indices = @transform_3, window_bounds = array<i64: 128, 128>}]} {
    %c0_i32 = arith.constant 0 : i32
    %0 = arith.cmpi eq, %arg2, %c0_i32 : i32
    %1 = arith.extui %0 : i1 to i32
    %c0_i32_0 = arith.constant 0 : i32
    %2 = arith.cmpi ne, %1, %c0_i32_0 : i32
    scf.if %2 {
      %cst_10 = arith.constant 0.000000e+00 : f32
      %12 = vector.broadcast %cst_10 : f32 to vector<128x128xf32>
      %c0_11 = arith.constant 0 : index
      %c0_12 = arith.constant 0 : index
      %13 = vector.load %arg7[%c0_11, %c0_12] : memref<128x128xf32, #tpu.memory_space<vmem>>, vector<128x128xf32>
      tpu.vector_store %arg7[%c0_11, %c0_12], %12 {strides = array<i32>} : memref<128x128xf32, #tpu.memory_space<vmem>>, vector<128x128xf32>,
    } else {
    }
    %c0 = arith.constant 0 : index
    %c0_1 = arith.constant 0 : index
    %3 = vector.load %arg7[%c0, %c0_1] : memref<128x128xf32, #tpu.memory_space<vmem>>, vector<128x128xf32>
    %c0_2 = arith.constant 0 : index
    %c0_3 = arith.constant 0 : index
    %4 = vector.load %arg3[%c0_2, %c0_3] : memref<128x32xbf16, #tpu.memory_space<vmem>>, vector<128x32xbf16>
    %c0_4 = arith.constant 0 : index
    %c0_5 = arith.constant 0 : index
    %5 = vector.load %arg4[%c0_4, %c0_5] : memref<32x128xbf16, #tpu.memory_space<vmem>>, vector<32x128xbf16>
    %cst = arith.constant dense<0.000000e+00> : vector<128x128xf32>
    %6 = tpu.matmul %4, %5, %cst {dimension_numbers = #tpu.dot_dimension_numbers<[1], [0], [0], [1], [0, 0, 1, 1], [], []>} : vector<128x32xbf16>, vector<32x128xbf16>, vector<128x128xf32> -> vector<128x128xf32>
    %7 = arith.addf %3, %6 : vector<128x128xf32>
    %c0_6 = arith.constant 0 : index
    %c0_7 = arith.constant 0 : index
    %8 = vector.load %arg7[%c0_6, %c0_7] : memref<128x128xf32, #tpu.memory_space<vmem>>, vector<128x128xf32>
    tpu.vector_store %arg7[%c0_6, %c0_7], %7 {strides = array<i32>} : memref<128x128xf32, #tpu.memory_space<vmem>>, vector<128x128xf32>,
    %c0_i32_8 = arith.constant 0 : i32
    %9 = arith.cmpi eq, %arg2, %c0_i32_8 : i32
    %10 = arith.extui %9 : i1 to i32
    %c0_i32_9 = arith.constant 0 : i32
    %11 = arith.cmpi ne, %10, %c0_i32_9 : i32
    scf.if %11 {
      %c0_10 = arith.constant 0 : index
      %c0_11 = arith.constant 0 : index
      %12 = vector.load %arg7[%c0_10, %c0_11] : memref<128x128xf32, #tpu.memory_space<vmem>>, vector<128x128xf32>
      %c0_12 = arith.constant 0 : index
      %c0_13 = arith.constant 0 : index
      %13 = vector.load %arg5[%c0_12, %c0_13] : memref<1x128xf32, #tpu.memory_space<vmem>>, vector<1x128xf32>
      %14 = vector.broadcast %13 : vector<1x128xf32> to vector<128x128xf32>
      %15 = arith.addf %12, %14 : vector<128x128xf32>
      %c0_14 = arith.constant 0 : index
      %c0_15 = arith.constant 0 : index
      %16 = vector.load %arg6[%c0_14, %c0_15] : memref<128x128xf32, #tpu.memory_space<vmem>>, vector<128x128xf32>
      tpu.vector_store %arg6[%c0_14, %c0_15], %15 {strides = array<i32>} : memref<128x128xf32, #tpu.memory_space<vmem>>, vector<128x128xf32>,
    } else {
    }
    return
  }
  func.func @transform_0(%arg0: i32, %arg1: i32, %arg2: i32) -> (i32, i32) {
    %c0_i32 = arith.constant 0 : i32
    return %arg0, %arg2 : i32, i32
  }
  func.func @transform_1(%arg0: i32, %arg1: i32, %arg2: i32) -> (i32, i32) {
    %c0_i32 = arith.constant 0 : i32
    return %arg2, %arg1 : i32, i32
  }
  func.func @transform_2(%arg0: i32, %arg1: i32, %arg2: i32) -> (i32, i32) {
    %c0_i32 = arith.constant 0 : i32
    %c0_i32_0 = arith.constant 0 : i32
    return %c0_i32, %arg1 : i32, i32
  }
  func.func @transform_3(%arg0: i32, %arg1: i32, %arg2: i32) -> (i32, i32) {
    %c0_i32 = arith.constant 0 : i32
    return %arg0, %arg1 : i32, i32
  }
}

module attributes {stable_mosaic.version = 11 : i64} {
  func.func @_bn_stats_kernel(%arg0: i32, %arg1: memref<128x128xf32, #tpu.memory_space<vmem>>, %arg2: memref<1x128xf32, #tpu.memory_space<vmem>>, %arg3: memref<1x128xf32, #tpu.memory_space<vmem>>) attributes {dimension_semantics = [#tpu.dimension_semantics<arbitrary>], iteration_bounds = array<i64: 1>, scalar_prefetch = 0 : i64, scratch_operands = 0 : i64, tpu.core_type = #tpu.core_type<tc>, window_params = [{transform_indices = @transform_0, window_bounds = array<i64: 128, 128>}, {pipeline_mode = #tpu.pipeline_mode<synchronous>, transform_indices = @transform_1, window_bounds = array<i64: 1, 128>}, {pipeline_mode = #tpu.pipeline_mode<synchronous>, transform_indices = @transform_2, window_bounds = array<i64: 1, 128>}]} {
    %c0_i32 = arith.constant 0 : i32
    %0 = arith.cmpi eq, %arg0, %c0_i32 : i32
    %1 = arith.extui %0 : i1 to i32
    %c0_i32_0 = arith.constant 0 : i32
    %2 = arith.cmpi ne, %1, %c0_i32_0 : i32
    scf.if %2 {
      %cst_11 = arith.constant 0.000000e+00 : f32
      %15 = vector.broadcast %cst_11 : f32 to vector<1x128xf32>
      %c0_12 = arith.constant 0 : index
      %c0_13 = arith.constant 0 : index
      %16 = vector.load %arg2[%c0_12, %c0_13] : memref<1x128xf32, #tpu.memory_space<vmem>>, vector<1x128xf32>
      tpu.vector_store %arg2[%c0_12, %c0_13], %15 {strides = array<i32>} : memref<1x128xf32, #tpu.memory_space<vmem>>, vector<1x128xf32>,
      %cst_14 = arith.constant 0.000000e+00 : f32
      %17 = vector.broadcast %cst_14 : f32 to vector<1x128xf32>
      %c0_15 = arith.constant 0 : index
      %c0_16 = arith.constant 0 : index
      %18 = vector.load %arg3[%c0_15, %c0_16] : memref<1x128xf32, #tpu.memory_space<vmem>>, vector<1x128xf32>
      tpu.vector_store %arg3[%c0_15, %c0_16], %17 {strides = array<i32>} : memref<1x128xf32, #tpu.memory_space<vmem>>, vector<1x128xf32>,
    } else {
    }
    %c0 = arith.constant 0 : index
    %c0_1 = arith.constant 0 : index
    %3 = vector.load %arg1[%c0, %c0_1] : memref<128x128xf32, #tpu.memory_space<vmem>>, vector<128x128xf32>
    %c0_2 = arith.constant 0 : index
    %c0_3 = arith.constant 0 : index
    %4 = vector.load %arg2[%c0_2, %c0_3] : memref<1x128xf32, #tpu.memory_space<vmem>>, vector<1x128xf32>
    %cst = arith.constant dense<0.000000e+00> : vector<128xf32>
    %5 = vector.multi_reduction <add>, %3, %cst [0] : vector<128x128xf32> to vector<128xf32>
    %6 = vector.shape_cast %5 : vector<128xf32> to vector<1x128xf32>
    %7 = arith.addf %4, %6 : vector<1x128xf32>
    %c0_4 = arith.constant 0 : index
    %c0_5 = arith.constant 0 : index
    %8 = vector.load %arg2[%c0_4, %c0_5] : memref<1x128xf32, #tpu.memory_space<vmem>>, vector<1x128xf32>
    tpu.vector_store %arg2[%c0_4, %c0_5], %7 {strides = array<i32>} : memref<1x128xf32, #tpu.memory_space<vmem>>, vector<1x128xf32>,
    %c0_6 = arith.constant 0 : index
    %c0_7 = arith.constant 0 : index
    %9 = vector.load %arg3[%c0_6, %c0_7] : memref<1x128xf32, #tpu.memory_space<vmem>>, vector<1x128xf32>
    %10 = arith.mulf %3, %3 : vector<128x128xf32>
    %cst_8 = arith.constant dense<0.000000e+00> : vector<128xf32>
    %11 = vector.multi_reduction <add>, %10, %cst_8 [0] : vector<128x128xf32> to vector<128xf32>
    %12 = vector.shape_cast %11 : vector<128xf32> to vector<1x128xf32>
    %13 = arith.addf %9, %12 : vector<1x128xf32>
    %c0_9 = arith.constant 0 : index
    %c0_10 = arith.constant 0 : index
    %14 = vector.load %arg3[%c0_9, %c0_10] : memref<1x128xf32, #tpu.memory_space<vmem>>, vector<1x128xf32>
    tpu.vector_store %arg3[%c0_9, %c0_10], %13 {strides = array<i32>} : memref<1x128xf32, #tpu.memory_space<vmem>>, vector<1x128xf32>,
    return
  }
  func.func @transform_0(%arg0: i32) -> (i32, i32) {
    %c0_i32 = arith.constant 0 : i32
    %c0_i32_0 = arith.constant 0 : i32
    return %arg0, %c0_i32 : i32, i32
  }
  func.func @transform_1(%arg0: i32) -> (i32, i32) {
    %c0_i32 = arith.constant 0 : i32
    %c0_i32_0 = arith.constant 0 : i32
    %c0_i32_1 = arith.constant 0 : i32
    return %c0_i32, %c0_i32_0 : i32, i32
  }
  func.func @transform_2(%arg0: i32) -> (i32, i32) {
    %c0_i32 = arith.constant 0 : i32
    %c0_i32_0 = arith.constant 0 : i32
    %c0_i32_1 = arith.constant 0 : i32
    return %c0_i32, %c0_i32_0 : i32, i32
  }
}

module attributes {stable_mosaic.version = 11 : i64} {
  func.func @_matmul_bias_kernel(%arg0: i32, %arg1: i32, %arg2: i32, %arg3: memref<128x64xbf16, #tpu.memory_space<vmem>>, %arg4: memref<64x128xbf16, #tpu.memory_space<vmem>>, %arg5: memref<1x128xf32, #tpu.memory_space<vmem>>, %arg6: memref<128x128xf32, #tpu.memory_space<vmem>>, %arg7: memref<128x128xf32, #tpu.memory_space<vmem>>) attributes {dimension_semantics = [#tpu.dimension_semantics<parallel>, #tpu.dimension_semantics<parallel>, #tpu.dimension_semantics<arbitrary>], iteration_bounds = array<i64: 1, 1, 1>, scalar_prefetch = 0 : i64, scratch_operands = 1 : i64, tpu.core_type = #tpu.core_type<tc>, window_params = [{transform_indices = @transform_0, window_bounds = array<i64: 128, 64>}, {transform_indices = @transform_1, window_bounds = array<i64: 64, 128>}, {transform_indices = @transform_2, window_bounds = array<i64: 1, 128>}, {transform_indices = @transform_3, window_bounds = array<i64: 128, 128>}]} {
    %c0_i32 = arith.constant 0 : i32
    %0 = arith.cmpi eq, %arg2, %c0_i32 : i32
    %1 = arith.extui %0 : i1 to i32
    %c0_i32_0 = arith.constant 0 : i32
    %2 = arith.cmpi ne, %1, %c0_i32_0 : i32
    scf.if %2 {
      %cst_10 = arith.constant 0.000000e+00 : f32
      %12 = vector.broadcast %cst_10 : f32 to vector<128x128xf32>
      %c0_11 = arith.constant 0 : index
      %c0_12 = arith.constant 0 : index
      %13 = vector.load %arg7[%c0_11, %c0_12] : memref<128x128xf32, #tpu.memory_space<vmem>>, vector<128x128xf32>
      tpu.vector_store %arg7[%c0_11, %c0_12], %12 {strides = array<i32>} : memref<128x128xf32, #tpu.memory_space<vmem>>, vector<128x128xf32>,
    } else {
    }
    %c0 = arith.constant 0 : index
    %c0_1 = arith.constant 0 : index
    %3 = vector.load %arg7[%c0, %c0_1] : memref<128x128xf32, #tpu.memory_space<vmem>>, vector<128x128xf32>
    %c0_2 = arith.constant 0 : index
    %c0_3 = arith.constant 0 : index
    %4 = vector.load %arg3[%c0_2, %c0_3] : memref<128x64xbf16, #tpu.memory_space<vmem>>, vector<128x64xbf16>
    %c0_4 = arith.constant 0 : index
    %c0_5 = arith.constant 0 : index
    %5 = vector.load %arg4[%c0_4, %c0_5] : memref<64x128xbf16, #tpu.memory_space<vmem>>, vector<64x128xbf16>
    %cst = arith.constant dense<0.000000e+00> : vector<128x128xf32>
    %6 = tpu.matmul %4, %5, %cst {dimension_numbers = #tpu.dot_dimension_numbers<[1], [0], [0], [1], [0, 0, 1, 1], [], []>} : vector<128x64xbf16>, vector<64x128xbf16>, vector<128x128xf32> -> vector<128x128xf32>
    %7 = arith.addf %3, %6 : vector<128x128xf32>
    %c0_6 = arith.constant 0 : index
    %c0_7 = arith.constant 0 : index
    %8 = vector.load %arg7[%c0_6, %c0_7] : memref<128x128xf32, #tpu.memory_space<vmem>>, vector<128x128xf32>
    tpu.vector_store %arg7[%c0_6, %c0_7], %7 {strides = array<i32>} : memref<128x128xf32, #tpu.memory_space<vmem>>, vector<128x128xf32>,
    %c0_i32_8 = arith.constant 0 : i32
    %9 = arith.cmpi eq, %arg2, %c0_i32_8 : i32
    %10 = arith.extui %9 : i1 to i32
    %c0_i32_9 = arith.constant 0 : i32
    %11 = arith.cmpi ne, %10, %c0_i32_9 : i32
    scf.if %11 {
      %c0_10 = arith.constant 0 : index
      %c0_11 = arith.constant 0 : index
      %12 = vector.load %arg7[%c0_10, %c0_11] : memref<128x128xf32, #tpu.memory_space<vmem>>, vector<128x128xf32>
      %c0_12 = arith.constant 0 : index
      %c0_13 = arith.constant 0 : index
      %13 = vector.load %arg5[%c0_12, %c0_13] : memref<1x128xf32, #tpu.memory_space<vmem>>, vector<1x128xf32>
      %14 = vector.broadcast %13 : vector<1x128xf32> to vector<128x128xf32>
      %15 = arith.addf %12, %14 : vector<128x128xf32>
      %c0_14 = arith.constant 0 : index
      %c0_15 = arith.constant 0 : index
      %16 = vector.load %arg6[%c0_14, %c0_15] : memref<128x128xf32, #tpu.memory_space<vmem>>, vector<128x128xf32>
      tpu.vector_store %arg6[%c0_14, %c0_15], %15 {strides = array<i32>} : memref<128x128xf32, #tpu.memory_space<vmem>>, vector<128x128xf32>,
    } else {
    }
    return
  }
  func.func @transform_0(%arg0: i32, %arg1: i32, %arg2: i32) -> (i32, i32) {
    %c0_i32 = arith.constant 0 : i32
    return %arg0, %arg2 : i32, i32
  }
  func.func @transform_1(%arg0: i32, %arg1: i32, %arg2: i32) -> (i32, i32) {
    %c0_i32 = arith.constant 0 : i32
    return %arg2, %arg1 : i32, i32
  }
  func.func @transform_2(%arg0: i32, %arg1: i32, %arg2: i32) -> (i32, i32) {
    %c0_i32 = arith.constant 0 : i32
    %c0_i32_0 = arith.constant 0 : i32
    return %c0_i32, %arg1 : i32, i32
  }
  func.func @transform_3(%arg0: i32, %arg1: i32, %arg2: i32) -> (i32, i32) {
    %c0_i32 = arith.constant 0 : i32
    return %arg0, %arg1 : i32, i32
  }
}

module attributes {stable_mosaic.version = 11 : i64} {
  func.func @_bn_apply_res_kernel(%arg0: i32, %arg1: memref<128x128xf32, #tpu.memory_space<vmem>>, %arg2: memref<1x128xf32, #tpu.memory_space<vmem>>, %arg3: memref<1x128xf32, #tpu.memory_space<vmem>>, %arg4: memref<1x128xf32, #tpu.memory_space<vmem>>, %arg5: memref<1x128xf32, #tpu.memory_space<vmem>>, %arg6: memref<128x128xf32, #tpu.memory_space<vmem>>, %arg7: memref<128x128xf32, #tpu.memory_space<vmem>>) attributes {dimension_semantics = [#tpu.dimension_semantics<parallel>], iteration_bounds = array<i64: 1>, scalar_prefetch = 0 : i64, scratch_operands = 0 : i64, tpu.core_type = #tpu.core_type<tc>, window_params = [{transform_indices = @transform_0, window_bounds = array<i64: 128, 128>}, {pipeline_mode = #tpu.pipeline_mode<synchronous>, transform_indices = @transform_1, window_bounds = array<i64: 1, 128>}, {pipeline_mode = #tpu.pipeline_mode<synchronous>, transform_indices = @transform_2, window_bounds = array<i64: 1, 128>}, {pipeline_mode = #tpu.pipeline_mode<synchronous>, transform_indices = @transform_3, window_bounds = array<i64: 1, 128>}, {pipeline_mode = #tpu.pipeline_mode<synchronous>, transform_indices = @transform_4, window_bounds = array<i64: 1, 128>}, {transform_indices = @transform_5, window_bounds = array<i64: 128, 128>}, {transform_indices = @transform_6, window_bounds = array<i64: 128, 128>}]} {
    %c0 = arith.constant 0 : index
    %c0_0 = arith.constant 0 : index
    %0 = vector.load %arg2[%c0, %c0_0] : memref<1x128xf32, #tpu.memory_space<vmem>>, vector<1x128xf32>
    %cst = arith.constant 7.812500e-03 : f32
    %1 = vector.broadcast %cst : f32 to vector<1x128xf32>
    %2 = arith.mulf %0, %1 : vector<1x128xf32>
    %c0_1 = arith.constant 0 : index
    %c0_2 = arith.constant 0 : index
    %3 = vector.load %arg3[%c0_1, %c0_2] : memref<1x128xf32, #tpu.memory_space<vmem>>, vector<1x128xf32>
    %cst_3 = arith.constant 7.812500e-03 : f32
    %4 = vector.broadcast %cst_3 : f32 to vector<1x128xf32>
    %5 = arith.mulf %3, %4 : vector<1x128xf32>
    %6 = arith.mulf %2, %2 : vector<1x128xf32>
    %7 = arith.subf %5, %6 : vector<1x128xf32>
    %cst_4 = arith.constant 0.000000e+00 : f32
    %8 = vector.broadcast %cst_4 : f32 to vector<1x128xf32>
    %9 = arith.maximumf %7, %8 : vector<1x128xf32>
    %c0_5 = arith.constant 0 : index
    %c0_6 = arith.constant 0 : index
    %10 = vector.load %arg4[%c0_5, %c0_6] : memref<1x128xf32, #tpu.memory_space<vmem>>, vector<1x128xf32>
    %cst_7 = arith.constant 9.99999974E-6 : f32
    %11 = vector.broadcast %cst_7 : f32 to vector<1x128xf32>
    %12 = arith.addf %9, %11 : vector<1x128xf32>
    %13 = math.rsqrt %12 : vector<1x128xf32>
    %14 = arith.mulf %10, %13 : vector<1x128xf32>
    %c0_8 = arith.constant 0 : index
    %c0_9 = arith.constant 0 : index
    %15 = vector.load %arg5[%c0_8, %c0_9] : memref<1x128xf32, #tpu.memory_space<vmem>>, vector<1x128xf32>
    %16 = arith.mulf %2, %14 : vector<1x128xf32>
    %17 = arith.subf %15, %16 : vector<1x128xf32>
    %c0_10 = arith.constant 0 : index
    %c0_11 = arith.constant 0 : index
    %18 = vector.load %arg1[%c0_10, %c0_11] : memref<128x128xf32, #tpu.memory_space<vmem>>, vector<128x128xf32>
    %19 = vector.broadcast %14 : vector<1x128xf32> to vector<128x128xf32>
    %20 = arith.mulf %18, %19 : vector<128x128xf32>
    %21 = vector.broadcast %17 : vector<1x128xf32> to vector<128x128xf32>
    %22 = arith.addf %20, %21 : vector<128x128xf32>
    %c0_12 = arith.constant 0 : index
    %c0_13 = arith.constant 0 : index
    %23 = vector.load %arg6[%c0_12, %c0_13] : memref<128x128xf32, #tpu.memory_space<vmem>>, vector<128x128xf32>
    %24 = arith.addf %22, %23 : vector<128x128xf32>
    %cst_14 = arith.constant 0.000000e+00 : f32
    %25 = vector.broadcast %cst_14 : f32 to vector<128x128xf32>
    %26 = arith.maximumf %24, %25 : vector<128x128xf32>
    %c0_15 = arith.constant 0 : index
    %c0_16 = arith.constant 0 : index
    %27 = vector.load %arg7[%c0_15, %c0_16] : memref<128x128xf32, #tpu.memory_space<vmem>>, vector<128x128xf32>
    tpu.vector_store %arg7[%c0_15, %c0_16], %26 {strides = array<i32>} : memref<128x128xf32, #tpu.memory_space<vmem>>, vector<128x128xf32>,
    return
  }
  func.func @transform_0(%arg0: i32) -> (i32, i32) {
    %c0_i32 = arith.constant 0 : i32
    %c0_i32_0 = arith.constant 0 : i32
    return %arg0, %c0_i32 : i32, i32
  }
  func.func @transform_1(%arg0: i32) -> (i32, i32) {
    %c0_i32 = arith.constant 0 : i32
    %c0_i32_0 = arith.constant 0 : i32
    %c0_i32_1 = arith.constant 0 : i32
    return %c0_i32, %c0_i32_0 : i32, i32
  }
  func.func @transform_2(%arg0: i32) -> (i32, i32) {
    %c0_i32 = arith.constant 0 : i32
    %c0_i32_0 = arith.constant 0 : i32
    %c0_i32_1 = arith.constant 0 : i32
    return %c0_i32, %c0_i32_0 : i32, i32
  }
  func.func @transform_3(%arg0: i32) -> (i32, i32) {
    %c0_i32 = arith.constant 0 : i32
    %c0_i32_0 = arith.constant 0 : i32
    %c0_i32_1 = arith.constant 0 : i32
    return %c0_i32, %c0_i32_0 : i32, i32
  }
  func.func @transform_4(%arg0: i32) -> (i32, i32) {
    %c0_i32 = arith.constant 0 : i32
    %c0_i32_0 = arith.constant 0 : i32
    %c0_i32_1 = arith.constant 0 : i32
    return %c0_i32, %c0_i32_0 : i32, i32
  }
  func.func @transform_5(%arg0: i32) -> (i32, i32) {
    %c0_i32 = arith.constant 0 : i32
    %c0_i32_0 = arith.constant 0 : i32
    return %arg0, %c0_i32 : i32, i32
  }
  func.func @transform_6(%arg0: i32) -> (i32, i32) {
    %c0_i32 = arith.constant 0 : i32
    %c0_i32_0 = arith.constant 0 : i32
    return %arg0, %c0_i32 : i32, i32
  }
}

module attributes {stable_mosaic.version = 11 : i64} {
  func.func @_bn_apply_kernel(%arg0: i32, %arg1: memref<128x128xf32, #tpu.memory_space<vmem>>, %arg2: memref<1x128xf32, #tpu.memory_space<vmem>>, %arg3: memref<1x128xf32, #tpu.memory_space<vmem>>, %arg4: memref<1x128xf32, #tpu.memory_space<vmem>>, %arg5: memref<1x128xf32, #tpu.memory_space<vmem>>, %arg6: memref<128x128xf32, #tpu.memory_space<vmem>>) attributes {dimension_semantics = [#tpu.dimension_semantics<parallel>], iteration_bounds = array<i64: 1>, scalar_prefetch = 0 : i64, scratch_operands = 0 : i64, tpu.core_type = #tpu.core_type<tc>, window_params = [{transform_indices = @transform_0, window_bounds = array<i64: 128, 128>}, {pipeline_mode = #tpu.pipeline_mode<synchronous>, transform_indices = @transform_1, window_bounds = array<i64: 1, 128>}, {pipeline_mode = #tpu.pipeline_mode<synchronous>, transform_indices = @transform_2, window_bounds = array<i64: 1, 128>}, {pipeline_mode = #tpu.pipeline_mode<synchronous>, transform_indices = @transform_3, window_bounds = array<i64: 1, 128>}, {pipeline_mode = #tpu.pipeline_mode<synchronous>, transform_indices = @transform_4, window_bounds = array<i64: 1, 128>}, {transform_indices = @transform_5, window_bounds = array<i64: 128, 128>}]} {
    %c0 = arith.constant 0 : index
    %c0_0 = arith.constant 0 : index
    %0 = vector.load %arg2[%c0, %c0_0] : memref<1x128xf32, #tpu.memory_space<vmem>>, vector<1x128xf32>
    %cst = arith.constant 7.812500e-03 : f32
    %1 = vector.broadcast %cst : f32 to vector<1x128xf32>
    %2 = arith.mulf %0, %1 : vector<1x128xf32>
    %c0_1 = arith.constant 0 : index
    %c0_2 = arith.constant 0 : index
    %3 = vector.load %arg3[%c0_1, %c0_2] : memref<1x128xf32, #tpu.memory_space<vmem>>, vector<1x128xf32>
    %cst_3 = arith.constant 7.812500e-03 : f32
    %4 = vector.broadcast %cst_3 : f32 to vector<1x128xf32>
    %5 = arith.mulf %3, %4 : vector<1x128xf32>
    %6 = arith.mulf %2, %2 : vector<1x128xf32>
    %7 = arith.subf %5, %6 : vector<1x128xf32>
    %cst_4 = arith.constant 0.000000e+00 : f32
    %8 = vector.broadcast %cst_4 : f32 to vector<1x128xf32>
    %9 = arith.maximumf %7, %8 : vector<1x128xf32>
    %c0_5 = arith.constant 0 : index
    %c0_6 = arith.constant 0 : index
    %10 = vector.load %arg4[%c0_5, %c0_6] : memref<1x128xf32, #tpu.memory_space<vmem>>, vector<1x128xf32>
    %cst_7 = arith.constant 9.99999974E-6 : f32
    %11 = vector.broadcast %cst_7 : f32 to vector<1x128xf32>
    %12 = arith.addf %9, %11 : vector<1x128xf32>
    %13 = math.rsqrt %12 : vector<1x128xf32>
    %14 = arith.mulf %10, %13 : vector<1x128xf32>
    %c0_8 = arith.constant 0 : index
    %c0_9 = arith.constant 0 : index
    %15 = vector.load %arg5[%c0_8, %c0_9] : memref<1x128xf32, #tpu.memory_space<vmem>>, vector<1x128xf32>
    %16 = arith.mulf %2, %14 : vector<1x128xf32>
    %17 = arith.subf %15, %16 : vector<1x128xf32>
    %c0_10 = arith.constant 0 : index
    %c0_11 = arith.constant 0 : index
    %18 = vector.load %arg1[%c0_10, %c0_11] : memref<128x128xf32, #tpu.memory_space<vmem>>, vector<128x128xf32>
    %19 = vector.broadcast %14 : vector<1x128xf32> to vector<128x128xf32>
    %20 = arith.mulf %18, %19 : vector<128x128xf32>
    %21 = vector.broadcast %17 : vector<1x128xf32> to vector<128x128xf32>
    %22 = arith.addf %20, %21 : vector<128x128xf32>
    %c0_12 = arith.constant 0 : index
    %c0_13 = arith.constant 0 : index
    %23 = vector.load %arg6[%c0_12, %c0_13] : memref<128x128xf32, #tpu.memory_space<vmem>>, vector<128x128xf32>
    tpu.vector_store %arg6[%c0_12, %c0_13], %22 {strides = array<i32>} : memref<128x128xf32, #tpu.memory_space<vmem>>, vector<128x128xf32>,
    return
  }
  func.func @transform_0(%arg0: i32) -> (i32, i32) {
    %c0_i32 = arith.constant 0 : i32
    %c0_i32_0 = arith.constant 0 : i32
    return %arg0, %c0_i32 : i32, i32
  }
  func.func @transform_1(%arg0: i32) -> (i32, i32) {
    %c0_i32 = arith.constant 0 : i32
    %c0_i32_0 = arith.constant 0 : i32
    %c0_i32_1 = arith.constant 0 : i32
    return %c0_i32, %c0_i32_0 : i32, i32
  }
  func.func @transform_2(%arg0: i32) -> (i32, i32) {
    %c0_i32 = arith.constant 0 : i32
    %c0_i32_0 = arith.constant 0 : i32
    %c0_i32_1 = arith.constant 0 : i32
    return %c0_i32, %c0_i32_0 : i32, i32
  }
  func.func @transform_3(%arg0: i32) -> (i32, i32) {
    %c0_i32 = arith.constant 0 : i32
    %c0_i32_0 = arith.constant 0 : i32
    %c0_i32_1 = arith.constant 0 : i32
    return %c0_i32, %c0_i32_0 : i32, i32
  }
  func.func @transform_4(%arg0: i32) -> (i32, i32) {
    %c0_i32 = arith.constant 0 : i32
    %c0_i32_0 = arith.constant 0 : i32
    %c0_i32_1 = arith.constant 0 : i32
    return %c0_i32, %c0_i32_0 : i32, i32
  }
  func.func @transform_5(%arg0: i32) -> (i32, i32) {
    %c0_i32 = arith.constant 0 : i32
    %c0_i32_0 = arith.constant 0 : i32
    return %arg0, %c0_i32 : i32, i32
  }
}

</mosaic_0001>

<bundles_post_ra>
// kernel: bottleneck_forward.13
= control target key start
LH: loop header
LB: loop body
LE: loop exit
PB: predicated region body
PF: predicated region fallthrough
CT: control target
= control target key end

     0   :  { %vm14_vm0 = vcmask 253952   ;;  %vm82_vm1 = vcmask 261120   ;;  %v428_v0 = vmov 0.0   ;;  %s1318_s0 = inlined_call_operand.vmem [shape: f32[512,32], index: 0, kind: input, shape index: {}]   ;;  %s1319_s1 = inlined_call_operand.vmem [shape: f32[1,32], index: 1, kind: output, shape index: {0}]   ;;  %s1320_s2 = inlined_call_operand.vmem [shape: f32[1,32], index: 2, kind: output, shape index: {1}]  }
   0x1   :  { %15 = vst.msk [vmem:[%s1319_s1] sm:$0x1] %vm14_vm0, %v428_v0  ;;  %16 = vst.msk [vmem:[%s1320_s2] sm:$0x1] %vm14_vm0, %v428_v0  ;;  %v455_v1 = vld [vmem:[%s1318_s0] sm:$0xff]  ;;  %v460_v2 = vld [vmem:[%s1318_s0 + $0x8] sm:$0xff] }
   0x2   :  { %v465_v3 = vld [vmem:[%s1318_s0 + $0x10] sm:$0xff]  ;;  %v83_v4 = vsel %vm82_vm1, %v455_v1, 0.0  ;;  %v84_v5 = vsel %vm82_vm1, %v460_v2, 0.0  ;;  %v476_v7 = vld [vmem:[%s1318_s0 + $0x18] sm:$0xff]  ;;  %v483_v10 = vld [vmem:[%s1318_s0 + $0x20] sm:$0xff] }
   0x3   :  { %v86_v6 = vsel %vm82_vm1, %v465_v3, 0.0  ;;  %v85_v8 = vadd.f32 %v84_v5, %v83_v4  ;;  %v88_v9 = vsel %vm82_vm1, %v476_v7, 0.0  ;;  %v90_v12 = vsel %vm82_vm1, %v483_v10, 0.0  ;;  %v490_v13 = vld [vmem:[%s1318_s0 + $0x28] sm:$0xff]  ;;  %v497_v16 = vld [vmem:[%s1318_s0 + $0x30] sm:$0xff]  ;;  %v502_v18 = vld [vmem:[%s1318_s0 + $0x38] sm:$0xff] }
   0x4   :  { %v92_v15 = vsel %vm82_vm1, %v490_v13, 0.0  ;;  %v507_v19 = vld [vmem:[%s1318_s0 + $0x40] sm:$0xff]  ;;  %v94_v20 = vsel %vm82_vm1, %v497_v16, 0.0  ;;  %v514_v21 = vld [vmem:[%s1318_s0 + $0x48] sm:$0xff]  ;;  %v519_v22 = vld [vmem:[%s1318_s0 + $0x50] sm:$0xff]  ;;  %v96_v25 = vsel %vm82_vm1, %v502_v18, 0.0 }
   0x5   :  { %v87_v11 = vadd.f32 %v86_v6, %v85_v8  ;;  %v524_v23 = vld [vmem:[%s1318_s0 + $0x58] sm:$0xff]  ;;  %v98_v26 = vsel %vm82_vm1, %v507_v19, 0.0  ;;  %v533_v27 = vld [vmem:[%s1318_s0 + $0x108] sm:$0xff]  ;;  %v538_v28 = vld [vmem:[%s1318_s0 + $0x110] sm:$0xff]  ;;  %v100_v30 = vsel %vm82_vm1, %v514_v21, 0.0  ;;  %v102_v31 = vsel %vm82_vm1, %v519_v22, 0.0 }
   0x6   :  { %v543_v29 = vld [vmem:[%s1318_s0 + $0x118] sm:$0xff]  ;;  %v551_v32 = vsel %vm82_vm1, %v524_v23, 0.0  ;;  %v556_v33 = vld [vmem:[%s1318_s0 + $0x120] sm:$0xff]  ;;  %v561_v34 = vld [vmem:[%s1318_s0 + $0x128] sm:$0xff]  ;;  %v570_v37 = vsel %vm82_vm1, %v533_v27, 0.0  ;;  %v574_v38 = vsel %vm82_vm1, %v538_v28, 0.0 }
   0x7   :  { %v89_v14 = vadd.f32 %v88_v9, %v87_v11  ;;  %v566_v35 = vld [vmem:[%s1318_s0 + $0x130] sm:$0xff]  ;;  %1339 = vst [vmem:[#allocation2_spill] sm:$0xff] %v570_v37  ;;  %1340 = vst [vmem:[#allocation3_spill] sm:$0xff] %v574_v38  ;;  %v578_v39 = vsel %vm82_vm1, %v543_v29, 0.0  ;;  %v583_v40 = vld [vmem:[%s1318_s0 + $0x138] sm:$0xff]  ;;  %v597_v43 = vsel %vm82_vm1, %v556_v33, 0.0  ;;  %v222_v37 = vmul.f32 %v465_v3, %v465_v3 }
   0x8   :  { %1341 = vst [vmem:[#allocation4_spill] sm:$0xff] %v578_v39  ;;  %v588_v41 = vld [vmem:[%s1318_s0 + $0x140] sm:$0xff]  ;;  %v593_v42 = vld [vmem:[%s1318_s0 + $0x148] sm:$0xff]  ;;  %1342 = vst [vmem:[#allocation5_spill] sm:$0xff] %v597_v43  ;;  %v601_v44 = vsel %vm82_vm1, %v561_v34, 0.0  ;;  %v605_v45 = vsel %vm82_vm1, %v566_v35, 0.0 }
   0x9   :  { %v91_v17 = vadd.f32 %v90_v12, %v89_v14  ;;  %1343 = vst [vmem:[#allocation6_spill] sm:$0xff] %v601_v44  ;;  %1344 = vst [vmem:[#allocation7_spill] sm:$0xff] %v605_v45  ;;  %v610_v46 = vld [vmem:[%s1318_s0 + $0x150] sm:$0xff]  ;;  %v615_v47 = vld [vmem:[%s1318_s0 + $0x158] sm:$0xff]  ;;  %v624_v50 = vsel %vm82_vm1, %v583_v40, 0.0  ;;  %v628_v51 = vsel %vm82_vm1, %v588_v41, 0.0 }
   0xa   :  { %v620_v48 = vld [vmem:[%s1318_s0 + $0x160] sm:$0xff]  ;;  %1345 = vst [vmem:[#allocation8_spill] sm:$0xff] %v624_v50  ;;  %1346 = vst [vmem:[#allocation9_spill] sm:$0xff] %v628_v51  ;;  %v632_v52 = vsel %vm82_vm1, %v593_v42, 0.0  ;;  %v637_v53 = vld [vmem:[%s1318_s0 + $0x168] sm:$0xff]  ;;  %v651_v56 = vsel %vm82_vm1, %v610_v46, 0.0 }
   0xb   :  { %v93_v24 = vadd.f32 %v92_v15, %v91_v17  ;;  %1347 = vst [vmem:[#allocation10_spill] sm:$0xff] %v632_v52  ;;  %v642_v54 = vld [vmem:[%s1318_s0 + $0x170] sm:$0xff]  ;;  %v647_v55 = vld [vmem:[%s1318_s0 + $0x178] sm:$0xff]  ;;  %1348 = vst [vmem:[#allocation11_spill] sm:$0xff] %v651_v56  ;;  %v655_v57 = vsel %vm82_vm1, %v615_v47, 0.0  ;;  %v659_v58 = vsel %vm82_vm1, %v620_v48, 0.0 }
   0xc   :  { %1349 = vst [vmem:[#allocation12_spill] sm:$0xff] %v655_v57  ;;  %1350 = vst [vmem:[#allocation13_spill] sm:$0xff] %v659_v58  ;;  %v664_v59 = vld [vmem:[%s1318_s0 + $0x180] sm:$0xff]  ;;  %v669_v60 = vld [vmem:[%s1318_s0 + $0x188] sm:$0xff]  ;;  %v678_v63 = vsel %vm82_vm1, %v637_v53, 0.0  ;;  %v682_v0 = vsel %vm82_vm1, %v642_v54, 0.0 }
   0xd   :  { %v95_v36 = vadd.f32 %v94_v20, %v93_v24  ;;  %v674_v61 = vld [vmem:[%s1318_s0 + $0x190] sm:$0xff]  ;;  %1351 = vst [vmem:[#allocation14_spill] sm:$0xff] %v678_v63  ;;  %1352 = vst [vmem:[#allocation15_spill] sm:$0xff] %v682_v0  ;;  %v686_v4 = vsel %vm82_vm1, %v647_v55, 0.0  ;;  %v691_v5 = vld [vmem:[%s1318_s0 + $0x198] sm:$0xff]  ;;  %v705_v9 = vsel %vm82_vm1, %v664_v59, 0.0 }
   0xe   :  { %1353 = vst [vmem:[#allocation16_spill] sm:$0xff] %v686_v4  ;;  %v696_v6 = vld [vmem:[%s1318_s0 + $0x1a0] sm:$0xff]  ;;  %v701_v8 = vld [vmem:[%s1318_s0 + $0x1a8] sm:$0xff]  ;;  %1354 = vst [vmem:[#allocation17_spill] sm:$0xff] %v705_v9  ;;  %v709_v11 = vsel %vm82_vm1, %v669_v60, 0.0  ;;  %v713_v12 = vsel %vm82_vm1, %v674_v61, 0.0 }
   0xf   :  { %v97_v49 = vadd.f32 %v96_v25, %v95_v36  ;;  %1355 = vst [vmem:[#allocation18_spill] sm:$0xff] %v709_v11  ;;  %1356 = vst [vmem:[#allocation19_spill] sm:$0xff] %v713_v12  ;;  %v718_v14 = vld [vmem:[%s1318_s0 + $0x60] sm:$0xff]  ;;  %v723_v15 = vld [vmem:[%s1318_s0 + $0x1b0] sm:$0xff]  ;;  %v737_v25 = vsel %vm82_vm1, %v691_v5, 0.0  ;;  %v745_v36 = vsel %vm82_vm1, %v701_v8, 0.0 }
  0x10   :  { %v728_v17 = vld [vmem:[%s1318_s0 + $0x1b8] sm:$0xff]  ;;  %v733_v20 = vld [vmem:[%s1318_s0 + $0x1c0] sm:$0xff]  ;;  %1357 = vst [vmem:[#allocation20_spill] sm:$0xff] %v737_v25  ;;  %1359 = vst [vmem:[#allocation22_spill] sm:$0xff] %v745_v36 }
  0x11   :  { %v99_v62 = vadd.f32 %v98_v26, %v97_v49  ;;  %v741_v26 = vsel %vm82_vm1, %v696_v6, 0.0  ;;  %v750_v49 = vld [vmem:[%s1318_s0 + $0x1c8] sm:$0xff]  ;;  %v768_v36 = vsel %vm82_vm1, %v728_v17, 0.0  ;;  %v772_v25 = vsel %vm82_vm1, %v733_v20, 0.0  ;;  %v777_v12 = vld [vmem:[%s1318_s0 + $0x1e0] sm:$0xff]  ;;  %v804_v0 = vld [vmem:[%s1318_s0 + $0x1f8] sm:$0xff] }
  0x12   :  { %1358 = vst [vmem:[#allocation21_spill] sm:$0xff] %v741_v26  ;;  %v764_v26 = vsel %vm82_vm1, %v723_v15, 0.0  ;;  %1361 = vst [vmem:[#allocation24_spill] sm:$0xff] %v768_v36  ;;  %v782_v11 = vld [vmem:[%s1318_s0 + $0x1e8] sm:$0xff]  ;;  %v791_v9 = vsel %vm82_vm1, %v750_v49, 0.0  ;;  %v826_v58 = vsel %vm82_vm1, %v804_v0, 0.0 }
  0x13   :  { %v101_v24 = vadd.f32 %v100_v30, %v99_v62  ;;  %v755_v30 = vld [vmem:[%s1318_s0 + $0x1d0] sm:$0xff]  ;;  %v760_v62 = vld [vmem:[%s1318_s0 + $0x1d8] sm:$0xff]  ;;  %1360 = vst [vmem:[#allocation23_spill] sm:$0xff] %v764_v26  ;;  %1362 = vst [vmem:[#allocation25_spill] sm:$0xff] %v772_v25 }
  0x14   :  { %v787_v26 = vld [vmem:[%s1318_s0 + $0x1f0] sm:$0xff]  ;;  %1364 = vst [vmem:[#allocation27_spill] sm:$0xff] %v791_v9  ;;  %v795_v25 = vsel %vm82_vm1, %v755_v30, 0.0  ;;  %v799_v4 = vsel %vm82_vm1, %v760_v62, 0.0  ;;  %1367 = vst [vmem:[#allocation30_spill] sm:$0xff] %v804_v0  ;;  %v814_v9 = vsel %vm82_vm1, %v782_v11, 0.0 }
  0x15   :  { %1363 = vst [vmem:[#allocation26_spill] sm:$0xff] %v787_v26  ;;  %v103_v36 = vadd.f32 %v102_v31, %v101_v24  ;;  %1365 = vst [vmem:[#allocation28_spill] sm:$0xff] %v795_v25  ;;  %v106_v31 = vsel %vm82_vm1, %v718_v14, 0.0  ;;  %v810_v24 = vsel %vm82_vm1, %v777_v12, 0.0  ;;  %v818_v25 = vsel %vm82_vm1, %v787_v26, 0.0  ;;  %v855_v56 = vld [vmem:[%s1318_s0 + $0x90] sm:$0xff] }
  0x16   :  { %1366 = vst [vmem:[#allocation29_spill] sm:$0xff] %v799_v4  ;;  %1368 = vst [vmem:[#allocation31_spill] sm:$0xff] %v810_v24  ;;  %v30_v4 = vld [vmem:[%s1318_s0 + $0x68] sm:$0xff]  ;;  %v860_v52 = vld [vmem:[%s1318_s0 + $0x98] sm:$0xff] }
  0x17   :  { %1369 = vst [vmem:[#allocation32_spill] sm:$0xff] %v814_v9  ;;  %1370 = vst [vmem:[#allocation33_spill] sm:$0xff] %v818_v25  ;;  %v105_v63 = vadd.f32 %v551_v32, %v103_v36  ;;  %v108_v24 = vsel %vm82_vm1, %v30_v4, 0.0  ;;  %v31_v9 = vld [vmem:[%s1318_s0 + $0x70] sm:$0xff]  ;;  %v835_v25 = vld [vmem:[%s1318_s0 + $0x78] sm:$0xff]  ;;  %v120_v39 = vsel %vm82_vm1, %v860_v52, 0.0 }
  0x18   :  { %1371 = vst [vmem:[#allocation34_spill] sm:$0xff] %v826_v58  ;;  %1372 = vst [vmem:[#allocation35_spill] sm:$0xff] %v835_v25  ;;  %v840_v32 = vld [vmem:[%s1318_s0 + $0x80] sm:$0xff]  ;;  %v845_v36 = vld [vmem:[%s1318_s0 + $0x88] sm:$0xff]  ;;  %v110_v58 = vsel %vm82_vm1, %v31_v9, 0.0 }
  0x19   :  { %v107_v57 = vadd.f32 %v106_v31, %v105_v63  ;;  %1373 = vst [vmem:[#allocation36_spill] sm:$0xff] %v840_v32  ;;  %1374 = vst [vmem:[#allocation37_spill] sm:$0xff] %v845_v36  ;;  %v220_v63 = vmul.f32 %v455_v1, %v455_v1  ;;  %v221_v31 = vmul.f32 %v460_v2, %v460_v2  ;;  %v865_v51 = vld [vmem:[%s1318_s0 + $0xa0] sm:$0xff]  ;;  %v112_v1 = vsel %vm82_vm1, %v835_v25, 0.0  ;;  %v876_v44 = vld [vmem:[%s1318_s0 + $0xa8] sm:$0xff] }
  0x1a   :  { %1375 = vst [vmem:[#allocation38_spill] sm:$0xff] %v855_v56  ;;  %1376 = vst [vmem:[#allocation39_spill] sm:$0xff] %v860_v52  ;;  %v114_v2 = vsel %vm82_vm1, %v840_v32, 0.0  ;;  %v116_v45 = vsel %vm82_vm1, %v845_v36, 0.0  ;;  %v881_v43 = vld [vmem:[%s1318_s0 + $0xb0] sm:$0xff]  ;;  %v122_v38 = vsel %vm82_vm1, %v865_v51, 0.0  ;;  %v223_v25 = vmul.f32 %v476_v7, %v476_v7 }
  0x1b   :  { %1377 = vst [vmem:[#allocation40_spill] sm:$0xff] %v865_v51  ;;  %v109_v50 = vadd.f32 %v108_v24, %v107_v57  ;;  %1378 = vst [vmem:[#allocation41_spill] sm:$0xff] %v876_v44  ;;  %v886_v57 = vld [vmem:[%s1318_s0 + $0xb8] sm:$0xff]  ;;  %v118_v24 = vsel %vm82_vm1, %v855_v56, 0.0  ;;  %v899_v36 = vld [vmem:[%s1318_s0 + $0xc0] sm:$0xff]  ;;  %v124_v51 = vsel %vm82_vm1, %v876_v44, 0.0 }
  0x1c   :  { %1379 = vst [vmem:[#allocation42_spill] sm:$0xff] %v881_v43  ;;  %1380 = vst [vmem:[#allocation43_spill] sm:$0xff] %v886_v57  ;;  %v904_v32 = vld [vmem:[%s1318_s0 + $0xc8] sm:$0xff]  ;;  %v909_v52 = vld [vmem:[%s1318_s0 + $0xd0] sm:$0xff]  ;;  %v915_v3 = vsel %vm82_vm1, %v881_v43, 0.0 }
  0x1d   :  { %1381 = vst [vmem:[#allocation44_spill] sm:$0xff] %v899_v36  ;;  %1382 = vst [vmem:[#allocation45_spill] sm:$0xff] %v904_v32  ;;  %v111_v56 = vadd.f32 %v110_v58, %v109_v50  ;;  %v922_v0 = vld [vmem:[%s1318_s0 + $0xd8] sm:$0xff]  ;;  %v927_v26 = vld [vmem:[%s1318_s0 + $0xe0] sm:$0xff]  ;;  %v931_v50 = vsel %vm82_vm1, %v886_v57, 0.0  ;;  %v935_v58 = vsel %vm82_vm1, %v899_v36, 0.0 }
  0x1e   :  { %1383 = vst [vmem:[#allocation46_spill] sm:$0xff] %v909_v52  ;;  %1384 = vst [vmem:[#allocation47_spill] sm:$0xff] %v922_v0  ;;  %v939_v7 = vsel %vm82_vm1, %v904_v32, 0.0  ;;  %v943_v43 = vsel %vm82_vm1, %v909_v52, 0.0  ;;  %v948_v44 = vld [vmem:[%s1318_s0 + $0xe8] sm:$0xff]  ;;  %v953_v57 = vld [vmem:[%s1318_s0 + $0xf0] sm:$0xff]  ;;  %v224_v52 = vmul.f32 %v483_v10, %v483_v10  ;;  %v228_v10 = vmul.f32 %v507_v19, %v507_v19 }
  0x1f   :  { %1385 = vst [vmem:[#allocation48_spill] sm:$0xff] %v927_v26  ;;  %1386 = vst [vmem:[#allocation49_spill] sm:$0xff] %v935_v58  ;;  %v113_v36 = vadd.f32 %v112_v1, %v111_v56  ;;  %v957_v58 = vsel %vm82_vm1, %v922_v0, 0.0  ;;  %v961_v32 = vsel %vm82_vm1, %v927_v26, 0.0  ;;  %v225_v56 = vmul.f32 %v490_v13, %v490_v13 }
  0x20   :  { %1387 = vst [vmem:[#allocation50_spill] sm:$0xff] %v939_v7  ;;  %1388 = vst [vmem:[#allocation51_spill] sm:$0xff] %v943_v43  ;;  %v967_v43 = vsel %vm82_vm1, %v948_v44, 0.0  ;;  %v971_v7 = vsel %vm82_vm1, %v953_v57, 0.0  ;;  %v226_v1 = vmul.f32 %v497_v16, %v497_v16  ;;  %v227_v26 = vmul.f32 %v502_v18, %v502_v18 }
  0x21   :  { %1389 = vst [vmem:[#allocation52_spill] sm:$0xff] %v948_v44  ;;  %1390 = vst [vmem:[#allocation53_spill] sm:$0xff] %v953_v57  ;;  %v115_v0 = vadd.f32 %v114_v2, %v113_v36  ;;  %v229_v44 = vmul.f32 %v514_v21, %v514_v21  ;;  %v230_v57 = vmul.f32 %v519_v22, %v519_v22 }
  0x22   :  { %1391 = vst [vmem:[#allocation54_spill] sm:$0xff] %v971_v7  ;;  %v231_v7 = vmul.f32 %v524_v23, %v524_v23  ;;  %v232_v13 = vmul.f32 %v718_v14, %v718_v14  ;;  %v989_v16 = vmul.f32 %v30_v4, %v30_v4  ;;  %v991_v2 = vmul.f32 %v31_v9, %v31_v9 }
  0x23   :  { %v117_v36 = vadd.f32 %v116_v45, %v115_v0  ;;  %v253_v18 = vmul.f32 %v533_v27, %v533_v27  ;;  %v254_v19 = vmul.f32 %v538_v28, %v538_v28  ;;  %v255_v21 = vmul.f32 %v543_v29, %v543_v29 }
  0x24   :  { %v256_v22 = vmul.f32 %v556_v33, %v556_v33  ;;  %v257_v23 = vmul.f32 %v561_v34, %v561_v34  ;;  %v258_v45 = vmul.f32 %v566_v35, %v566_v35  ;;  %v259_v4 = vmul.f32 %v583_v40, %v583_v40 }
  0x25   :  { %v119_v0 = vadd.f32 %v118_v24, %v117_v36  ;;  %v260_v27 = vmul.f32 %v588_v41, %v588_v41  ;;  %v261_v28 = vmul.f32 %v593_v42, %v593_v42  ;;  %v262_v29 = vmul.f32 %v610_v46, %v610_v46 }
  0x26   :  { %v263_v33 = vmul.f32 %v615_v47, %v615_v47  ;;  %v284_v34 = vsel %vm82_vm1, %v220_v63, 0.0  ;;  %v285_v35 = vsel %vm82_vm1, %v221_v31, 0.0  ;;  %v264_v40 = vmul.f32 %v620_v48, %v620_v48 }
  0x27   :  { %v121_v9 = vadd.f32 %v120_v39, %v119_v0  ;;  %v286_v14 = vadd.f32 %v285_v35, %v284_v34  ;;  %v287_v41 = vsel %vm82_vm1, %v222_v37, 0.0  ;;  %v265_v42 = vmul.f32 %v637_v53, %v637_v53  ;;  %v1392_v0 = vld [vmem:[#allocation26_spill] sm:$0xff] }
  0x28   :  { %v266_v46 = vmul.f32 %v642_v54, %v642_v54  ;;  %v267_v47 = vmul.f32 %v647_v55, %v647_v55  ;;  %v289_v63 = vsel %vm82_vm1, %v223_v25, 0.0  ;;  %v268_v39 = vmul.f32 %v664_v59, %v664_v59  ;;  %v1393_v34 = vld [vmem:[#allocation30_spill] sm:$0xff] }
  0x29   :  { %v123_v24 = vadd.f32 %v122_v38, %v121_v9  ;;  %v269_v48 = vmul.f32 %v669_v60, %v669_v60  ;;  %v288_v31 = vadd.f32 %v287_v41, %v286_v14  ;;  %v270_v37 = vmul.f32 %v674_v61, %v674_v61  ;;  %v1394_v41 = vld [vmem:[#allocation49_spill] sm:$0xff] }
  0x2a   :  { %v271_v53 = vmul.f32 %v691_v5, %v691_v5  ;;  %v272_v54 = vmul.f32 %v696_v6, %v696_v6  ;;  %v291_v55 = vsel %vm82_vm1, %v224_v52, 0.0  ;;  %v273_v38 = vmul.f32 %v701_v8, %v701_v8 }
  0x2b   :  { %v125_v25 = vadd.f32 %v124_v51, %v123_v24  ;;  %v274_v59 = vmul.f32 %v723_v15, %v723_v15  ;;  %v290_v60 = vadd.f32 %v289_v63, %v288_v31  ;;  %v275_v36 = vmul.f32 %v728_v17, %v728_v17 }
  0x2c   :  { %v276_v61 = vmul.f32 %v733_v20, %v733_v20  ;;  %v277_v5 = vmul.f32 %v750_v49, %v750_v49  ;;  %v293_v6 = vsel %vm82_vm1, %v225_v56, 0.0  ;;  %v278_v52 = vmul.f32 %v755_v30, %v755_v30 }
  0x2d   :  { %v127_v51 = vadd.f32 %v915_v3, %v125_v25  ;;  %v279_v8 = vmul.f32 %v760_v62, %v760_v62  ;;  %v292_v15 = vadd.f32 %v291_v55, %v290_v60  ;;  %v280_v17 = vmul.f32 %v777_v12, %v777_v12  ;;  %v1396_v25 = vld [vmem:[#allocation51_spill] sm:$0xff] }
  0x2e   :  { %v281_v20 = vmul.f32 %v782_v11, %v782_v11  ;;  %v282_v49 = vmul.f32 %v1392_v0, %v1392_v0  ;;  %v295_v56 = vsel %vm82_vm1, %v226_v1, 0.0  ;;  %v283_v30 = vmul.f32 %v1393_v34, %v1393_v34  ;;  %v1398_v34 = vld [vmem:[#allocation54_spill] sm:$0xff] }
  0x2f   :  { %v129_v3 = vadd.f32 %v931_v50, %v127_v51  ;;  %v294_v35 = vadd.f32 %v293_v6, %v292_v15  ;;  %v297_v62 = vsel %vm82_vm1, %v227_v26, 0.0  ;;  %v299_v9 = vsel %vm82_vm1, %v228_v10, 0.0 }
  0x30   :  { %v301_v12 = vsel %vm82_vm1, %v229_v44, 0.0  ;;  %v303_v14 = vsel %vm82_vm1, %v230_v57, 0.0  ;;  %v305_v11 = vsel %vm82_vm1, %v231_v7, 0.0  ;;  %v307_v1 = vsel %vm82_vm1, %v232_v13, 0.0  ;;  %v1395_v7 = vld [vmem:[#allocation50_spill] sm:$0xff] }
  0x31   :  { %v131_v63 = vadd.f32 %v1394_v41, %v129_v3  ;;  %v296_v24 = vadd.f32 %v295_v56, %v294_v35  ;;  %v1072_v50 = vsel %vm82_vm1, %v253_v18, 0.0  ;;  %v1075_v31 = vsel %vm82_vm1, %v254_v19, 0.0  ;;  %v1397_v56 = vld [vmem:[#allocation35_spill] sm:$0xff] }
  0x32   :  { %v1078_v26 = vsel %vm82_vm1, %v255_v21, 0.0  ;;  %v1081_v44 = vsel %vm82_vm1, %v256_v22, 0.0  ;;  %v1084_v57 = vsel %vm82_vm1, %v257_v23, 0.0  ;;  %v1088_v13 = vsel %vm82_vm1, %v258_v45, 0.0 }
  0x33   :  { %v133_v10 = vadd.f32 %v1395_v7, %v131_v63  ;;  %v298_v55 = vadd.f32 %v297_v62, %v296_v24  ;;  %v1091_v18 = vsel %vm82_vm1, %v259_v4, 0.0  ;;  %v1094_v19 = vsel %vm82_vm1, %v260_v27, 0.0  ;;  %v1399_v62 = vld [vmem:[#allocation36_spill] sm:$0xff] }
  0x34   :  { %v1097_v21 = vsel %vm82_vm1, %v261_v28, 0.0  ;;  %v1100_v22 = vsel %vm82_vm1, %v262_v29, 0.0  ;;  %v1103_v23 = vsel %vm82_vm1, %v263_v33, 0.0  ;;  %v1107_v45 = vsel %vm82_vm1, %v264_v40, 0.0 }
  0x35   :  { %v135_v60 = vadd.f32 %v1396_v25, %v133_v10  ;;  %v300_v6 = vadd.f32 %v299_v9, %v298_v55  ;;  %v1110_v4 = vsel %vm82_vm1, %v265_v42, 0.0  ;;  %v1113_v27 = vsel %vm82_vm1, %v266_v46, 0.0  ;;  %v1401_v10 = vld [vmem:[#allocation38_spill] sm:$0xff] }
  0x36   :  { %v1116_v28 = vsel %vm82_vm1, %v267_v47, 0.0  ;;  %v1119_v29 = vsel %vm82_vm1, %v268_v39, 0.0  ;;  %v1122_v33 = vsel %vm82_vm1, %v269_v48, 0.0  ;;  %v1126_v40 = vsel %vm82_vm1, %v270_v37, 0.0  ;;  %v1402_v25 = vld [vmem:[#allocation2_spill] sm:$0xff] }
  0x37   :  { %v137_v51 = vadd.f32 %v957_v58, %v135_v60  ;;  %v302_v15 = vadd.f32 %v301_v12, %v300_v6  ;;  %v1129_v42 = vsel %vm82_vm1, %v271_v53, 0.0  ;;  %v1132_v46 = vsel %vm82_vm1, %v272_v54, 0.0 }
  0x38   :  { %v1135_v47 = vsel %vm82_vm1, %v273_v38, 0.0  ;;  %v1138_v39 = vsel %vm82_vm1, %v274_v59, 0.0  ;;  %v1141_v48 = vsel %vm82_vm1, %v275_v36, 0.0  ;;  %v1145_v37 = vsel %vm82_vm1, %v276_v61, 0.0 }
  0x39   :  { %v139_v58 = vadd.f32 %v961_v32, %v137_v51  ;;  %v304_v0 = vadd.f32 %v303_v14, %v302_v15  ;;  %v1148_v53 = vsel %vm82_vm1, %v277_v5, 0.0  ;;  %v1151_v54 = vsel %vm82_vm1, %v278_v52, 0.0  ;;  %v1165_v32 = vld [vmem:[%s1318_s0 + $0xf8] sm:$0xff]  ;;  %v1403_v51 = vld [vmem:[#allocation39_spill] sm:$0xff] }
  0x3a   :  { %v1154_v38 = vsel %vm82_vm1, %v279_v8, 0.0  ;;  %v1157_v59 = vsel %vm82_vm1, %v280_v17, 0.0  ;;  %v1160_v36 = vsel %vm82_vm1, %v281_v20, 0.0  ;;  %v1169_v52 = vsel %vm82_vm1, %v282_v49, 0.0 }
  0x3b   :  { %v141_v61 = vadd.f32 %v967_v43, %v139_v58  ;;  %v306_v5 = vadd.f32 %v305_v11, %v304_v0  ;;  %v1172_v8 = vsel %vm82_vm1, %v283_v30, 0.0  ;;  %v144_v17 = vsel %vm82_vm1, %v1165_v32, 0.0  ;;  %v1183_v43 = vld [vmem:[%s1318_s0 + $0x100] sm:$0xff]  ;;  %v1404_v58 = vld [vmem:[#allocation3_spill] sm:$0xff] }
  0x3c   :  { %v235_v20 = vmul.f32 %v1397_v56, %v1397_v56  ;;  %v309_v3 = vsel %vm82_vm1, %v989_v16, 0.0  ;;  %v146_v30 = vsel %vm82_vm1, %v1183_v43, 0.0  ;;  %v236_v9 = vmul.f32 %v1399_v62, %v1399_v62  ;;  %v1400_v16 = vld [vmem:[#allocation37_spill] sm:$0xff] }
  0x3d   :  { %v143_v49 = vadd.f32 %v1398_v34, %v141_v61  ;;  %v308_v35 = vadd.f32 %v307_v1, %v306_v5  ;;  %v311_v12 = vsel %vm82_vm1, %v991_v2, 0.0  ;;  %v237_v41 = vmul.f32 %v1400_v16, %v1400_v16  ;;  %v1405_v5 = vld [vmem:[#allocation40_spill] sm:$0xff]  ;;  %v1408_v62 = vld [vmem:[#allocation5_spill] sm:$0xff] }
  0x3e   :  { %v313_v63 = vsel %vm82_vm1, %v235_v20, 0.0  ;;  %v238_v1 = vmul.f32 %v1401_v10, %v1401_v10  ;;  %v315_v55 = vsel %vm82_vm1, %v236_v9, 0.0  ;;  %v239_v2 = vmul.f32 %v1403_v51, %v1403_v51  ;;  %v1406_v20 = vld [vmem:[#allocation4_spill] sm:$0xff] }
  0x3f   :  { %v145_v14 = vadd.f32 %v144_v17, %v143_v49  ;;  %v310_v11 = vadd.f32 %v309_v3, %v308_v35  ;;  %v317_v15 = vsel %vm82_vm1, %v237_v41, 0.0  ;;  %v240_v17 = vmul.f32 %v1405_v5, %v1405_v5  ;;  %v1407_v49 = vld [vmem:[#allocation41_spill] sm:$0xff]  ;;  %v1410_v41 = vld [vmem:[#allocation6_spill] sm:$0xff] }
  0x40   :  { %v319_v56 = vsel %vm82_vm1, %v238_v1, 0.0  ;;  %v241_v35 = vmul.f32 %v1407_v49, %v1407_v49 }
  0x41   :  { %v147_v24 = vadd.f32 %v146_v30, %v145_v14  ;;  %v312_v7 = vadd.f32 %v311_v12, %v310_v11  ;;  %v321_v30 = vsel %vm82_vm1, %v239_v2, 0.0  ;;  %v1409_v14 = vld [vmem:[#allocation42_spill] sm:$0xff]  ;;  %v323_v16 = vsel %vm82_vm1, %v240_v17, 0.0 }
  0x42   :  { %v242_v11 = vmul.f32 %v1409_v14, %v1409_v14  ;;  %v325_v1 = vsel %vm82_vm1, %v241_v35, 0.0 }
  0x43   :  { %v149_v60 = vadd.f32 %v1402_v25, %v147_v24  ;;  %v314_v6 = vadd.f32 %v313_v63, %v312_v7  ;;  %v1411_v7 = vld [vmem:[#allocation43_spill] sm:$0xff] }
  0x44   :  { %v243_v10 = vmul.f32 %v1411_v7, %v1411_v7  ;;  %v327_v2 = vsel %vm82_vm1, %v242_v11, 0.0 }
  0x45   :  { %v151_v0 = vadd.f32 %v1404_v58, %v149_v60  ;;  %v316_v61 = vadd.f32 %v315_v55, %v314_v6  ;;  %v1412_v55 = vld [vmem:[#allocation7_spill] sm:$0xff]  ;;  %v1413_v6 = vld [vmem:[#allocation44_spill] sm:$0xff] }
  0x46   :  { %v244_v51 = vmul.f32 %v1413_v6, %v1413_v6  ;;  %v329_v17 = vsel %vm82_vm1, %v243_v10, 0.0 }
  0x47   :  { %v153_v3 = vadd.f32 %v1406_v20, %v151_v0  ;;  %v318_v34 = vadd.f32 %v317_v15, %v316_v61  ;;  %v1414_v15 = vld [vmem:[#allocation8_spill] sm:$0xff]  ;;  %v1415_v61 = vld [vmem:[#allocation45_spill] sm:$0xff] }
  0x48   :  { %v245_v5 = vmul.f32 %v1415_v61, %v1415_v61  ;;  %v331_v35 = vsel %vm82_vm1, %v244_v51, 0.0 }
  0x49   :  { %v155_v9 = vadd.f32 %v1408_v62, %v153_v3  ;;  %v320_v12 = vadd.f32 %v319_v56, %v318_v34  ;;  %v1416_v56 = vld [vmem:[#allocation9_spill] sm:$0xff]  ;;  %v1417_v34 = vld [vmem:[#allocation46_spill] sm:$0xff] }
  0x4a   :  { %v246_v49 = vmul.f32 %v1417_v34, %v1417_v34  ;;  %v333_v11 = vsel %vm82_vm1, %v245_v5, 0.0 }
  0x4b   :  { %v157_v63 = vadd.f32 %v1410_v41, %v155_v9  ;;  %v322_v24 = vadd.f32 %v321_v30, %v320_v12  ;;  %v1418_v30 = vld [vmem:[#allocation10_spill] sm:$0xff]  ;;  %v1419_v12 = vld [vmem:[#allocation47_spill] sm:$0xff] }
  0x4c   :  { %v247_v14 = vmul.f32 %v1419_v12, %v1419_v12  ;;  %v335_v10 = vsel %vm82_vm1, %v246_v49, 0.0  ;;  %v1427_v49 = vld [vmem:[#allocation15_spill] sm:$0xff]  ;;  %v1428_v12 = vld [vmem:[#allocation16_spill] sm:$0xff] }
  0x4d   :  { %v159_v25 = vadd.f32 %v1412_v55, %v157_v63  ;;  %v324_v60 = vadd.f32 %v323_v16, %v322_v24  ;;  %v1420_v16 = vld [vmem:[#allocation11_spill] sm:$0xff]  ;;  %v1421_v24 = vld [vmem:[#allocation48_spill] sm:$0xff] }
  0x4e   :  { %v248_v7 = vmul.f32 %v1421_v24, %v1421_v24  ;;  %v337_v51 = vsel %vm82_vm1, %v247_v14, 0.0 }
  0x4f   :  { %v161_v58 = vadd.f32 %v1414_v15, %v159_v25  ;;  %v326_v0 = vadd.f32 %v325_v1, %v324_v60  ;;  %v1422_v1 = vld [vmem:[#allocation12_spill] sm:$0xff] }
  0x50   :  { %v1423_v60 = vld [vmem:[#allocation52_spill] sm:$0xff]  ;;  %v339_v5 = vsel %vm82_vm1, %v248_v7, 0.0  ;;  %v1430_v7 = vld [vmem:[#allocation18_spill] sm:$0xff] }
  0x51   :  { %v163_v20 = vadd.f32 %v1416_v56, %v161_v58  ;;  %v328_v3 = vadd.f32 %v327_v2, %v326_v0  ;;  %v249_v6 = vmul.f32 %v1423_v60, %v1423_v60  ;;  %v1424_v2 = vld [vmem:[#allocation13_spill] sm:$0xff] }
  0x52   :  { %v1425_v0 = vld [vmem:[#allocation53_spill] sm:$0xff] }
  0x53   :  { %v165_v62 = vadd.f32 %v1418_v30, %v163_v20  ;;  %v330_v9 = vadd.f32 %v329_v17, %v328_v3  ;;  %v250_v61 = vmul.f32 %v1425_v0, %v1425_v0  ;;  %v1426_v17 = vld [vmem:[#allocation14_spill] sm:$0xff]  ;;  %v251_v3 = vmul.f32 %v1165_v32, %v1165_v32 }
  0x54   :  { %v341_v34 = vsel %vm82_vm1, %v249_v6, 0.0  ;;  %v1432_v6 = vld [vmem:[#allocation20_spill] sm:$0xff]  ;;  %v1434_v0 = vld [vmem:[#allocation22_spill] sm:$0xff] }
  0x55   :  { %v167_v41 = vadd.f32 %v1420_v16, %v165_v62  ;;  %v332_v63 = vadd.f32 %v331_v35, %v330_v9  ;;  %v252_v62 = vmul.f32 %v1183_v43, %v1183_v43  ;;  %v343_v9 = vsel %vm82_vm1, %v250_v61, 0.0 }
  0x56   :  { %v345_v16 = vsel %vm82_vm1, %v251_v3, 0.0  ;;  %v1436_v3 = vld [vmem:[#allocation24_spill] sm:$0xff] }
  0x57   :  { %v169_v55 = vadd.f32 %v1422_v1, %v167_v41  ;;  %v334_v25 = vadd.f32 %v333_v11, %v332_v63  ;;  %v1429_v41 = vld [vmem:[#allocation17_spill] sm:$0xff]  ;;  %v347_v32 = vsel %vm82_vm1, %v252_v62, 0.0  ;;  %v1438_v62 = vld [vmem:[#allocation27_spill] sm:$0xff] }
  0x59   :  { %v171_v15 = vadd.f32 %v1424_v2, %v169_v55  ;;  %v336_v58 = vadd.f32 %v335_v10, %v334_v25  ;;  %v1431_v55 = vld [vmem:[#allocation19_spill] sm:$0xff]  ;;  %v1433_v2 = vld [vmem:[#allocation21_spill] sm:$0xff] }
  0x5b   :  { %v173_v56 = vadd.f32 %v1426_v17, %v171_v15  ;;  %v338_v20 = vadd.f32 %v337_v51, %v336_v58  ;;  %v1435_v17 = vld [vmem:[#allocation23_spill] sm:$0xff] }
  0x5d   :  { %v175_v35 = vadd.f32 %v1427_v49, %v173_v56  ;;  %v340_v30 = vadd.f32 %v339_v5, %v338_v20 }
  0x5f   :  { %v177_v14 = vadd.f32 %v1428_v12, %v175_v35  ;;  %v342_v11 = vadd.f32 %v341_v34, %v340_v30  ;;  %v1437_v35 = vld [vmem:[#allocation25_spill] sm:$0xff]  ;;  %v1439_v12 = vld [vmem:[#allocation28_spill] sm:$0xff] }
  0x61   :  { %v179_v63 = vadd.f32 %v1429_v41, %v177_v14  ;;  %v344_v24 = vadd.f32 %v343_v9, %v342_v11  ;;  %v1440_v11 = vld [vmem:[#allocation29_spill] sm:$0xff]  ;;  %v1441_v41 = vld [vmem:[#allocation31_spill] sm:$0xff] }
  0x63   :  { %v181_v10 = vadd.f32 %v1430_v7, %v179_v63  ;;  %v346_v1 = vadd.f32 %v345_v16, %v344_v24  ;;  %v1442_v24 = vld [vmem:[#allocation32_spill] sm:$0xff]  ;;  %v1443_v7 = vld [vmem:[#allocation33_spill] sm:$0xff] }
  0x65   :  { %v183_v25 = vadd.f32 %v1431_v55, %v181_v10  ;;  %v348_v60 = vadd.f32 %v347_v32, %v346_v1  ;;  %v1444_v1 = vld [vmem:[#allocation34_spill] sm:$0xff] }
  0x67   :  { %v185_v43 = vadd.f32 %v1432_v6, %v183_v25  ;;  %v350_v51 = vadd.f32 %v1072_v50, %v348_v60 }
  0x69   :  { %v187_v15 = vadd.f32 %v1433_v2, %v185_v43  ;;  %v352_v58 = vadd.f32 %v1075_v31, %v350_v51 }
  0x6b   :  { %v189_v61 = vadd.f32 %v1434_v0, %v187_v15  ;;  %v354_v5 = vadd.f32 %v1078_v26, %v352_v58 }
  0x6d   :  { %v191_v56 = vadd.f32 %v1435_v17, %v189_v61  ;;  %v356_v20 = vadd.f32 %v1081_v44, %v354_v5 }
  0x6f   :  { %v193_v34 = vadd.f32 %v1436_v3, %v191_v56  ;;  %v358_v49 = vadd.f32 %v1084_v57, %v356_v20 }
  0x71   :  { %v195_v30 = vadd.f32 %v1437_v35, %v193_v34  ;;  %v360_v50 = vadd.f32 %v1088_v13, %v358_v49 }
  0x73   :  { %v197_v9 = vadd.f32 %v1438_v62, %v195_v30  ;;  %v362_v31 = vadd.f32 %v1091_v18, %v360_v50 }
  0x75   :  { %v199_v14 = vadd.f32 %v1439_v12, %v197_v9  ;;  %v364_v26 = vadd.f32 %v1094_v19, %v362_v31 }
  0x77   :  { %v201_v16 = vadd.f32 %v1440_v11, %v199_v14  ;;  %v366_v44 = vadd.f32 %v1097_v21, %v364_v26 }
  0x79   :  { %v203_v63 = vadd.f32 %v1441_v41, %v201_v16  ;;  %v368_v57 = vadd.f32 %v1100_v22, %v366_v44 }
  0x7b   :  { %v205_v32 = vadd.f32 %v1442_v24, %v203_v63  ;;  %v370_v13 = vadd.f32 %v1103_v23, %v368_v57 }
  0x7d   :  { %v207_v10 = vadd.f32 %v1443_v7, %v205_v32  ;;  %v372_v18 = vadd.f32 %v1107_v45, %v370_v13  ;;  %v81_v45 = vld [vmem:[%s1319_s1] sm:$0x1] }
  0x7f   :  { %v209_v55 = vadd.f32 %v1444_v1, %v207_v10  ;;  %v374_v19 = vadd.f32 %v1110_v4, %v372_v18 }
  0x81   :  { %v210_v25 = vrot.slane %v209_v55, 4  ;;  %v376_v60 = vadd.f32 %v1113_v27, %v374_v19 }
  0x83   :  { %v211_v21 = vadd.f32 %v210_v25, %v209_v55  ;;  %v378_v6 = vadd.f32 %v1116_v28, %v376_v60 }
  0x85   :  { %v212_v43 = vrot.slane %v211_v21, 2  ;;  %v380_v22 = vadd.f32 %v1119_v29, %v378_v6 }
  0x87   :  { %v213_v51 = vadd.f32 %v212_v43, %v211_v21  ;;  %v382_v23 = vadd.f32 %v1122_v33, %v380_v22 }
  0x89   :  { %v214_v2 = vrot.slane %v213_v51, 1  ;;  %v384_v15 = vadd.f32 %v1126_v40, %v382_v23 }
  0x8b   :  { %v215_v4 = vadd.f32 %v214_v2, %v213_v51  ;;  %v386_v58 = vadd.f32 %v1129_v42, %v384_v15 }
  0x8d   :  { %v216_v27 = vadd.f32 %v215_v4, %v81_v45  ;;  %v388_v0 = vadd.f32 %v1132_v46, %v386_v58 }
  0x8f   :  { %218 = vst.msk [vmem:[%s1319_s1] sm:$0x1] %vm14_vm0, %v216_v27  ;;  %v390_v28 = vadd.f32 %v1135_v47, %v388_v0 }
  0x91   :  { %v392_v29 = vadd.f32 %v1138_v39, %v390_v28 }
  0x93   :  { %v394_v33 = vadd.f32 %v1141_v48, %v392_v29 }
  0x95   :  { %v396_v40 = vadd.f32 %v1145_v37, %v394_v33  ;;  %v219_v37 = vld [vmem:[%s1320_s2] sm:$0x1] }
  0x97   :  { %v398_v61 = vadd.f32 %v1148_v53, %v396_v40 }
  0x99   :  { %v400_v42 = vadd.f32 %v1151_v54, %v398_v61 }
  0x9b   :  { %v402_v5 = vadd.f32 %v1154_v38, %v400_v42 }
  0x9d   :  { %v404_v46 = vadd.f32 %v1157_v59, %v402_v5 }
  0x9f   :  { %v406_v17 = vadd.f32 %v1160_v36, %v404_v46 }
  0xa1   :  { %v408_v56 = vadd.f32 %v1169_v52, %v406_v17 }
  0xa3   :  { %v410_v47 = vadd.f32 %v1172_v8, %v408_v56 }
  0xa5   :  { %v411_v20 = vrot.slane %v410_v47, 4 }
  0xa7   :  { %v412_v39 = vadd.f32 %v411_v20, %v410_v47 }
  0xa9   :  { %v413_v3 = vrot.slane %v412_v39, 2 }
  0xab   :  { %v414_v48 = vadd.f32 %v413_v3, %v412_v39 }
  0xad   :  { %v415_v34 = vrot.slane %v414_v48, 1 }
  0xaf   :  { %v416_v53 = vadd.f32 %v415_v34, %v414_v48 }
  0xb1   :  { %v417_v54 = vadd.f32 %v416_v53, %v219_v37 }
  0xb3   :  { %418 = vst.msk [vmem:[%s1320_s2] sm:$0x1] %vm14_vm0, %v417_v54 }

// kernel: bottleneck_forward.14
= control target key start
LH: loop header
LB: loop body
LE: loop exit
PB: predicated region body
PF: predicated region fallthrough
CT: control target
= control target key end

     0   :  { %v99_v8 = vlaneseq  ;;  %vm302_vm0 = vcmask 261120   ;;  %s995_s1 = inlined_call_operand.vmem [shape: f32[1,32], index: 1, kind: input, shape index: {}]   ;;  %s996_s2 = inlined_call_operand.vmem [shape: f32[1,32], index: 2, kind: input, shape index: {}]   ;;  %s997_s3 = inlined_call_operand.vmem [shape: f32[1,32], index: 3, kind: input, shape index: {}]   ;;  %s998_s0 = inlined_call_operand.vmem [shape: f32[512,32], index: 0, kind: input, shape index: {}]   ;;  %s999_s4 = inlined_call_operand.vmem [shape: f32[1,32], index: 4, kind: input, shape index: {}]   ;;  %s1000_s5 = inlined_call_operand.vmem [shape: f32[512,32], index: 5, kind: output, shape index: {}]  }
   0x1   :  { %v20_v0 = vld [vmem:[%s995_s1] sm:$0x1]  ;;  %v35_v16 = vld [vmem:[%s998_s0 + $0x8] sm:$0xff]  ;;  %v36_v17 = vld [vmem:[%s998_s0 + $0x10] sm:$0xff] }
   0x2   :  { %v22_v1 = vld [vmem:[%s996_s2] sm:$0x1]  ;;  %v21_v2 = vmul.f32 0.001953125, %v20_v0  ;;  %v100_v9 = vshrl.u32 %v99_v8, 7  ;;  %v37_v18 = vld [vmem:[%s998_s0 + $0x18] sm:$0xff]  ;;  %v39_v22 = vld [vmem:[%s998_s0 + $0x28] sm:$0xff] }
   0x3   :  { %v23_v3 = vmul.f32 0.001953125, %v22_v1  ;;  %v27_v10 = vld [vmem:[%s997_s3] sm:$0x1]  ;;  %v40_v23 = vld [vmem:[%s998_s0 + $0x30] sm:$0xff]  ;;  %v41_v24 = vld [vmem:[%s998_s0 + $0x38] sm:$0xff] }
   0x4   :  { %v24_v4 = vmul.f32 %v21_v2, %v21_v2  ;;  %v101_v11 = vsub.s32 0, %v100_v9  ;;  %v31_v14 = vld [vmem:[%s999_s4] sm:$0x1]  ;;  %v43_v26 = vld [vmem:[%s998_s0 + $0x48] sm:$0xff]  ;;  %v44_v27 = vld [vmem:[%s998_s0 + $0x50] sm:$0xff] }
   0x5   :  { %v34_v15 = vld [vmem:[%s998_s0] sm:$0xff]  ;;  %v45_v32 = vld [vmem:[%s998_s0 + $0x58] sm:$0xff]  ;;  %v47_v34 = vld [vmem:[%s998_s0 + $0x68] sm:$0xff] }
   0x6   :  { %v25_v5 = vsub.f32 %v23_v3, %v24_v4  ;;  %v38_v19 = vld [vmem:[%s998_s0 + $0x20] sm:$0xff]  ;;  %v48_v59 = vld [vmem:[%s998_s0 + $0x70] sm:$0xff]  ;;  %v49_v60 = vld [vmem:[%s998_s0 + $0x78] sm:$0xff] }
   0x7   :  { %v42_v25 = vld [vmem:[%s998_s0 + $0x40] sm:$0xff] }
   0x8   :  { %v26_v6 = vmax.f32 %v25_v5, 0.0  ;;  %v46_v33 = vld [vmem:[%s998_s0 + $0x60] sm:$0xff] }
   0x9   :  { %v50_v5 = vld [vmem:[%s998_s0 + $0x80] sm:$0xff] }
   0xa   :  { %v28_v7 = vadd.f32 1e-05, %v26_v6 }
   0xc   :  { %371 = vrsqrt.f32 %v28_v7 }
  0x16   :  { %v372_v12 = vpop.eup %371 }
  0x17   :  { %v30_v13 = vmul.f32 %v372_v12, %v27_v10  ;;  %v51_v10 = vld [vmem:[%s998_s0 + $0x88] sm:$0xff]  ;;  %v53_v12 = vld [vmem:[%s998_s0 + $0x98] sm:$0xff] }
  0x19   :  { %v32_v20 = vmul.f32 %v30_v13, %v21_v2  ;;  %v430_v21 = vrot.slane %v30_v13, %v101_v11 }
  0x1b   :  { %v33_v28 = vsub.f32 %v31_v14, %v32_v20  ;;  %v104_v29 = vmul.f32 %v430_v21, %v34_v15  ;;  %v105_v30 = vmul.f32 %v430_v21, %v35_v16  ;;  %v106_v31 = vmul.f32 %v430_v21, %v36_v17  ;;  %v54_v17 = vld [vmem:[%s998_s0 + $0xa0] sm:$0xff] }
  0x1c   :  { %v107_v35 = vmul.f32 %v430_v21, %v37_v18  ;;  %v108_v36 = vmul.f32 %v430_v21, %v38_v19  ;;  %v109_v37 = vmul.f32 %v430_v21, %v39_v22  ;;  %v110_v38 = vmul.f32 %v430_v21, %v40_v23  ;;  %v55_v18 = vld [vmem:[%s998_s0 + $0xa8] sm:$0xff] }
  0x1d   :  { %v466_v39 = vrot.slane %v33_v28, %v101_v11  ;;  %v111_v40 = vmul.f32 %v430_v21, %v41_v24  ;;  %v112_v41 = vmul.f32 %v430_v21, %v42_v25  ;;  %v113_v42 = vmul.f32 %v430_v21, %v43_v26  ;;  %v52_v11 = vld [vmem:[%s998_s0 + $0x90] sm:$0xff] }
  0x1e   :  { %v114_v43 = vmul.f32 %v430_v21, %v44_v27  ;;  %v115_v44 = vmul.f32 %v430_v21, %v45_v32  ;;  %v116_v45 = vmul.f32 %v430_v21, %v46_v33  ;;  %v117_v46 = vmul.f32 %v430_v21, %v47_v34  ;;  %v56_v28 = vld [vmem:[%s998_s0 + $0xb0] sm:$0xff] }
  0x1f   :  { %v174_v47 = vadd.f32 %v466_v39, %v104_v29  ;;  %v175_v48 = vadd.f32 %v466_v39, %v105_v30  ;;  %v176_v49 = vadd.f32 %v466_v39, %v106_v31  ;;  %v177_v50 = vadd.f32 %v466_v39, %v107_v35  ;;  %v57_v29 = vld [vmem:[%s998_s0 + $0xb8] sm:$0xff] }
  0x20   :  { %v178_v51 = vadd.f32 %v466_v39, %v108_v36  ;;  %v179_v52 = vadd.f32 %v466_v39, %v109_v37  ;;  %v180_v53 = vadd.f32 %v466_v39, %v110_v38  ;;  %v181_v54 = vadd.f32 %v466_v39, %v111_v40  ;;  %v58_v38 = vld [vmem:[%s998_s0 + $0xc0] sm:$0xff] }
  0x21   :  { %v238_v55 = vmax.f32 %v174_v47, 0.0  ;;  %v239_v56 = vmax.f32 %v175_v48, 0.0  ;;  %v240_v57 = vmax.f32 %v176_v49, 0.0  ;;  %v241_v58 = vmax.f32 %v177_v50, 0.0 }
  0x22   :  { %v242_v61 = vmax.f32 %v178_v51, 0.0  ;;  %v243_v62 = vmax.f32 %v179_v52, 0.0  ;;  %v244_v63 = vmax.f32 %v180_v53, 0.0  ;;  %v245_v0 = vmax.f32 %v181_v54, 0.0  ;;  %v62_v51 = vld [vmem:[%s998_s0 + $0xe0] sm:$0xff]  ;;  %v63_v52 = vld [vmem:[%s998_s0 + $0xe8] sm:$0xff] }
  0x23   :  { %303 = vst.msk [vmem:[%s1000_s5] sm:$0xff] %vm302_vm0, %v238_v55  ;;  %304 = vst.msk [vmem:[%s1000_s5 + $0x8] sm:$0xff] %vm302_vm0, %v239_v56  ;;  %v182_v1 = vadd.f32 %v466_v39, %v112_v41  ;;  %v183_v2 = vadd.f32 %v466_v39, %v113_v42  ;;  %v184_v3 = vadd.f32 %v466_v39, %v114_v43 }
  0x24   :  { %305 = vst.msk [vmem:[%s1000_s5 + $0x10] sm:$0xff] %vm302_vm0, %v240_v57  ;;  %306 = vst.msk [vmem:[%s1000_s5 + $0x18] sm:$0xff] %vm302_vm0, %v241_v58  ;;  %v185_v4 = vadd.f32 %v466_v39, %v115_v44  ;;  %v186_v6 = vadd.f32 %v466_v39, %v116_v45  ;;  %v187_v7 = vadd.f32 %v466_v39, %v117_v46  ;;  %v59_v44 = vld [vmem:[%s998_s0 + $0xc8] sm:$0xff]  ;;  %v60_v45 = vld [vmem:[%s998_s0 + $0xd0] sm:$0xff] }
  0x25   :  { %307 = vst.msk [vmem:[%s1000_s5 + $0x20] sm:$0xff] %vm302_vm0, %v242_v61  ;;  %308 = vst.msk [vmem:[%s1000_s5 + $0x28] sm:$0xff] %vm302_vm0, %v243_v62  ;;  %v118_v8 = vmul.f32 %v430_v21, %v48_v59  ;;  %v119_v9 = vmul.f32 %v430_v21, %v49_v60  ;;  %v246_v13 = vmax.f32 %v182_v1, 0.0  ;;  %v247_v14 = vmax.f32 %v183_v2, 0.0  ;;  %v61_v46 = vld [vmem:[%s998_s0 + $0xd8] sm:$0xff]  ;;  %v64_v61 = vld [vmem:[%s998_s0 + $0xf0] sm:$0xff] }
  0x26   :  { %309 = vst.msk [vmem:[%s1000_s5 + $0x30] sm:$0xff] %vm302_vm0, %v244_v63  ;;  %310 = vst.msk [vmem:[%s1000_s5 + $0x38] sm:$0xff] %vm302_vm0, %v245_v0  ;;  %v248_v15 = vmax.f32 %v184_v3, 0.0  ;;  %v249_v16 = vmax.f32 %v185_v4, 0.0  ;;  %v250_v19 = vmax.f32 %v186_v6, 0.0  ;;  %v251_v20 = vmax.f32 %v187_v7, 0.0 }
  0x27   :  { %v188_v22 = vadd.f32 %v466_v39, %v118_v8  ;;  %v189_v23 = vadd.f32 %v466_v39, %v119_v9  ;;  %311 = vst.msk [vmem:[%s1000_s5 + $0x40] sm:$0xff] %vm302_vm0, %v246_v13  ;;  %312 = vst.msk [vmem:[%s1000_s5 + $0x48] sm:$0xff] %vm302_vm0, %v247_v14  ;;  %v120_v24 = vmul.f32 %v430_v21, %v50_v5  ;;  %v65_v62 = vld [vmem:[%s998_s0 + $0xf8] sm:$0xff]  ;;  %v66_v7 = vld [vmem:[%s998_s0 + $0x100] sm:$0xff] }
  0x28   :  { %313 = vst.msk [vmem:[%s1000_s5 + $0x50] sm:$0xff] %vm302_vm0, %v248_v15  ;;  %314 = vst.msk [vmem:[%s1000_s5 + $0x58] sm:$0xff] %vm302_vm0, %v249_v16  ;;  %v121_v25 = vmul.f32 %v430_v21, %v51_v10  ;;  %v122_v26 = vmul.f32 %v430_v21, %v52_v11  ;;  %v123_v27 = vmul.f32 %v430_v21, %v53_v12  ;;  %v67_v12 = vld [vmem:[%s998_s0 + $0x108] sm:$0xff]  ;;  %v68_v13 = vld [vmem:[%s998_s0 + $0x110] sm:$0xff] }
  0x29   :  { %315 = vst.msk [vmem:[%s1000_s5 + $0x60] sm:$0xff] %vm302_vm0, %v250_v19  ;;  %316 = vst.msk [vmem:[%s1000_s5 + $0x68] sm:$0xff] %vm302_vm0, %v251_v20  ;;  %v252_v30 = vmax.f32 %v188_v22, 0.0  ;;  %v253_v31 = vmax.f32 %v189_v23, 0.0  ;;  %v124_v32 = vmul.f32 %v430_v21, %v54_v17  ;;  %v125_v33 = vmul.f32 %v430_v21, %v55_v18  ;;  %v69_v14 = vld [vmem:[%s998_s0 + $0x118] sm:$0xff]  ;;  %v70_v19 = vld [vmem:[%s998_s0 + $0x120] sm:$0xff] }
  0x2a   :  { %v190_v34 = vadd.f32 %v466_v39, %v120_v24  ;;  %v191_v35 = vadd.f32 %v466_v39, %v121_v25  ;;  %v192_v36 = vadd.f32 %v466_v39, %v122_v26  ;;  %v193_v37 = vadd.f32 %v466_v39, %v123_v27  ;;  %v71_v20 = vld [vmem:[%s998_s0 + $0x128] sm:$0xff] }
  0x2b   :  { %317 = vst.msk [vmem:[%s1000_s5 + $0x70] sm:$0xff] %vm302_vm0, %v252_v30  ;;  %318 = vst.msk [vmem:[%s1000_s5 + $0x78] sm:$0xff] %vm302_vm0, %v253_v31  ;;  %v194_v40 = vadd.f32 %v466_v39, %v124_v32  ;;  %v195_v41 = vadd.f32 %v466_v39, %v125_v33  ;;  %v126_v42 = vmul.f32 %v430_v21, %v56_v28  ;;  %v72_v30 = vld [vmem:[%s998_s0 + $0x130] sm:$0xff]  ;;  %v73_v31 = vld [vmem:[%s998_s0 + $0x138] sm:$0xff] }
  0x2c   :  { %v127_v43 = vmul.f32 %v430_v21, %v57_v29  ;;  %v254_v47 = vmax.f32 %v190_v34, 0.0  ;;  %v255_v48 = vmax.f32 %v191_v35, 0.0  ;;  %v256_v49 = vmax.f32 %v192_v36, 0.0 }
  0x2d   :  { %v257_v50 = vmax.f32 %v193_v37, 0.0  ;;  %v258_v53 = vmax.f32 %v194_v40, 0.0  ;;  %v259_v54 = vmax.f32 %v195_v41, 0.0  ;;  %v196_v55 = vadd.f32 %v466_v39, %v126_v42  ;;  %v74_v41 = vld [vmem:[%s998_s0 + $0x140] sm:$0xff] }
  0x2e   :  { %v197_v56 = vadd.f32 %v466_v39, %v127_v43  ;;  %319 = vst.msk [vmem:[%s1000_s5 + $0x80] sm:$0xff] %vm302_vm0, %v254_v47  ;;  %320 = vst.msk [vmem:[%s1000_s5 + $0x88] sm:$0xff] %vm302_vm0, %v255_v48  ;;  %v128_v57 = vmul.f32 %v430_v21, %v58_v38  ;;  %v129_v58 = vmul.f32 %v430_v21, %v59_v44  ;;  %v76_v47 = vld [vmem:[%s998_s0 + $0x150] sm:$0xff]  ;;  %v77_v48 = vld [vmem:[%s998_s0 + $0x158] sm:$0xff] }
  0x2f   :  { %321 = vst.msk [vmem:[%s1000_s5 + $0x90] sm:$0xff] %vm302_vm0, %v256_v49  ;;  %322 = vst.msk [vmem:[%s1000_s5 + $0x98] sm:$0xff] %vm302_vm0, %v257_v50  ;;  %v130_v59 = vmul.f32 %v430_v21, %v60_v45  ;;  %v131_v60 = vmul.f32 %v430_v21, %v61_v46  ;;  %v260_v63 = vmax.f32 %v196_v55, 0.0  ;;  %v132_v1 = vmul.f32 %v430_v21, %v62_v51  ;;  %v75_v46 = vld [vmem:[%s998_s0 + $0x148] sm:$0xff] }
  0x30   :  { %323 = vst.msk [vmem:[%s1000_s5 + $0xa0] sm:$0xff] %vm302_vm0, %v258_v53  ;;  %324 = vst.msk [vmem:[%s1000_s5 + $0xa8] sm:$0xff] %vm302_vm0, %v259_v54  ;;  %v261_v0 = vmax.f32 %v197_v56, 0.0  ;;  %v133_v2 = vmul.f32 %v430_v21, %v63_v52  ;;  %v198_v3 = vadd.f32 %v466_v39, %v128_v57  ;;  %v199_v4 = vadd.f32 %v466_v39, %v129_v58  ;;  %v78_v53 = vld [vmem:[%s998_s0 + $0x160] sm:$0xff]  ;;  %v79_v54 = vld [vmem:[%s998_s0 + $0x168] sm:$0xff] }
  0x31   :  { %v200_v5 = vadd.f32 %v466_v39, %v130_v59  ;;  %v201_v6 = vadd.f32 %v466_v39, %v131_v60  ;;  %325 = vst.msk [vmem:[%s1000_s5 + $0xb0] sm:$0xff] %vm302_vm0, %v260_v63  ;;  %v202_v8 = vadd.f32 %v466_v39, %v132_v1  ;;  %v134_v10 = vmul.f32 %v430_v21, %v64_v61  ;;  %v80_v63 = vld [vmem:[%s998_s0 + $0x170] sm:$0xff] }
  0x32   :  { %326 = vst.msk [vmem:[%s1000_s5 + $0xb8] sm:$0xff] %vm302_vm0, %v261_v0  ;;  %v203_v9 = vadd.f32 %v466_v39, %v133_v2  ;;  %v135_v11 = vmul.f32 %v430_v21, %v65_v62  ;;  %v262_v15 = vmax.f32 %v198_v3, 0.0  ;;  %v263_v16 = vmax.f32 %v199_v4, 0.0  ;;  %v81_v0 = vld [vmem:[%s998_s0 + $0x178] sm:$0xff] }
  0x33   :  { %v264_v17 = vmax.f32 %v200_v5, 0.0  ;;  %v265_v18 = vmax.f32 %v201_v6, 0.0  ;;  %v266_v22 = vmax.f32 %v202_v8, 0.0  ;;  %v204_v24 = vadd.f32 %v466_v39, %v134_v10 }
  0x34   :  { %v267_v23 = vmax.f32 %v203_v9, 0.0  ;;  %v205_v25 = vadd.f32 %v466_v39, %v135_v11  ;;  %327 = vst.msk [vmem:[%s1000_s5 + $0xc0] sm:$0xff] %vm302_vm0, %v262_v15  ;;  %328 = vst.msk [vmem:[%s1000_s5 + $0xc8] sm:$0xff] %vm302_vm0, %v263_v16  ;;  %v136_v26 = vmul.f32 %v430_v21, %v66_v7  ;;  %v137_v27 = vmul.f32 %v430_v21, %v67_v12  ;;  %v82_v9 = vld [vmem:[%s998_s0 + $0x180] sm:$0xff]  ;;  %v84_v15 = vld [vmem:[%s998_s0 + $0x190] sm:$0xff] }
  0x35   :  { %329 = vst.msk [vmem:[%s1000_s5 + $0xd0] sm:$0xff] %vm302_vm0, %v264_v17  ;;  %330 = vst.msk [vmem:[%s1000_s5 + $0xd8] sm:$0xff] %vm302_vm0, %v265_v18  ;;  %v138_v28 = vmul.f32 %v430_v21, %v68_v13  ;;  %v139_v29 = vmul.f32 %v430_v21, %v69_v14  ;;  %v268_v32 = vmax.f32 %v204_v24, 0.0  ;;  %v140_v34 = vmul.f32 %v430_v21, %v70_v19  ;;  %v83_v14 = vld [vmem:[%s998_s0 + $0x188] sm:$0xff]  ;;  %v85_v16 = vld [vmem:[%s998_s0 + $0x198] sm:$0xff] }
  0x36   :  { %331 = vst.msk [vmem:[%s1000_s5 + $0xe0] sm:$0xff] %vm302_vm0, %v266_v22  ;;  %332 = vst.msk [vmem:[%s1000_s5 + $0xe8] sm:$0xff] %vm302_vm0, %v267_v23  ;;  %v269_v33 = vmax.f32 %v205_v25, 0.0  ;;  %v141_v35 = vmul.f32 %v430_v21, %v71_v20  ;;  %v206_v36 = vadd.f32 %v466_v39, %v136_v26  ;;  %v207_v37 = vadd.f32 %v466_v39, %v137_v27  ;;  %v86_v22 = vld [vmem:[%s998_s0 + $0x1a0] sm:$0xff]  ;;  %v87_v23 = vld [vmem:[%s998_s0 + $0x1a8] sm:$0xff] }
  0x37   :  { %v208_v38 = vadd.f32 %v466_v39, %v138_v28  ;;  %v209_v40 = vadd.f32 %v466_v39, %v139_v29  ;;  %333 = vst.msk [vmem:[%s1000_s5 + $0xf0] sm:$0xff] %vm302_vm0, %v268_v32  ;;  %v210_v42 = vadd.f32 %v466_v39, %v140_v34  ;;  %v142_v44 = vmul.f32 %v430_v21, %v72_v30  ;;  %v88_v32 = vld [vmem:[%s998_s0 + $0x1b0] sm:$0xff] }
  0x38   :  { %334 = vst.msk [vmem:[%s1000_s5 + $0xf8] sm:$0xff] %vm302_vm0, %v269_v33  ;;  %v211_v43 = vadd.f32 %v466_v39, %v141_v35  ;;  %v143_v45 = vmul.f32 %v430_v21, %v73_v31  ;;  %v270_v49 = vmax.f32 %v206_v36, 0.0  ;;  %v271_v50 = vmax.f32 %v207_v37, 0.0  ;;  %v89_v33 = vld [vmem:[%s998_s0 + $0x1b8] sm:$0xff] }
  0x39   :  { %v272_v51 = vmax.f32 %v208_v38, 0.0  ;;  %v273_v52 = vmax.f32 %v209_v40, 0.0  ;;  %v274_v55 = vmax.f32 %v210_v42, 0.0  ;;  %v212_v57 = vadd.f32 %v466_v39, %v142_v44 }
  0x3a   :  { %v275_v56 = vmax.f32 %v211_v43, 0.0  ;;  %v213_v58 = vadd.f32 %v466_v39, %v143_v45  ;;  %335 = vst.msk [vmem:[%s1000_s5 + $0x100] sm:$0xff] %vm302_vm0, %v270_v49  ;;  %336 = vst.msk [vmem:[%s1000_s5 + $0x108] sm:$0xff] %vm302_vm0, %v271_v50  ;;  %v144_v59 = vmul.f32 %v430_v21, %v74_v41  ;;  %v145_v60 = vmul.f32 %v430_v21, %v75_v46  ;;  %v90_v43 = vld [vmem:[%s998_s0 + $0x1c0] sm:$0xff]  ;;  %v92_v49 = vld [vmem:[%s998_s0 + $0x1d0] sm:$0xff] }
  0x3b   :  { %337 = vst.msk [vmem:[%s1000_s5 + $0x110] sm:$0xff] %vm302_vm0, %v272_v51  ;;  %338 = vst.msk [vmem:[%s1000_s5 + $0x118] sm:$0xff] %vm302_vm0, %v273_v52  ;;  %v146_v61 = vmul.f32 %v430_v21, %v76_v47  ;;  %v147_v62 = vmul.f32 %v430_v21, %v77_v48  ;;  %v276_v1 = vmax.f32 %v212_v57, 0.0  ;;  %v148_v3 = vmul.f32 %v430_v21, %v78_v53  ;;  %v91_v48 = vld [vmem:[%s998_s0 + $0x1c8] sm:$0xff]  ;;  %v93_v50 = vld [vmem:[%s998_s0 + $0x1d8] sm:$0xff] }
  0x3c   :  { %339 = vst.msk [vmem:[%s1000_s5 + $0x120] sm:$0xff] %vm302_vm0, %v274_v55  ;;  %340 = vst.msk [vmem:[%s1000_s5 + $0x128] sm:$0xff] %vm302_vm0, %v275_v56  ;;  %v277_v2 = vmax.f32 %v213_v58, 0.0  ;;  %v149_v4 = vmul.f32 %v430_v21, %v79_v54  ;;  %v214_v5 = vadd.f32 %v466_v39, %v144_v59  ;;  %v215_v6 = vadd.f32 %v466_v39, %v145_v60  ;;  %v94_v55 = vld [vmem:[%s998_s0 + $0x1e0] sm:$0xff]  ;;  %v95_v56 = vld [vmem:[%s998_s0 + $0x1e8] sm:$0xff] }
  0x3d   :  { %v216_v7 = vadd.f32 %v466_v39, %v146_v61  ;;  %v217_v8 = vadd.f32 %v466_v39, %v147_v62  ;;  %341 = vst.msk [vmem:[%s1000_s5 + $0x130] sm:$0xff] %vm302_vm0, %v276_v1  ;;  %v218_v10 = vadd.f32 %v466_v39, %v148_v3  ;;  %v150_v12 = vmul.f32 %v430_v21, %v80_v63  ;;  %v96_v1 = vld [vmem:[%s998_s0 + $0x1f0] sm:$0xff] }
  0x3e   :  { %342 = vst.msk [vmem:[%s1000_s5 + $0x138] sm:$0xff] %vm302_vm0, %v277_v2  ;;  %v219_v11 = vadd.f32 %v466_v39, %v149_v4  ;;  %v151_v13 = vmul.f32 %v430_v21, %v81_v0  ;;  %v278_v17 = vmax.f32 %v214_v5, 0.0  ;;  %v279_v18 = vmax.f32 %v215_v6, 0.0  ;;  %v97_v2 = vld [vmem:[%s998_s0 + $0x1f8] sm:$0xff] }
  0x3f   :  { %v280_v19 = vmax.f32 %v216_v7, 0.0  ;;  %v281_v20 = vmax.f32 %v217_v8, 0.0  ;;  %v282_v24 = vmax.f32 %v218_v10, 0.0  ;;  %v220_v26 = vadd.f32 %v466_v39, %v150_v12 }
  0x40   :  { %v283_v25 = vmax.f32 %v219_v11, 0.0  ;;  %v221_v27 = vadd.f32 %v466_v39, %v151_v13  ;;  %343 = vst.msk [vmem:[%s1000_s5 + $0x140] sm:$0xff] %vm302_vm0, %v278_v17  ;;  %344 = vst.msk [vmem:[%s1000_s5 + $0x148] sm:$0xff] %vm302_vm0, %v279_v18  ;;  %v152_v28 = vmul.f32 %v430_v21, %v82_v9  ;;  %v153_v29 = vmul.f32 %v430_v21, %v83_v14 }
  0x41   :  { %345 = vst.msk [vmem:[%s1000_s5 + $0x150] sm:$0xff] %vm302_vm0, %v280_v19  ;;  %346 = vst.msk [vmem:[%s1000_s5 + $0x158] sm:$0xff] %vm302_vm0, %v281_v20  ;;  %v154_v30 = vmul.f32 %v430_v21, %v84_v15  ;;  %v155_v31 = vmul.f32 %v430_v21, %v85_v16  ;;  %v284_v34 = vmax.f32 %v220_v26, 0.0  ;;  %v156_v36 = vmul.f32 %v430_v21, %v86_v22 }
  0x42   :  { %347 = vst.msk [vmem:[%s1000_s5 + $0x160] sm:$0xff] %vm302_vm0, %v282_v24  ;;  %348 = vst.msk [vmem:[%s1000_s5 + $0x168] sm:$0xff] %vm302_vm0, %v283_v25  ;;  %v285_v35 = vmax.f32 %v221_v27, 0.0  ;;  %v157_v37 = vmul.f32 %v430_v21, %v87_v23  ;;  %v222_v38 = vadd.f32 %v466_v39, %v152_v28  ;;  %v223_v40 = vadd.f32 %v466_v39, %v153_v29 }
  0x43   :  { %v224_v41 = vadd.f32 %v466_v39, %v154_v30  ;;  %v225_v42 = vadd.f32 %v466_v39, %v155_v31  ;;  %349 = vst.msk [vmem:[%s1000_s5 + $0x170] sm:$0xff] %vm302_vm0, %v284_v34  ;;  %v226_v44 = vadd.f32 %v466_v39, %v156_v36  ;;  %v158_v46 = vmul.f32 %v430_v21, %v88_v32 }
  0x44   :  { %350 = vst.msk [vmem:[%s1000_s5 + $0x178] sm:$0xff] %vm302_vm0, %v285_v35  ;;  %v227_v45 = vadd.f32 %v466_v39, %v157_v37  ;;  %v159_v47 = vmul.f32 %v430_v21, %v89_v33  ;;  %v286_v51 = vmax.f32 %v222_v38, 0.0  ;;  %v287_v52 = vmax.f32 %v223_v40, 0.0 }
  0x45   :  { %v288_v53 = vmax.f32 %v224_v41, 0.0  ;;  %v289_v54 = vmax.f32 %v225_v42, 0.0  ;;  %v290_v57 = vmax.f32 %v226_v44, 0.0  ;;  %v228_v59 = vadd.f32 %v466_v39, %v158_v46 }
  0x46   :  { %v291_v58 = vmax.f32 %v227_v45, 0.0  ;;  %v229_v60 = vadd.f32 %v466_v39, %v159_v47  ;;  %351 = vst.msk [vmem:[%s1000_s5 + $0x180] sm:$0xff] %vm302_vm0, %v286_v51  ;;  %352 = vst.msk [vmem:[%s1000_s5 + $0x188] sm:$0xff] %vm302_vm0, %v287_v52  ;;  %v160_v61 = vmul.f32 %v430_v21, %v90_v43  ;;  %v161_v62 = vmul.f32 %v430_v21, %v91_v48 }
  0x47   :  { %353 = vst.msk [vmem:[%s1000_s5 + $0x190] sm:$0xff] %vm302_vm0, %v288_v53  ;;  %354 = vst.msk [vmem:[%s1000_s5 + $0x198] sm:$0xff] %vm302_vm0, %v289_v54  ;;  %v162_v63 = vmul.f32 %v430_v21, %v92_v49  ;;  %v163_v0 = vmul.f32 %v430_v21, %v93_v50  ;;  %v292_v3 = vmax.f32 %v228_v59, 0.0  ;;  %v164_v5 = vmul.f32 %v430_v21, %v94_v55 }
  0x48   :  { %355 = vst.msk [vmem:[%s1000_s5 + $0x1a0] sm:$0xff] %vm302_vm0, %v290_v57  ;;  %356 = vst.msk [vmem:[%s1000_s5 + $0x1a8] sm:$0xff] %vm302_vm0, %v291_v58  ;;  %v293_v4 = vmax.f32 %v229_v60, 0.0  ;;  %v165_v6 = vmul.f32 %v430_v21, %v95_v56  ;;  %v230_v7 = vadd.f32 %v466_v39, %v160_v61  ;;  %v231_v8 = vadd.f32 %v466_v39, %v161_v62 }
  0x49   :  { %v232_v9 = vadd.f32 %v466_v39, %v162_v63  ;;  %v233_v10 = vadd.f32 %v466_v39, %v163_v0  ;;  %357 = vst.msk [vmem:[%s1000_s5 + $0x1b0] sm:$0xff] %vm302_vm0, %v292_v3  ;;  %v234_v11 = vadd.f32 %v466_v39, %v164_v5  ;;  %v166_v13 = vmul.f32 %v430_v21, %v96_v1 }
  0x4a   :  { %358 = vst.msk [vmem:[%s1000_s5 + $0x1b8] sm:$0xff] %vm302_vm0, %v293_v4  ;;  %v235_v12 = vadd.f32 %v466_v39, %v165_v6  ;;  %v167_v14 = vmul.f32 %v430_v21, %v97_v2  ;;  %v294_v15 = vmax.f32 %v230_v7, 0.0  ;;  %v295_v16 = vmax.f32 %v231_v8, 0.0 }
  0x4b   :  { %v296_v17 = vmax.f32 %v232_v9, 0.0  ;;  %v297_v18 = vmax.f32 %v233_v10, 0.0  ;;  %v298_v19 = vmax.f32 %v234_v11, 0.0  ;;  %v236_v22 = vadd.f32 %v466_v39, %v166_v13 }
  0x4c   :  { %v299_v20 = vmax.f32 %v235_v12, 0.0  ;;  %v237_v23 = vadd.f32 %v466_v39, %v167_v14  ;;  %359 = vst.msk [vmem:[%s1000_s5 + $0x1c0] sm:$0xff] %vm302_vm0, %v294_v15  ;;  %360 = vst.msk [vmem:[%s1000_s5 + $0x1c8] sm:$0xff] %vm302_vm0, %v295_v16 }
  0x4d   :  { %361 = vst.msk [vmem:[%s1000_s5 + $0x1d0] sm:$0xff] %vm302_vm0, %v296_v17  ;;  %362 = vst.msk [vmem:[%s1000_s5 + $0x1d8] sm:$0xff] %vm302_vm0, %v297_v18  ;;  %v300_v21 = vmax.f32 %v236_v22, 0.0 }
  0x4e   :  { %363 = vst.msk [vmem:[%s1000_s5 + $0x1e0] sm:$0xff] %vm302_vm0, %v298_v19  ;;  %364 = vst.msk [vmem:[%s1000_s5 + $0x1e8] sm:$0xff] %vm302_vm0, %v299_v20  ;;  %v301_v39 = vmax.f32 %v237_v23, 0.0 }
  0x4f   :  { %365 = vst.msk [vmem:[%s1000_s5 + $0x1f0] sm:$0xff] %vm302_vm0, %v300_v21 }
  0x50   :  { %366 = vst.msk [vmem:[%s1000_s5 + $0x1f8] sm:$0xff] %vm302_vm0, %v301_v39 }

// kernel: bottleneck_forward.12
= control target key start
LH: loop header
LB: loop body
LE: loop exit
PB: predicated region body
PF: predicated region fallthrough
CT: control target
= control target key end

     0   :  { %s1173_s12 = smov 0   ;;  %s1175_s13 = smov 0   ;;  %s1425_s0 = inlined_call_operand.vmem [shape: bf16[512,64], index: 0, kind: input, shape index: {}]   ;;  %s1426_s1 = inlined_call_operand.vmem [shape: bf16[64,32], index: 1, kind: input, shape index: {}]   ;;  %s1427_s2 = inlined_call_operand.vmem [shape: f32[1,32], index: 2, kind: input, shape index: {}]   ;;  %s1428_s3 = inlined_call_operand.vmem [shape: f32[512,32], index: 3, kind: output, shape index: {}]  }
   0x1   :  { %s1177_s14 = smov 0  }
   0x2 LB: > { %s32_s15 = sadd.s32 1, %s1146_s13  ;;  %p971_p0 = scmp.ge.s32.totalorder %s1150_s14, 1  ;;  %s1150_s14 = sphi %s1177_s14, %s13_s14   ;;  %s1146_s13 = sphi %s1175_s13, %s1430_s13   ;;  %s1142_s12 = sphi %s1173_s12, %s1429_s12  }
   0x3   : > { %p34_p1 = scmp.ge.s32.totalorder %s32_s15, 2  ;;  %p188_p2 = scmp.lt.s32.totalorder %s1150_s14, 3 }
   0x5   : > { %s1432_s15 = smov (%p34_p1, %s32_s15), 0  ;;  %p189_p3 = pnand %p971_p0, %p188_p2 }
   0x6   : > { %v1108_v0 = vld [vmem:[%s1426_s1] sm:$0xff] (!%p189_p3)   ;;  %s972_s18 = sshll.u32 (!%p189_p3), %s1142_s12, 5  ;;  %v1109_v1 = vld [vmem:[%s1426_s1 + $0x8] sm:$0xff] (!%p189_p3)   ;;  %v1110_v2 = vld [vmem:[%s1426_s1 + $0x10] sm:$0xff] (!%p189_p3)   ;;  %vm264_vm0 = vcmask (!%p189_p3), 261120   ;;  %v1152_v3 = vmov (!%p189_p3), 0.0  }
   0x7   : > { %192 = sbr.rel (%p189_p3) target bundleno = 278 (0x116), region = 32  ;;  %p230_p4 = scmp.lt.s32.totalorder (!%p189_p3), %s972_s18, 63  ;;  %1035 = vmatprep.subr.bf16.mxu0 (!%p189_p3), %v1108_v0  ;;  %1075 = vmatprep.subr.bf16.mxu1 (!%p189_p3), %v1108_v0  ;;  %267 = vst.msk [vmem:[#allocation2 + $0x10] sm:$0xff] (!%p189_p3), %vm264_vm0, %v1152_v3  ;;  %265 = vst.msk [vmem:[#allocation2] sm:$0xff] (!%p189_p3), %vm264_vm0, %v1152_v3  ;;  %v1111_v4 = vld [vmem:[%s1426_s1 + $0x18] sm:$0xff] (!%p189_p3)   ;;  %vm473_vm1 = vcmask (!%p189_p3), 523264  }
   0x8   : > { %1036 = vmatpush3.bf16.msra.mxu0 (!%p189_p3), %v1108_v0  ;;  %1079 = vmatpush3.bf16.msra.mxu1 (!%p189_p3), %v1108_v0  ;;  %266 = vst.msk [vmem:[#allocation2 + $0x8] sm:$0xff] (!%p189_p3), %vm264_vm0, %v1152_v3  ;;  %268 = vst.msk [vmem:[#allocation2 + $0x18] sm:$0xff] (!%p189_p3), %vm264_vm0, %v1152_v3  ;;  %v1289_v49 = vld [vmem:[%s1427_s2] ss:$0 sm:$0xff] (!%p189_p3) }
   0x9   : > { %1037 = vmatprep.subr.bf16.mxu0 (!%p189_p3), %v1109_v1  ;;  %1076 = vmatprep.subr.bf16.mxu1 (!%p189_p3), %v1109_v1  ;;  %269 = vst.msk [vmem:[#allocation2 + $0x20] sm:$0xff] (!%p189_p3), %vm264_vm0, %v1152_v3  ;;  %270 = vst.msk [vmem:[#allocation2 + $0x28] sm:$0xff] (!%p189_p3), %vm264_vm0, %v1152_v3 }
   0xa   : > { %271 = vst.msk [vmem:[#allocation2 + $0x30] sm:$0xff] (!%p189_p3), %vm264_vm0, %v1152_v3  ;;  %272 = vst.msk [vmem:[#allocation2 + $0x38] sm:$0xff] (!%p189_p3), %vm264_vm0, %v1152_v3 }
   0xb   : > { %273 = vst.msk [vmem:[#allocation2 + $0x40] sm:$0xff] (!%p189_p3), %vm264_vm0, %v1152_v3  ;;  %274 = vst.msk [vmem:[#allocation2 + $0x48] sm:$0xff] (!%p189_p3), %vm264_vm0, %v1152_v3 }
   0xc   : > { %275 = vst.msk [vmem:[#allocation2 + $0x50] sm:$0xff] (!%p189_p3), %vm264_vm0, %v1152_v3  ;;  %276 = vst.msk [vmem:[#allocation2 + $0x58] sm:$0xff] (!%p189_p3), %vm264_vm0, %v1152_v3  ;;  %1038 = vmatpush3.bf16.msra.mxu0 (!%p189_p3), %v1109_v1  ;;  %1080 = vmatpush3.bf16.msra.mxu1 (!%p189_p3), %v1109_v1 }
   0xd   : > { %277 = vst.msk [vmem:[#allocation2 + $0x60] sm:$0xff] (!%p189_p3), %vm264_vm0, %v1152_v3  ;;  %278 = vst.msk [vmem:[#allocation2 + $0x68] sm:$0xff] (!%p189_p3), %vm264_vm0, %v1152_v3  ;;  %1039 = vmatprep.subr.bf16.mxu0 (!%p189_p3), %v1110_v2  ;;  %1077 = vmatprep.subr.bf16.mxu1 (!%p189_p3), %v1110_v2 }
   0xe   : > { %s1434_s18 = smov (!%p230_p4, %s972_s18), 63  ;;  %279 = vst.msk [vmem:[#allocation2 + $0x70] sm:$0xff] %vm264_vm0, %v1152_v3  ;;  %280 = vst.msk [vmem:[#allocation2 + $0x78] sm:$0xff] %vm264_vm0, %v1152_v3  ;;  %v299_v21 = vld [vmem:[#allocation2 + $0x10] sm:$0xff]  ;;  %v297_v23 = vld [vmem:[#allocation2] sm:$0xff] }
   0xf   : > { %s973_s23 = sshll.u32 %s1434_s18, 2  ;;  %281 = vst.msk [vmem:[#allocation2 + $0x80] sm:$0xff] %vm264_vm0, %v1152_v3  ;;  %282 = vst.msk [vmem:[#allocation2 + $0x88] sm:$0xff] %vm264_vm0, %v1152_v3  ;;  %v300_v27 = vld [vmem:[#allocation2 + $0x18] sm:$0xff]  ;;  %v298_v33 = vld [vmem:[#allocation2 + $0x8] sm:$0xff]  ;;  %s975_s29 = sshll.u32 %s1434_s18, 3 }
  0x10   : > { %283 = vst.msk [vmem:[#allocation2 + $0x90] sm:$0xff] %vm264_vm0, %v1152_v3  ;;  %284 = vst.msk [vmem:[#allocation2 + $0x98] sm:$0xff] %vm264_vm0, %v1152_v3  ;;  %s1243_s28 = scalar_lea.vmem %s1425_s0, %s973_s23  ;;  %1040 = vmatpush3.bf16.msra.mxu0 %v1110_v2  ;;  %1081 = vmatpush3.bf16.msra.mxu1 %v1110_v2  ;;  %v301_v47 = vld [vmem:[#allocation2 + $0x20] sm:$0xff]  ;;  %v302_v58 = vld [vmem:[#allocation2 + $0x28] sm:$0xff]  ;;  %s1294_s7 = scalar_lea.vmem %s1428_s3, %s975_s29 }
  0x11   : > { %285 = vst.msk [vmem:[#allocation2 + $0xa0] sm:$0xff] %vm264_vm0, %v1152_v3  ;;  %286 = vst.msk [vmem:[#allocation2 + $0xa8] sm:$0xff] %vm264_vm0, %v1152_v3  ;;  %v1112_v5 = vld [vmem:[%s1243_s28] sm:$0xff]   ;;  %1041 = vmatprep.subr.bf16.mxu0 %v1111_v4  ;;  %1078 = vmatprep.subr.bf16.mxu1 %v1111_v4  ;;  %v1114_v7 = vld [vmem:[%s1243_s28 + $0x8] sm:$0xff]  }
  0x12   : > { %287 = vst.msk [vmem:[#allocation2 + $0xb0] sm:$0xff] %vm264_vm0, %v1152_v3  ;;  %288 = vst.msk [vmem:[#allocation2 + $0xb8] sm:$0xff] %vm264_vm0, %v1152_v3  ;;  %v1113_v6 = vld [vmem:[%s1243_s28 + $0x40] sm:$0xff]   ;;  %1043 = vmatprep.mubr.msk.bf16.mxu0 %vm473_vm1, %v1112_v5  ;;  %v1115_v8 = vld [vmem:[%s1243_s28 + $0x48] sm:$0xff]  }
  0x13   : > { %289 = vst.msk [vmem:[#allocation2 + $0xc0] sm:$0xff] %vm264_vm0, %v1152_v3  ;;  %290 = vst.msk [vmem:[#allocation2 + $0xc8] sm:$0xff] %vm264_vm0, %v1152_v3  ;;  %1059 = vmatprep.mubr.msk.bf16.mxu1 %vm473_vm1, %v1113_v6  ;;  %v1116_v9 = vld [vmem:[%s1243_s28 + $0x10] sm:$0xff]   ;;  %v1118_v11 = vld [vmem:[%s1243_s28 + $0x18] sm:$0xff]  }
  0x14   : > { %291 = vst.msk [vmem:[#allocation2 + $0xd0] sm:$0xff] %vm264_vm0, %v1152_v3  ;;  %292 = vst.msk [vmem:[#allocation2 + $0xd8] sm:$0xff] %vm264_vm0, %v1152_v3  ;;  %1042 = vmatpush3.bf16.msra.mxu0 %v1111_v4  ;;  %1082 = vmatpush3.bf16.msra.mxu1 %v1111_v4  ;;  %v1117_v10 = vld [vmem:[%s1243_s28 + $0x50] sm:$0xff]   ;;  %v1119_v12 = vld [vmem:[%s1243_s28 + $0x58] sm:$0xff]  }
  0x15   : > { %293 = vst.msk [vmem:[#allocation2 + $0xe0] sm:$0xff] %vm264_vm0, %v1152_v3  ;;  %294 = vst.msk [vmem:[#allocation2 + $0xe8] sm:$0xff] %vm264_vm0, %v1152_v3  ;;  %v1120_v13 = vld [vmem:[%s1243_s28 + $0x20] sm:$0xff]   ;;  %v1122_v15 = vld [vmem:[%s1243_s28 + $0x28] sm:$0xff]  }
  0x16   : > { %295 = vst.msk [vmem:[#allocation2 + $0xf0] sm:$0xff] %vm264_vm0, %v1152_v3  ;;  %296 = vst.msk [vmem:[#allocation2 + $0xf8] sm:$0xff] %vm264_vm0, %v1152_v3  ;;  %v1121_v14 = vld [vmem:[%s1243_s28 + $0x60] sm:$0xff]   ;;  %v1123_v16 = vld [vmem:[%s1243_s28 + $0x68] sm:$0xff]  }
  0x17   : > { %1044 = vmatmul.mubr.msk.bf16.vlgmr.msra.gmra.mrb[0].mxu0 %vm473_vm1, %v1114_v7  ;;  %1060 = vmatmul.mubr.msk.bf16.vlgmr.msra.gmra.mrb[0].mxu1 %vm473_vm1, %v1115_v8  ;;  %v1124_v17 = vld [vmem:[%s1243_s28 + $0x30] sm:$0xff]   ;;  %v1126_v19 = vld [vmem:[%s1243_s28 + $0x38] sm:$0xff]   ;;  %v313_v24 = vld [vmem:[#allocation2 + $0x80] sm:$0xff] }
  0x18   : > { %1047 = vmatprep.mubr.msk.bf16.mxu0 %vm473_vm1, %v1116_v9  ;;  %1063 = vmatprep.mubr.msk.bf16.mxu1 %vm473_vm1, %v1117_v10  ;;  %v1125_v18 = vld [vmem:[%s1243_s28 + $0x70] sm:$0xff]   ;;  %v1127_v20 = vld [vmem:[%s1243_s28 + $0x78] sm:$0xff]   ;;  %v314_v34 = vld [vmem:[#allocation2 + $0x88] sm:$0xff] }
  0x19   : > { %v315_v22 = vld [vmem:[#allocation2 + $0x90] sm:$0xff]  ;;  %v316_v28 = vld [vmem:[#allocation2 + $0x98] sm:$0xff]  ;;  %v317_v48 = vld [vmem:[#allocation2 + $0xa0] sm:$0xff] }
  0x1a   : > { %v303_v45 = vld [vmem:[#allocation2 + $0x30] sm:$0xff]  ;;  %v304_v52 = vld [vmem:[#allocation2 + $0x38] sm:$0xff]  ;;  %v318_v59 = vld [vmem:[#allocation2 + $0xa8] sm:$0xff] }
  0x1b   : > { %v319_v46 = vld [vmem:[#allocation2 + $0xb0] sm:$0xff]  ;;  %v320_v53 = vld [vmem:[#allocation2 + $0xb8] sm:$0xff] }
  0x1f   : > { %1048 = vmatmul.mubr.msk.bf16.gmra.mrb[4].mxu0 %vm473_vm1, %v1118_v11  ;;  %1064 = vmatmul.mubr.msk.bf16.gmra.mrb[4].mxu1 %vm473_vm1, %v1119_v12 }
  0x20   : > { %1051 = vmatprep.mubr.msk.bf16.mxu0 %vm473_vm1, %v1120_v13  ;;  %1067 = vmatprep.mubr.msk.bf16.mxu1 %vm473_vm1, %v1121_v14 }
  0x27   : > { %1052 = vmatmul.mubr.msk.bf16.gmra.mrb[8].mxu0 %vm473_vm1, %v1122_v15  ;;  %1068 = vmatmul.mubr.msk.bf16.gmra.mrb[8].mxu1 %vm473_vm1, %v1123_v16 }
  0x28   : > { %1055 = vmatprep.mubr.msk.bf16.mxu0 %vm473_vm1, %v1124_v17  ;;  %1071 = vmatprep.mubr.msk.bf16.mxu1 %vm473_vm1, %v1125_v18 }
  0x2f   : > { %1056 = vmatmul.mubr.msk.bf16.gmra.mrb[12].mxu0 %vm473_vm1, %v1126_v19  ;;  %1072 = vmatmul.mubr.msk.bf16.gmra.mrb[12].mxu1 %vm473_vm1, %v1127_v20 }
  0xea   : > { %v1045_v25 = vpop.f32.mrb[0].mxu0  ;;  %v1061_v26 = vpop.f32.mrb[0].mxu1 }
  0xeb   : > { %v685_v29 = vadd.f32 %v1045_v25, %v299_v21  ;;  %v701_v30 = vadd.f32 %v1061_v26, %v315_v22  ;;  %v556_v31 = vpop.f32.mrb[1].mxu0  ;;  %v620_v32 = vpop.f32.mrb[1].mxu1  ;;  %v307_v22 = vld [vmem:[#allocation2 + $0x50] sm:$0xff]  ;;  %v321_v25 = vld [vmem:[#allocation2 + $0xc0] sm:$0xff] }
  0xec   : > { %v683_v35 = vadd.f32 %v556_v31, %v297_v23  ;;  %v699_v36 = vadd.f32 %v620_v32, %v313_v24  ;;  %v1046_v37 = vpop.f32.mrb[2].mxu0  ;;  %v1062_v38 = vpop.f32.mrb[2].mxu1  ;;  %v323_v23 = vld [vmem:[#allocation2 + $0xd0] sm:$0xff]  ;;  %v305_v24 = vld [vmem:[#allocation2 + $0x40] sm:$0xff] }
  0xed   : > { %718 = vst.msk [vmem:[#allocation2 + $0x10] sm:$0xff] %vm264_vm0, %v685_v29  ;;  %734 = vst.msk [vmem:[#allocation2 + $0x90] sm:$0xff] %vm264_vm0, %v701_v30  ;;  %v686_v39 = vadd.f32 %v1046_v37, %v300_v27  ;;  %v702_v40 = vadd.f32 %v1062_v38, %v316_v28  ;;  %v559_v41 = vpop.f32.mrb[3].mxu0  ;;  %v623_v42 = vpop.f32.mrb[3].mxu1  ;;  %v308_v28 = vld [vmem:[#allocation2 + $0x58] sm:$0xff] }
  0xee   : > { %716 = vst.msk [vmem:[#allocation2] sm:$0xff] %vm264_vm0, %v683_v35  ;;  %732 = vst.msk [vmem:[#allocation2 + $0x80] sm:$0xff] %vm264_vm0, %v699_v36  ;;  %v684_v43 = vadd.f32 %v559_v41, %v298_v33  ;;  %v700_v44 = vadd.f32 %v623_v42, %v314_v34  ;;  %v324_v29 = vld [vmem:[#allocation2 + $0xd8] sm:$0xff]  ;;  %v306_v34 = vld [vmem:[#allocation2 + $0x48] sm:$0xff] }
  0xef   : > { %719 = vst.msk [vmem:[#allocation2 + $0x18] sm:$0xff] %vm264_vm0, %v686_v39  ;;  %735 = vst.msk [vmem:[#allocation2 + $0x98] sm:$0xff] %vm264_vm0, %v702_v40  ;;  %v322_v35 = vld [vmem:[#allocation2 + $0xc8] sm:$0xff] }
  0xf0   : > { %717 = vst.msk [vmem:[#allocation2 + $0x8] sm:$0xff] %vm264_vm0, %v684_v43  ;;  %733 = vst.msk [vmem:[#allocation2 + $0x88] sm:$0xff] %vm264_vm0, %v700_v44 }
  0xf2   : > { %v1049_v50 = vpop.f32.mrb[4].mxu0  ;;  %v1065_v51 = vpop.f32.mrb[4].mxu1 }
  0xf3   : > { %v689_v54 = vadd.f32 %v1049_v50, %v303_v45  ;;  %v705_v55 = vadd.f32 %v1065_v51, %v319_v46  ;;  %v572_v56 = vpop.f32.mrb[5].mxu0  ;;  %v636_v57 = vpop.f32.mrb[5].mxu1 }
  0xf4   : > { %v753_v60 = vld [vmem:[#allocation2 + $0x10] sm:$0xff]  ;;  %v687_v62 = vadd.f32 %v572_v56, %v301_v47  ;;  %v703_v63 = vadd.f32 %v636_v57, %v317_v48  ;;  %v1050_v0 = vpop.f32.mrb[6].mxu0  ;;  %v1066_v1 = vpop.f32.mrb[6].mxu1 }
  0xf5   : > { %v769_v61 = vld [vmem:[#allocation2 + $0x90] sm:$0xff]  ;;  %v792_v2 = vadd.f32 %v1289_v49, %v753_v60  ;;  %v751_v4 = vld [vmem:[#allocation2] sm:$0xff]  ;;  %722 = vst.msk [vmem:[#allocation2 + $0x30] sm:$0xff] %vm264_vm0, %v689_v54  ;;  %738 = vst.msk [vmem:[#allocation2 + $0xb0] sm:$0xff] %vm264_vm0, %v705_v55  ;;  %v690_v6 = vadd.f32 %v1050_v0, %v304_v52  ;;  %v706_v7 = vadd.f32 %v1066_v1, %v320_v53  ;;  %v575_v8 = vpop.f32.mrb[7].mxu0  ;;  %v639_v9 = vpop.f32.mrb[7].mxu1 }
  0xf6   : > { %v808_v3 = vadd.f32 %v1289_v49, %v769_v61  ;;  %v767_v5 = vld [vmem:[#allocation2 + $0x80] sm:$0xff]  ;;  %v790_v10 = vadd.f32 %v1289_v49, %v751_v4  ;;  %v754_v12 = vld [vmem:[#allocation2 + $0x18] sm:$0xff]  ;;  %720 = vst.msk [vmem:[#allocation2 + $0x20] sm:$0xff] %vm264_vm0, %v687_v62  ;;  %736 = vst.msk [vmem:[#allocation2 + $0xa0] sm:$0xff] %vm264_vm0, %v703_v63  ;;  %v688_v14 = vadd.f32 %v575_v8, %v302_v58 }
  0xf7   : > { %v806_v11 = vadd.f32 %v1289_v49, %v767_v5  ;;  %v770_v13 = vld [vmem:[#allocation2 + $0x98] sm:$0xff]  ;;  %v704_v15 = vadd.f32 %v639_v9, %v318_v59  ;;  %824 = vst.msk [vmem:[%s1294_s7 + $0x10] sm:$0xff] %vm264_vm0, %v792_v2  ;;  %v793_v16 = vadd.f32 %v1289_v49, %v754_v12  ;;  %v752_v18 = vld [vmem:[#allocation2 + $0x8] sm:$0xff]  ;;  %723 = vst.msk [vmem:[#allocation2 + $0x38] sm:$0xff] %vm264_vm0, %v690_v6 }
  0xf8   : > { %840 = vst.msk [vmem:[%s1294_s7 + $0x90] sm:$0xff] %vm264_vm0, %v808_v3  ;;  %v809_v17 = vadd.f32 %v1289_v49, %v770_v13  ;;  %v768_v19 = vld [vmem:[#allocation2 + $0x88] sm:$0xff]  ;;  %739 = vst.msk [vmem:[#allocation2 + $0xb8] sm:$0xff] %vm264_vm0, %v706_v7  ;;  %v791_v20 = vadd.f32 %v1289_v49, %v752_v18  ;;  %v311_v63 = vld [vmem:[#allocation2 + $0x70] sm:$0xff] }
  0xf9   : > { %822 = vst.msk [vmem:[%s1294_s7] sm:$0xff] %vm264_vm0, %v790_v10  ;;  %838 = vst.msk [vmem:[%s1294_s7 + $0x80] sm:$0xff] %vm264_vm0, %v806_v11  ;;  %v807_v21 = vadd.f32 %v1289_v49, %v768_v19  ;;  %v327_v0 = vld [vmem:[#allocation2 + $0xf0] sm:$0xff]  ;;  %v309_v1 = vld [vmem:[#allocation2 + $0x60] sm:$0xff] }
  0xfa   : > { %721 = vst.msk [vmem:[#allocation2 + $0x28] sm:$0xff] %vm264_vm0, %v688_v14  ;;  %737 = vst.msk [vmem:[#allocation2 + $0xa8] sm:$0xff] %vm264_vm0, %v704_v15  ;;  %v1053_v26 = vpop.f32.mrb[8].mxu0  ;;  %v1069_v27 = vpop.f32.mrb[8].mxu1  ;;  %v325_v2 = vld [vmem:[#allocation2 + $0xe0] sm:$0xff]  ;;  %v312_v5 = vld [vmem:[#allocation2 + $0x78] sm:$0xff] }
  0xfb   : > { %825 = vst.msk [vmem:[%s1294_s7 + $0x18] sm:$0xff] %vm264_vm0, %v793_v16  ;;  %841 = vst.msk [vmem:[%s1294_s7 + $0x98] sm:$0xff] %vm264_vm0, %v809_v17  ;;  %v693_v30 = vadd.f32 %v1053_v26, %v307_v22  ;;  %v709_v31 = vadd.f32 %v1069_v27, %v323_v23  ;;  %v588_v32 = vpop.f32.mrb[9].mxu0  ;;  %v652_v33 = vpop.f32.mrb[9].mxu1  ;;  %v328_v6 = vld [vmem:[#allocation2 + $0xf8] sm:$0xff]  ;;  %v310_v11 = vld [vmem:[#allocation2 + $0x68] sm:$0xff] }
  0xfc   : > { %823 = vst.msk [vmem:[%s1294_s7 + $0x8] sm:$0xff] %vm264_vm0, %v791_v20  ;;  %839 = vst.msk [vmem:[%s1294_s7 + $0x88] sm:$0xff] %vm264_vm0, %v807_v21  ;;  %v757_v36 = vld [vmem:[#allocation2 + $0x30] sm:$0xff]  ;;  %v691_v38 = vadd.f32 %v588_v32, %v305_v24  ;;  %v707_v39 = vadd.f32 %v652_v33, %v321_v25  ;;  %v1054_v40 = vpop.f32.mrb[10].mxu0  ;;  %v1070_v41 = vpop.f32.mrb[10].mxu1  ;;  %v326_v12 = vld [vmem:[#allocation2 + $0xe8] sm:$0xff] }
  0xfd   : > { %v773_v37 = vld [vmem:[#allocation2 + $0xb0] sm:$0xff]  ;;  %v796_v42 = vadd.f32 %v1289_v49, %v757_v36  ;;  %v755_v44 = vld [vmem:[#allocation2 + $0x20] sm:$0xff]  ;;  %726 = vst.msk [vmem:[#allocation2 + $0x50] sm:$0xff] %vm264_vm0, %v693_v30  ;;  %742 = vst.msk [vmem:[#allocation2 + $0xd0] sm:$0xff] %vm264_vm0, %v709_v31  ;;  %v694_v46 = vadd.f32 %v1054_v40, %v308_v28  ;;  %v710_v47 = vadd.f32 %v1070_v41, %v324_v29  ;;  %v591_v48 = vpop.f32.mrb[11].mxu0  ;;  %v655_v50 = vpop.f32.mrb[11].mxu1 }
  0xfe   : > { %v812_v43 = vadd.f32 %v1289_v49, %v773_v37  ;;  %v771_v45 = vld [vmem:[#allocation2 + $0xa0] sm:$0xff]  ;;  %v794_v51 = vadd.f32 %v1289_v49, %v755_v44  ;;  %v758_v53 = vld [vmem:[#allocation2 + $0x38] sm:$0xff]  ;;  %724 = vst.msk [vmem:[#allocation2 + $0x40] sm:$0xff] %vm264_vm0, %v691_v38  ;;  %740 = vst.msk [vmem:[#allocation2 + $0xc0] sm:$0xff] %vm264_vm0, %v707_v39  ;;  %v692_v55 = vadd.f32 %v591_v48, %v306_v34 }
  0xff   : > { %v810_v52 = vadd.f32 %v1289_v49, %v771_v45  ;;  %v774_v54 = vld [vmem:[#allocation2 + $0xb8] sm:$0xff]  ;;  %v708_v56 = vadd.f32 %v655_v50, %v322_v35  ;;  %828 = vst.msk [vmem:[%s1294_s7 + $0x30] sm:$0xff] %vm264_vm0, %v796_v42  ;;  %v797_v57 = vadd.f32 %v1289_v49, %v758_v53  ;;  %727 = vst.msk [vmem:[#allocation2 + $0x58] sm:$0xff] %vm264_vm0, %v694_v46 }
 0x100   : > { %844 = vst.msk [vmem:[%s1294_s7 + $0xb0] sm:$0xff] %vm264_vm0, %v812_v43  ;;  %v813_v58 = vadd.f32 %v1289_v49, %v774_v54  ;;  %743 = vst.msk [vmem:[#allocation2 + $0xd8] sm:$0xff] %vm264_vm0, %v710_v47 }
 0x101   : > { %v756_v59 = vld [vmem:[#allocation2 + $0x28] sm:$0xff]  ;;  %826 = vst.msk [vmem:[%s1294_s7 + $0x20] sm:$0xff] %vm264_vm0, %v794_v51  ;;  %842 = vst.msk [vmem:[%s1294_s7 + $0xa0] sm:$0xff] %vm264_vm0, %v810_v52 }
 0x102   : > { %v772_v60 = vld [vmem:[#allocation2 + $0xa8] sm:$0xff]  ;;  %v795_v61 = vadd.f32 %v1289_v49, %v756_v59  ;;  %725 = vst.msk [vmem:[#allocation2 + $0x48] sm:$0xff] %vm264_vm0, %v692_v55  ;;  %741 = vst.msk [vmem:[#allocation2 + $0xc8] sm:$0xff] %vm264_vm0, %v708_v56  ;;  %v1057_v3 = vpop.f32.mrb[12].mxu0  ;;  %v1073_v4 = vpop.f32.mrb[12].mxu1 }
 0x103   : > { %v811_v62 = vadd.f32 %v1289_v49, %v772_v60  ;;  %829 = vst.msk [vmem:[%s1294_s7 + $0x38] sm:$0xff] %vm264_vm0, %v797_v57  ;;  %845 = vst.msk [vmem:[%s1294_s7 + $0xb8] sm:$0xff] %vm264_vm0, %v813_v58  ;;  %v697_v7 = vadd.f32 %v1057_v3, %v311_v63  ;;  %v713_v8 = vadd.f32 %v1073_v4, %v327_v0  ;;  %v604_v9 = vpop.f32.mrb[13].mxu0  ;;  %v668_v10 = vpop.f32.mrb[13].mxu1 }
 0x104   : > { %827 = vst.msk [vmem:[%s1294_s7 + $0x28] sm:$0xff] %vm264_vm0, %v795_v61  ;;  %v761_v13 = vld [vmem:[#allocation2 + $0x50] sm:$0xff]  ;;  %v695_v15 = vadd.f32 %v604_v9, %v309_v1  ;;  %v711_v16 = vadd.f32 %v668_v10, %v325_v2  ;;  %v1058_v17 = vpop.f32.mrb[14].mxu0  ;;  %v1074_v18 = vpop.f32.mrb[14].mxu1 }
 0x105   : > { %843 = vst.msk [vmem:[%s1294_s7 + $0xa8] sm:$0xff] %vm264_vm0, %v811_v62  ;;  %v777_v14 = vld [vmem:[#allocation2 + $0xd0] sm:$0xff]  ;;  %v800_v19 = vadd.f32 %v1289_v49, %v761_v13  ;;  %v759_v21 = vld [vmem:[#allocation2 + $0x40] sm:$0xff]  ;;  %730 = vst.msk [vmem:[#allocation2 + $0x70] sm:$0xff] %vm264_vm0, %v697_v7  ;;  %v698_v23 = vadd.f32 %v1058_v17, %v312_v5  ;;  %v714_v24 = vadd.f32 %v1074_v18, %v328_v6  ;;  %v607_v25 = vpop.f32.mrb[15].mxu0  ;;  %v671_v26 = vpop.f32.mrb[15].mxu1 }
 0x106   : > { %v816_v20 = vadd.f32 %v1289_v49, %v777_v14  ;;  %v775_v22 = vld [vmem:[#allocation2 + $0xc0] sm:$0xff]  ;;  %746 = vst.msk [vmem:[#allocation2 + $0xf0] sm:$0xff] %vm264_vm0, %v713_v8  ;;  %v798_v27 = vadd.f32 %v1289_v49, %v759_v21  ;;  %v762_v29 = vld [vmem:[#allocation2 + $0x58] sm:$0xff]  ;;  %728 = vst.msk [vmem:[#allocation2 + $0x60] sm:$0xff] %vm264_vm0, %v695_v15  ;;  %v696_v31 = vadd.f32 %v607_v25, %v310_v11 }
 0x107   : > { %v814_v28 = vadd.f32 %v1289_v49, %v775_v22  ;;  %v778_v30 = vld [vmem:[#allocation2 + $0xd8] sm:$0xff]  ;;  %744 = vst.msk [vmem:[#allocation2 + $0xe0] sm:$0xff] %vm264_vm0, %v711_v16  ;;  %v712_v32 = vadd.f32 %v671_v26, %v326_v12  ;;  %832 = vst.msk [vmem:[%s1294_s7 + $0x50] sm:$0xff] %vm264_vm0, %v800_v19  ;;  %v801_v33 = vadd.f32 %v1289_v49, %v762_v29 }
 0x108   : > { %848 = vst.msk [vmem:[%s1294_s7 + $0xd0] sm:$0xff] %vm264_vm0, %v816_v20  ;;  %v817_v34 = vadd.f32 %v1289_v49, %v778_v30  ;;  %731 = vst.msk [vmem:[#allocation2 + $0x78] sm:$0xff] %vm264_vm0, %v698_v23 }
 0x109   : > { %v760_v35 = vld [vmem:[#allocation2 + $0x48] sm:$0xff]  ;;  %747 = vst.msk [vmem:[#allocation2 + $0xf8] sm:$0xff] %vm264_vm0, %v714_v24  ;;  %830 = vst.msk [vmem:[%s1294_s7 + $0x40] sm:$0xff] %vm264_vm0, %v798_v27 }
 0x10a   : > { %v776_v36 = vld [vmem:[#allocation2 + $0xc8] sm:$0xff]  ;;  %846 = vst.msk [vmem:[%s1294_s7 + $0xc0] sm:$0xff] %vm264_vm0, %v814_v28  ;;  %v799_v37 = vadd.f32 %v1289_v49, %v760_v35  ;;  %729 = vst.msk [vmem:[#allocation2 + $0x68] sm:$0xff] %vm264_vm0, %v696_v31 }
 0x10b   : > { %v815_v38 = vadd.f32 %v1289_v49, %v776_v36  ;;  %745 = vst.msk [vmem:[#allocation2 + $0xe8] sm:$0xff] %vm264_vm0, %v712_v32  ;;  %833 = vst.msk [vmem:[%s1294_s7 + $0x58] sm:$0xff] %vm264_vm0, %v801_v33 }
 0x10c   : > { %849 = vst.msk [vmem:[%s1294_s7 + $0xd8] sm:$0xff] %vm264_vm0, %v817_v34  ;;  %831 = vst.msk [vmem:[%s1294_s7 + $0x48] sm:$0xff] %vm264_vm0, %v799_v37  ;;  %v765_v39 = vld [vmem:[#allocation2 + $0x70] sm:$0xff] }
 0x10d   : > { %847 = vst.msk [vmem:[%s1294_s7 + $0xc8] sm:$0xff] %vm264_vm0, %v815_v38  ;;  %v781_v40 = vld [vmem:[#allocation2 + $0xf0] sm:$0xff]  ;;  %v804_v41 = vadd.f32 %v1289_v49, %v765_v39  ;;  %v763_v43 = vld [vmem:[#allocation2 + $0x60] sm:$0xff] }
 0x10e   : > { %v820_v42 = vadd.f32 %v1289_v49, %v781_v40  ;;  %v779_v44 = vld [vmem:[#allocation2 + $0xe0] sm:$0xff]  ;;  %v802_v45 = vadd.f32 %v1289_v49, %v763_v43 }
 0x10f   : > { %v818_v46 = vadd.f32 %v1289_v49, %v779_v44  ;;  %v766_v47 = vld [vmem:[#allocation2 + $0x78] sm:$0xff]  ;;  %836 = vst.msk [vmem:[%s1294_s7 + $0x70] sm:$0xff] %vm264_vm0, %v804_v41 }
 0x110   : > { %v782_v48 = vld [vmem:[#allocation2 + $0xf8] sm:$0xff]  ;;  %852 = vst.msk [vmem:[%s1294_s7 + $0xf0] sm:$0xff] %vm264_vm0, %v820_v42  ;;  %v805_v50 = vadd.f32 %v1289_v49, %v766_v47  ;;  %834 = vst.msk [vmem:[%s1294_s7 + $0x60] sm:$0xff] %vm264_vm0, %v802_v45 }
 0x111   : > { %v821_v51 = vadd.f32 %v1289_v49, %v782_v48  ;;  %v764_v52 = vld [vmem:[#allocation2 + $0x68] sm:$0xff]  ;;  %850 = vst.msk [vmem:[%s1294_s7 + $0xe0] sm:$0xff] %vm264_vm0, %v818_v46 }
 0x112   : > { %v780_v53 = vld [vmem:[#allocation2 + $0xe8] sm:$0xff]  ;;  %v803_v54 = vadd.f32 %v1289_v49, %v764_v52  ;;  %837 = vst.msk [vmem:[%s1294_s7 + $0x78] sm:$0xff] %vm264_vm0, %v805_v50 }
 0x113   : > { %v819_v55 = vadd.f32 %v1289_v49, %v780_v53  ;;  %853 = vst.msk [vmem:[%s1294_s7 + $0xf8] sm:$0xff] %vm264_vm0, %v821_v51 }
 0x114   : > { %835 = vst.msk [vmem:[%s1294_s7 + $0x68] sm:$0xff] %vm264_vm0, %v803_v54 }
 0x115   : > { %851 = vst.msk [vmem:[%s1294_s7 + $0xe8] sm:$0xff] %vm264_vm0, %v819_v55 }
 0x116 PF: > { %s13_s14 = sadd.s32 1, %s1150_s14   ;;  %s1429_s12 = smov %s1146_s13 }
 0x117   : > { %p10_p5 = scmp.ge.s32.totalorder %s13_s14, 4   ;;  %s1430_s13 = smov %s1432_s15 }
 0x119   :  { %12 = sbr.rel (!%p10_p5) target bundleno = 2 (0x2), region = 76 }

// kernel: bottleneck_forward.17
= control target key start
LH: loop header
LB: loop body
LE: loop exit
PB: predicated region body
PF: predicated region fallthrough
CT: control target
= control target key end

     0   :  { %v51_v8 = vlaneseq  ;;  %vm110_vm0 = vcmask 261120   ;;  %s287_s1 = inlined_call_operand.vmem [shape: f32[1,32], index: 1, kind: input, shape index: {}]   ;;  %s288_s2 = inlined_call_operand.vmem [shape: f32[1,32], index: 2, kind: input, shape index: {}]   ;;  %s289_s3 = inlined_call_operand.vmem [shape: f32[1,32], index: 3, kind: input, shape index: {}]   ;;  %s290_s0 = inlined_call_operand.vmem [shape: f32[128,32], index: 0, kind: input, shape index: {}]   ;;  %s291_s4 = inlined_call_operand.vmem [shape: f32[1,32], index: 4, kind: input, shape index: {}]   ;;  %s292_s5 = inlined_call_operand.vmem [shape: f32[128,32], index: 5, kind: output, shape index: {}]  }
   0x1   :  { %v20_v0 = vld [vmem:[%s287_s1] sm:$0x1]  ;;  %v35_v16 = vld [vmem:[%s290_s0 + $0x8] sm:$0xff]  ;;  %v36_v17 = vld [vmem:[%s290_s0 + $0x10] sm:$0xff] }
   0x2   :  { %v22_v1 = vld [vmem:[%s288_s2] sm:$0x1]  ;;  %v21_v2 = vmul.f32 0.0078125, %v20_v0  ;;  %v52_v9 = vshrl.u32 %v51_v8, 7  ;;  %v37_v18 = vld [vmem:[%s290_s0 + $0x18] sm:$0xff]  ;;  %v39_v22 = vld [vmem:[%s290_s0 + $0x28] sm:$0xff] }
   0x3   :  { %v23_v3 = vmul.f32 0.0078125, %v22_v1  ;;  %v27_v10 = vld [vmem:[%s289_s3] sm:$0x1]  ;;  %v40_v23 = vld [vmem:[%s290_s0 + $0x30] sm:$0xff]  ;;  %v41_v24 = vld [vmem:[%s290_s0 + $0x38] sm:$0xff] }
   0x4   :  { %v24_v4 = vmul.f32 %v21_v2, %v21_v2  ;;  %v53_v11 = vsub.s32 0, %v52_v9  ;;  %v31_v14 = vld [vmem:[%s291_s4] sm:$0x1]  ;;  %v43_v26 = vld [vmem:[%s290_s0 + $0x48] sm:$0xff]  ;;  %v44_v27 = vld [vmem:[%s290_s0 + $0x50] sm:$0xff] }
   0x5   :  { %v34_v15 = vld [vmem:[%s290_s0] sm:$0xff]  ;;  %v45_v32 = vld [vmem:[%s290_s0 + $0x58] sm:$0xff]  ;;  %v47_v34 = vld [vmem:[%s290_s0 + $0x68] sm:$0xff] }
   0x6   :  { %v25_v5 = vsub.f32 %v23_v3, %v24_v4  ;;  %v38_v19 = vld [vmem:[%s290_s0 + $0x20] sm:$0xff]  ;;  %v48_v59 = vld [vmem:[%s290_s0 + $0x70] sm:$0xff]  ;;  %v49_v60 = vld [vmem:[%s290_s0 + $0x78] sm:$0xff] }
   0x7   :  { %v42_v25 = vld [vmem:[%s290_s0 + $0x40] sm:$0xff] }
   0x8   :  { %v26_v6 = vmax.f32 %v25_v5, 0.0  ;;  %v46_v33 = vld [vmem:[%s290_s0 + $0x60] sm:$0xff] }
   0xa   :  { %v28_v7 = vadd.f32 1e-05, %v26_v6 }
   0xc   :  { %131 = vrsqrt.f32 %v28_v7 }
  0x16   :  { %v132_v12 = vpop.eup %131 }
  0x17   :  { %v30_v13 = vmul.f32 %v132_v12, %v27_v10 }
  0x19   :  { %v32_v20 = vmul.f32 %v30_v13, %v21_v2  ;;  %v54_v21 = vrot.slane %v30_v13, %v53_v11 }
  0x1b   :  { %v33_v28 = vsub.f32 %v31_v14, %v32_v20  ;;  %v56_v29 = vmul.f32 %v54_v21, %v34_v15  ;;  %v57_v30 = vmul.f32 %v54_v21, %v35_v16  ;;  %v58_v31 = vmul.f32 %v54_v21, %v36_v17 }
  0x1c   :  { %v59_v35 = vmul.f32 %v54_v21, %v37_v18  ;;  %v60_v36 = vmul.f32 %v54_v21, %v38_v19  ;;  %v61_v37 = vmul.f32 %v54_v21, %v39_v22  ;;  %v62_v38 = vmul.f32 %v54_v21, %v40_v23 }
  0x1d   :  { %v76_v39 = vrot.slane %v33_v28, %v53_v11  ;;  %v63_v40 = vmul.f32 %v54_v21, %v41_v24  ;;  %v64_v41 = vmul.f32 %v54_v21, %v42_v25  ;;  %v65_v42 = vmul.f32 %v54_v21, %v43_v26 }
  0x1e   :  { %v66_v43 = vmul.f32 %v54_v21, %v44_v27  ;;  %v67_v44 = vmul.f32 %v54_v21, %v45_v32  ;;  %v68_v45 = vmul.f32 %v54_v21, %v46_v33  ;;  %v69_v46 = vmul.f32 %v54_v21, %v47_v34 }
  0x1f   :  { %v78_v47 = vadd.f32 %v76_v39, %v56_v29  ;;  %v79_v48 = vadd.f32 %v76_v39, %v57_v30  ;;  %v80_v49 = vadd.f32 %v76_v39, %v58_v31  ;;  %v81_v50 = vadd.f32 %v76_v39, %v59_v35 }
  0x20   :  { %v82_v51 = vadd.f32 %v76_v39, %v60_v36  ;;  %v83_v52 = vadd.f32 %v76_v39, %v61_v37  ;;  %v84_v53 = vadd.f32 %v76_v39, %v62_v38  ;;  %v85_v54 = vadd.f32 %v76_v39, %v63_v40 }
  0x21   :  { %v94_v55 = vmax.f32 %v78_v47, 0.0  ;;  %v95_v56 = vmax.f32 %v79_v48, 0.0  ;;  %v96_v57 = vmax.f32 %v80_v49, 0.0  ;;  %v97_v58 = vmax.f32 %v81_v50, 0.0 }
  0x22   :  { %v98_v61 = vmax.f32 %v82_v51, 0.0  ;;  %v99_v62 = vmax.f32 %v83_v52, 0.0  ;;  %v100_v63 = vmax.f32 %v84_v53, 0.0  ;;  %v101_v0 = vmax.f32 %v85_v54, 0.0 }
  0x23   :  { %111 = vst.msk [vmem:[%s292_s5] sm:$0xff] %vm110_vm0, %v94_v55  ;;  %112 = vst.msk [vmem:[%s292_s5 + $0x8] sm:$0xff] %vm110_vm0, %v95_v56  ;;  %v86_v1 = vadd.f32 %v76_v39, %v64_v41  ;;  %v87_v2 = vadd.f32 %v76_v39, %v65_v42  ;;  %v88_v3 = vadd.f32 %v76_v39, %v66_v43 }
  0x24   :  { %113 = vst.msk [vmem:[%s292_s5 + $0x10] sm:$0xff] %vm110_vm0, %v96_v57  ;;  %114 = vst.msk [vmem:[%s292_s5 + $0x18] sm:$0xff] %vm110_vm0, %v97_v58  ;;  %v89_v4 = vadd.f32 %v76_v39, %v67_v44  ;;  %v90_v5 = vadd.f32 %v76_v39, %v68_v45  ;;  %v91_v6 = vadd.f32 %v76_v39, %v69_v46 }
  0x25   :  { %115 = vst.msk [vmem:[%s292_s5 + $0x20] sm:$0xff] %vm110_vm0, %v98_v61  ;;  %116 = vst.msk [vmem:[%s292_s5 + $0x28] sm:$0xff] %vm110_vm0, %v99_v62  ;;  %v70_v7 = vmul.f32 %v54_v21, %v48_v59  ;;  %v71_v8 = vmul.f32 %v54_v21, %v49_v60  ;;  %v102_v9 = vmax.f32 %v86_v1, 0.0  ;;  %v103_v10 = vmax.f32 %v87_v2, 0.0 }
  0x26   :  { %117 = vst.msk [vmem:[%s292_s5 + $0x30] sm:$0xff] %vm110_vm0, %v100_v63  ;;  %118 = vst.msk [vmem:[%s292_s5 + $0x38] sm:$0xff] %vm110_vm0, %v101_v0  ;;  %v104_v11 = vmax.f32 %v88_v3, 0.0  ;;  %v105_v12 = vmax.f32 %v89_v4, 0.0  ;;  %v106_v13 = vmax.f32 %v90_v5, 0.0  ;;  %v107_v14 = vmax.f32 %v91_v6, 0.0 }
  0x27   :  { %v92_v15 = vadd.f32 %v76_v39, %v70_v7  ;;  %v93_v16 = vadd.f32 %v76_v39, %v71_v8  ;;  %119 = vst.msk [vmem:[%s292_s5 + $0x40] sm:$0xff] %vm110_vm0, %v102_v9  ;;  %120 = vst.msk [vmem:[%s292_s5 + $0x48] sm:$0xff] %vm110_vm0, %v103_v10 }
  0x28   :  { %121 = vst.msk [vmem:[%s292_s5 + $0x50] sm:$0xff] %vm110_vm0, %v104_v11  ;;  %122 = vst.msk [vmem:[%s292_s5 + $0x58] sm:$0xff] %vm110_vm0, %v105_v12 }
  0x29   :  { %123 = vst.msk [vmem:[%s292_s5 + $0x60] sm:$0xff] %vm110_vm0, %v106_v13  ;;  %124 = vst.msk [vmem:[%s292_s5 + $0x68] sm:$0xff] %vm110_vm0, %v107_v14  ;;  %v108_v17 = vmax.f32 %v92_v15, 0.0  ;;  %v109_v18 = vmax.f32 %v93_v16, 0.0 }
  0x2b   :  { %125 = vst.msk [vmem:[%s292_s5 + $0x70] sm:$0xff] %vm110_vm0, %v108_v17  ;;  %126 = vst.msk [vmem:[%s292_s5 + $0x78] sm:$0xff] %vm110_vm0, %v109_v18 }

// kernel: bottleneck_forward.16
= control target key start
LH: loop header
LB: loop body
LE: loop exit
PB: predicated region body
PF: predicated region fallthrough
CT: control target
= control target key end

     0   :  { %vm14_vm0 = vcmask 253952   ;;  %vm34_vm1 = vcmask 261120   ;;  %v140_v0 = vmov 0.0   ;;  %s258_s0 = inlined_call_operand.vmem [shape: f32[128,32], index: 0, kind: input, shape index: {}]   ;;  %s259_s1 = inlined_call_operand.vmem [shape: f32[1,32], index: 1, kind: output, shape index: {0}]   ;;  %s260_s2 = inlined_call_operand.vmem [shape: f32[1,32], index: 2, kind: output, shape index: {1}]  }
   0x1   :  { %15 = vst.msk [vmem:[%s259_s1] sm:$0x1] %vm14_vm0, %v140_v0  ;;  %v17_v1 = vld [vmem:[%s258_s0] sm:$0xff]  ;;  %v18_v2 = vld [vmem:[%s258_s0 + $0x8] sm:$0xff]  ;;  %v19_v3 = vld [vmem:[%s258_s0 + $0x10] sm:$0xff] }
   0x2   :  { %16 = vst.msk [vmem:[%s260_s2] sm:$0x1] %vm14_vm0, %v140_v0  ;;  %v35_v4 = vsel %vm34_vm1, %v17_v1, 0.0  ;;  %v36_v5 = vsel %vm34_vm1, %v18_v2, 0.0  ;;  %v38_v6 = vsel %vm34_vm1, %v19_v3, 0.0  ;;  %v20_v7 = vld [vmem:[%s258_s0 + $0x18] sm:$0xff]  ;;  %v76_v15 = vmul.f32 %v17_v1, %v17_v1 }
   0x3   :  { %v37_v8 = vadd.f32 %v36_v5, %v35_v4  ;;  %v40_v9 = vsel %vm34_vm1, %v20_v7, 0.0  ;;  %v21_v10 = vld [vmem:[%s258_s0 + $0x20] sm:$0xff]  ;;  %v22_v13 = vld [vmem:[%s258_s0 + $0x28] sm:$0xff]  ;;  %v77_v16 = vmul.f32 %v18_v2, %v18_v2  ;;  %v78_v17 = vmul.f32 %v19_v3, %v19_v3  ;;  %v23_v19 = vld [vmem:[%s258_s0 + $0x30] sm:$0xff] }
   0x4   :  { %v42_v12 = vsel %vm34_vm1, %v21_v10, 0.0  ;;  %v44_v18 = vsel %vm34_vm1, %v22_v13, 0.0  ;;  %v79_v21 = vmul.f32 %v20_v7, %v20_v7  ;;  %v46_v22 = vsel %vm34_vm1, %v23_v19, 0.0  ;;  %v24_v24 = vld [vmem:[%s258_s0 + $0x38] sm:$0xff]  ;;  %v25_v31 = vld [vmem:[%s258_s0 + $0x40] sm:$0xff]  ;;  %v26_v37 = vld [vmem:[%s258_s0 + $0x48] sm:$0xff] }
   0x5   :  { %v39_v11 = vadd.f32 %v38_v6, %v37_v8  ;;  %v80_v23 = vmul.f32 %v21_v10, %v21_v10  ;;  %v92_v26 = vsel %vm34_vm1, %v76_v15, 0.0  ;;  %v93_v27 = vsel %vm34_vm1, %v77_v16, 0.0  ;;  %v27_v43 = vld [vmem:[%s258_s0 + $0x50] sm:$0xff]  ;;  %v28_v49 = vld [vmem:[%s258_s0 + $0x58] sm:$0xff]  ;;  %v29_v55 = vld [vmem:[%s258_s0 + $0x60] sm:$0xff] }
   0x6   :  { %v95_v28 = vsel %vm34_vm1, %v78_v17, 0.0  ;;  %v48_v29 = vsel %vm34_vm1, %v24_v24, 0.0  ;;  %v94_v30 = vadd.f32 %v93_v27, %v92_v26  ;;  %v81_v33 = vmul.f32 %v22_v13, %v22_v13  ;;  %v30_v61 = vld [vmem:[%s258_s0 + $0x68] sm:$0xff]  ;;  %v31_v3 = vld [vmem:[%s258_s0 + $0x70] sm:$0xff] }
   0x7   :  { %v41_v14 = vadd.f32 %v40_v9, %v39_v11  ;;  %v97_v34 = vsel %vm34_vm1, %v79_v21, 0.0  ;;  %v50_v35 = vsel %vm34_vm1, %v25_v31, 0.0  ;;  %v82_v39 = vmul.f32 %v23_v19, %v23_v19  ;;  %v32_v9 = vld [vmem:[%s258_s0 + $0x78] sm:$0xff] }
   0x8   :  { %v96_v36 = vadd.f32 %v95_v28, %v94_v30  ;;  %v99_v40 = vsel %vm34_vm1, %v80_v23, 0.0  ;;  %v52_v41 = vsel %vm34_vm1, %v26_v37, 0.0  ;;  %v83_v45 = vmul.f32 %v24_v24, %v24_v24 }
   0x9   :  { %v43_v20 = vadd.f32 %v42_v12, %v41_v14  ;;  %v101_v46 = vsel %vm34_vm1, %v81_v33, 0.0  ;;  %v54_v47 = vsel %vm34_vm1, %v27_v43, 0.0  ;;  %v84_v51 = vmul.f32 %v25_v31, %v25_v31 }
   0xa   :  { %v98_v42 = vadd.f32 %v97_v34, %v96_v36  ;;  %v103_v52 = vsel %vm34_vm1, %v82_v39, 0.0  ;;  %v56_v53 = vsel %vm34_vm1, %v28_v49, 0.0  ;;  %v85_v57 = vmul.f32 %v26_v37, %v26_v37  ;;  %v33_v36 = vld [vmem:[%s259_s1] sm:$0x1] }
   0xb   :  { %v45_v25 = vadd.f32 %v44_v18, %v43_v20  ;;  %v105_v58 = vsel %vm34_vm1, %v83_v45, 0.0  ;;  %v58_v59 = vsel %vm34_vm1, %v29_v55, 0.0  ;;  %v86_v63 = vmul.f32 %v27_v43, %v27_v43 }
   0xc   :  { %v100_v48 = vadd.f32 %v99_v40, %v98_v42  ;;  %v107_v0 = vsel %vm34_vm1, %v84_v51, 0.0  ;;  %v60_v1 = vsel %vm34_vm1, %v30_v61, 0.0  ;;  %v87_v5 = vmul.f32 %v28_v49, %v28_v49 }
   0xd   :  { %v47_v32 = vadd.f32 %v46_v22, %v45_v25  ;;  %v109_v6 = vsel %vm34_vm1, %v85_v57, 0.0  ;;  %v62_v7 = vsel %vm34_vm1, %v31_v3, 0.0  ;;  %v88_v11 = vmul.f32 %v29_v55, %v29_v55 }
   0xe   :  { %v102_v54 = vadd.f32 %v101_v46, %v100_v48  ;;  %v111_v12 = vsel %vm34_vm1, %v86_v63, 0.0  ;;  %v64_v13 = vsel %vm34_vm1, %v32_v9, 0.0  ;;  %v89_v16 = vmul.f32 %v30_v61, %v30_v61 }
   0xf   :  { %v49_v38 = vadd.f32 %v48_v29, %v47_v32  ;;  %v113_v17 = vsel %vm34_vm1, %v87_v5, 0.0  ;;  %v90_v20 = vmul.f32 %v31_v3, %v31_v3  ;;  %v115_v21 = vsel %vm34_vm1, %v88_v11, 0.0 }
  0x10   :  { %v104_v60 = vadd.f32 %v103_v52, %v102_v54  ;;  %v91_v24 = vmul.f32 %v32_v9, %v32_v9  ;;  %v117_v25 = vsel %vm34_vm1, %v89_v16, 0.0 }
  0x11   :  { %v51_v44 = vadd.f32 %v50_v35, %v49_v38  ;;  %v119_v28 = vsel %vm34_vm1, %v90_v20, 0.0 }
  0x12   :  { %v106_v2 = vadd.f32 %v105_v58, %v104_v60  ;;  %v121_v31 = vsel %vm34_vm1, %v91_v24, 0.0 }
  0x13   :  { %v53_v50 = vadd.f32 %v52_v41, %v51_v44  ;;  %v75_v44 = vld [vmem:[%s260_s2] sm:$0x1] }
  0x14   :  { %v108_v8 = vadd.f32 %v107_v0, %v106_v2 }
  0x15   :  { %v55_v56 = vadd.f32 %v54_v47, %v53_v50 }
  0x16   :  { %v110_v14 = vadd.f32 %v109_v6, %v108_v8 }
  0x17   :  { %v57_v62 = vadd.f32 %v56_v53, %v55_v56 }
  0x18   :  { %v112_v18 = vadd.f32 %v111_v12, %v110_v14 }
  0x19   :  { %v59_v4 = vadd.f32 %v58_v59, %v57_v62 }
  0x1a   :  { %v114_v22 = vadd.f32 %v113_v17, %v112_v18 }
  0x1b   :  { %v61_v10 = vadd.f32 %v60_v1, %v59_v4 }
  0x1c   :  { %v116_v26 = vadd.f32 %v115_v21, %v114_v22 }
  0x1d   :  { %v63_v15 = vadd.f32 %v62_v7, %v61_v10 }
  0x1e   :  { %v118_v29 = vadd.f32 %v117_v25, %v116_v26 }
  0x1f   :  { %v65_v19 = vadd.f32 %v64_v13, %v63_v15 }
  0x20   :  { %v120_v32 = vadd.f32 %v119_v28, %v118_v29 }
  0x21   :  { %v66_v23 = vrot.slane %v65_v19, 4 }
  0x22   :  { %v122_v34 = vadd.f32 %v121_v31, %v120_v32 }
  0x23   :  { %v67_v27 = vadd.f32 %v66_v23, %v65_v19 }
  0x24   :  { %v123_v37 = vrot.slane %v122_v34, 4 }
  0x25   :  { %v68_v30 = vrot.slane %v67_v27, 2 }
  0x26   :  { %v124_v39 = vadd.f32 %v123_v37, %v122_v34 }
  0x27   :  { %v69_v33 = vadd.f32 %v68_v30, %v67_v27 }
  0x28   :  { %v125_v41 = vrot.slane %v124_v39, 2 }
  0x29   :  { %v70_v35 = vrot.slane %v69_v33, 1 }
  0x2a   :  { %v126_v42 = vadd.f32 %v125_v41, %v124_v39 }
  0x2b   :  { %v71_v38 = vadd.f32 %v70_v35, %v69_v33 }
  0x2c   :  { %v127_v43 = vrot.slane %v126_v42, 1 }
  0x2d   :  { %v72_v40 = vadd.f32 %v71_v38, %v33_v36 }
  0x2e   :  { %v128_v45 = vadd.f32 %v127_v43, %v126_v42 }
  0x2f   :  { %74 = vst.msk [vmem:[%s259_s1] sm:$0x1] %vm14_vm0, %v72_v40 }
  0x30   :  { %v129_v46 = vadd.f32 %v128_v45, %v75_v44 }
  0x32   :  { %130 = vst.msk [vmem:[%s260_s2] sm:$0x1] %vm14_vm0, %v129_v46 }

// kernel: bottleneck_forward.18
= control target key start
LH: loop header
LB: loop body
LE: loop exit
PB: predicated region body
PF: predicated region fallthrough
CT: control target
= control target key end

     0   :  { %vm123_vm0 = vcmask 261120   ;;  %s511_s1 = inlined_call_operand.vmem [shape: bf16[32,128], index: 1, kind: input, shape index: {}]   ;;  %s512_s0 = inlined_call_operand.vmem [shape: bf16[128,32], index: 0, kind: input, shape index: {}]   ;;  %s513_s2 = inlined_call_operand.vmem [shape: f32[1,128], index: 2, kind: input, shape index: {}]   ;;  %s514_s3 = inlined_call_operand.vmem [shape: f32[128,128], index: 3, kind: output, shape index: {}]  }
   0x1   :  { %v392_v0 = vld [vmem:[%s511_s1] sm:$0xff]   ;;  %v393_v1 = vld [vmem:[%s511_s1 + $0x8] sm:$0xff]   ;;  %v398_v6 = vld [vmem:[%s512_s0 + $0x10] sm:$0xff]  }
   0x2   :  { %368 = vmatprep.subr.bf16.mxu0 %v392_v0  ;;  %388 = vmatprep.subr.bf16.mxu1 %v392_v0  ;;  %v394_v2 = vld [vmem:[%s512_s0] sm:$0xff]   ;;  %v396_v4 = vld [vmem:[%s512_s0 + $0x8] sm:$0xff]   ;;  %v399_v7 = vld [vmem:[%s512_s0 + $0x30] sm:$0xff]  }
   0x3   :  { %369 = vmatpush3.bf16.msra.mxu0 %v392_v0  ;;  %390 = vmatpush3.bf16.msra.mxu1 %v392_v0  ;;  %v395_v3 = vld [vmem:[%s512_s0 + $0x20] sm:$0xff]   ;;  %v397_v5 = vld [vmem:[%s512_s0 + $0x28] sm:$0xff]   ;;  %v400_v8 = vld [vmem:[%s512_s0 + $0x18] sm:$0xff]  }
   0x4   :  { %370 = vmatprep.subr.bf16.mxu0 %v393_v1  ;;  %389 = vmatprep.subr.bf16.mxu1 %v393_v1  ;;  %v401_v9 = vld [vmem:[%s512_s0 + $0x38] sm:$0xff]   ;;  %v357_v10 = vld [vmem:[%s513_s2] ss:$0 sm:$0xff] }
   0x5   :  { %372 = vmatprep.mubr.msk.bf16.mxu0 %vm123_vm0, %v394_v2  ;;  %380 = vmatprep.mubr.msk.bf16.mxu1 %vm123_vm0, %v395_v3 }
   0x7   :  { %371 = vmatpush3.bf16.msra.mxu0 %v393_v1  ;;  %391 = vmatpush3.bf16.msra.mxu1 %v393_v1 }
   0xa   :  { %373 = vmatmul.mubr.msk.bf16.vlgmr.msra.gmra.mrb[0].mxu0 %vm123_vm0, %v396_v4  ;;  %381 = vmatmul.mubr.msk.bf16.vlgmr.msra.gmra.mrb[0].mxu1 %vm123_vm0, %v397_v5 }
   0xb   :  { %376 = vmatprep.mubr.msk.bf16.mxu0 %vm123_vm0, %v398_v6  ;;  %384 = vmatprep.mubr.msk.bf16.mxu1 %vm123_vm0, %v399_v7 }
  0x12   :  { %377 = vmatmul.mubr.msk.bf16.gmra.mrb[4].mxu0 %vm123_vm0, %v400_v8  ;;  %385 = vmatmul.mubr.msk.bf16.gmra.mrb[4].mxu1 %vm123_vm0, %v401_v9 }
  0xdd   :  { %v374_v11 = vpop.f32.mrb[0].mxu0  ;;  %v382_v12 = vpop.f32.mrb[0].mxu1 }
  0xde   :  { %v305_v13 = vadd.f32 %v374_v11, %v357_v10  ;;  %v313_v14 = vadd.f32 %v382_v12, %v357_v10  ;;  %v182_v15 = vpop.f32.mrb[1].mxu0  ;;  %v214_v16 = vpop.f32.mrb[1].mxu1 }
  0xdf   :  { %v303_v17 = vadd.f32 %v357_v10, %v182_v15  ;;  %v311_v18 = vadd.f32 %v357_v10, %v214_v16  ;;  %v375_v19 = vpop.f32.mrb[2].mxu0  ;;  %v383_v20 = vpop.f32.mrb[2].mxu1 }
  0xe0   :  { %321 = vst [vmem:[%s514_s3 + $0x10] sm:$0xff] %v305_v13  ;;  %329 = vst [vmem:[%s514_s3 + $0x50] sm:$0xff] %v313_v14  ;;  %v306_v21 = vadd.f32 %v375_v19, %v357_v10  ;;  %v314_v22 = vadd.f32 %v383_v20, %v357_v10  ;;  %v185_v23 = vpop.f32.mrb[3].mxu0  ;;  %v217_v24 = vpop.f32.mrb[3].mxu1 }
  0xe1   :  { %319 = vst [vmem:[%s514_s3] sm:$0xff] %v303_v17  ;;  %327 = vst [vmem:[%s514_s3 + $0x40] sm:$0xff] %v311_v18  ;;  %v304_v25 = vadd.f32 %v357_v10, %v185_v23  ;;  %v312_v26 = vadd.f32 %v357_v10, %v217_v24 }
  0xe2   :  { %322 = vst [vmem:[%s514_s3 + $0x18] sm:$0xff] %v306_v21  ;;  %330 = vst [vmem:[%s514_s3 + $0x58] sm:$0xff] %v314_v22 }
  0xe3   :  { %320 = vst [vmem:[%s514_s3 + $0x8] sm:$0xff] %v304_v25  ;;  %328 = vst [vmem:[%s514_s3 + $0x48] sm:$0xff] %v312_v26 }
  0xe5   :  { %v378_v27 = vpop.f32.mrb[4].mxu0  ;;  %v386_v28 = vpop.f32.mrb[4].mxu1 }
  0xe6   :  { %v309_v29 = vadd.f32 %v378_v27, %v357_v10  ;;  %v317_v30 = vadd.f32 %v386_v28, %v357_v10  ;;  %v198_v31 = vpop.f32.mrb[5].mxu0  ;;  %v230_v32 = vpop.f32.mrb[5].mxu1 }
  0xe7   :  { %v307_v33 = vadd.f32 %v357_v10, %v198_v31  ;;  %v315_v34 = vadd.f32 %v357_v10, %v230_v32  ;;  %v379_v35 = vpop.f32.mrb[6].mxu0  ;;  %v387_v36 = vpop.f32.mrb[6].mxu1 }
  0xe8   :  { %325 = vst [vmem:[%s514_s3 + $0x30] sm:$0xff] %v309_v29  ;;  %333 = vst [vmem:[%s514_s3 + $0x70] sm:$0xff] %v317_v30  ;;  %v310_v37 = vadd.f32 %v379_v35, %v357_v10  ;;  %v318_v38 = vadd.f32 %v387_v36, %v357_v10  ;;  %v201_v39 = vpop.f32.mrb[7].mxu0  ;;  %v233_v40 = vpop.f32.mrb[7].mxu1 }
  0xe9   :  { %323 = vst [vmem:[%s514_s3 + $0x20] sm:$0xff] %v307_v33  ;;  %331 = vst [vmem:[%s514_s3 + $0x60] sm:$0xff] %v315_v34  ;;  %v308_v41 = vadd.f32 %v357_v10, %v201_v39  ;;  %v316_v42 = vadd.f32 %v357_v10, %v233_v40 }
  0xea   :  { %326 = vst [vmem:[%s514_s3 + $0x38] sm:$0xff] %v310_v37  ;;  %334 = vst [vmem:[%s514_s3 + $0x78] sm:$0xff] %v318_v38 }
  0xeb   :  { %324 = vst [vmem:[%s514_s3 + $0x28] sm:$0xff] %v308_v41  ;;  %332 = vst [vmem:[%s514_s3 + $0x68] sm:$0xff] %v316_v42 }

// kernel: bottleneck_forward.22
= control target key start
LH: loop header
LB: loop body
LE: loop exit
PB: predicated region body
PF: predicated region fallthrough
CT: control target
= control target key end

     0   :  { %v105_v0 = vmov 0.0   ;;  %s187_s1 = inlined_call_operand.vmem [shape: f32[1,128], index: 1, kind: output, shape index: {0}]   ;;  %s188_s2 = inlined_call_operand.vmem [shape: f32[1,128], index: 2, kind: output, shape index: {1}]   ;;  %s189_s0 = inlined_call_operand.vmem [shape: f32[128,128], index: 0, kind: input, shape index: {}]  }
   0x1   :  { %14 = vst [vmem:[%s187_s1] sm:$0x1] %v105_v0  ;;  %15 = vst [vmem:[%s188_s2] sm:$0x1] %v105_v0  ;;  %v16_v1 = vld [vmem:[%s189_s0] sm:$0xff]  ;;  %v17_v2 = vld [vmem:[%s189_s0 + $0x8] sm:$0xff] }
   0x2   :  { %v18_v3 = vld [vmem:[%s189_s0 + $0x10] sm:$0xff]  ;;  %v19_v4 = vld [vmem:[%s189_s0 + $0x18] sm:$0xff]  ;;  %v33_v5 = vadd.f32 %v17_v2, %v16_v1  ;;  %v57_v6 = vmul.f32 %v16_v1, %v16_v1  ;;  %v58_v7 = vmul.f32 %v17_v2, %v17_v2  ;;  %v20_v9 = vld [vmem:[%s189_s0 + $0x20] sm:$0xff] }
   0x3   :  { %v59_v8 = vmul.f32 %v18_v3, %v18_v3  ;;  %v60_v11 = vmul.f32 %v19_v4, %v19_v4  ;;  %v21_v13 = vld [vmem:[%s189_s0 + $0x28] sm:$0xff]  ;;  %v61_v15 = vmul.f32 %v20_v9, %v20_v9  ;;  %v22_v17 = vld [vmem:[%s189_s0 + $0x30] sm:$0xff]  ;;  %v23_v21 = vld [vmem:[%s189_s0 + $0x38] sm:$0xff] }
   0x4   :  { %v34_v10 = vadd.f32 %v33_v5, %v18_v3  ;;  %v73_v12 = vadd.f32 %v58_v7, %v57_v6  ;;  %v62_v19 = vmul.f32 %v21_v13, %v21_v13  ;;  %v63_v23 = vmul.f32 %v22_v17, %v22_v17  ;;  %v24_v25 = vld [vmem:[%s189_s0 + $0x40] sm:$0xff]  ;;  %v25_v29 = vld [vmem:[%s189_s0 + $0x48] sm:$0xff]  ;;  %v26_v33 = vld [vmem:[%s189_s0 + $0x50] sm:$0xff] }
   0x5   :  { %v64_v27 = vmul.f32 %v23_v21, %v23_v21  ;;  %v65_v31 = vmul.f32 %v24_v25, %v24_v25  ;;  %v66_v35 = vmul.f32 %v25_v29, %v25_v29  ;;  %v27_v37 = vld [vmem:[%s189_s0 + $0x58] sm:$0xff]  ;;  %v67_v39 = vmul.f32 %v26_v33, %v26_v33  ;;  %v28_v41 = vld [vmem:[%s189_s0 + $0x60] sm:$0xff]  ;;  %v29_v45 = vld [vmem:[%s189_s0 + $0x68] sm:$0xff] }
   0x6   :  { %v35_v14 = vadd.f32 %v34_v10, %v19_v4  ;;  %v74_v16 = vadd.f32 %v73_v12, %v59_v8  ;;  %v68_v43 = vmul.f32 %v27_v37, %v27_v37  ;;  %v69_v47 = vmul.f32 %v28_v41, %v28_v41  ;;  %v30_v49 = vld [vmem:[%s189_s0 + $0x70] sm:$0xff]  ;;  %v31_v53 = vld [vmem:[%s189_s0 + $0x78] sm:$0xff] }
   0x7   :  { %v70_v51 = vmul.f32 %v29_v45, %v29_v45  ;;  %v71_v55 = vmul.f32 %v30_v49, %v30_v49  ;;  %v72_v58 = vmul.f32 %v31_v53, %v31_v53 }
   0x8   :  { %v36_v18 = vadd.f32 %v35_v14, %v20_v9  ;;  %v75_v20 = vadd.f32 %v74_v16, %v60_v11  ;;  %v32_v7 = vld [vmem:[%s187_s1] sm:$0x1] }
   0x9   :  { %v56_v12 = vld [vmem:[%s188_s2] sm:$0x1] }
   0xa   :  { %v37_v22 = vadd.f32 %v36_v18, %v21_v13  ;;  %v76_v24 = vadd.f32 %v75_v20, %v61_v15 }
   0xc   :  { %v38_v26 = vadd.f32 %v37_v22, %v22_v17  ;;  %v77_v28 = vadd.f32 %v76_v24, %v62_v19 }
   0xe   :  { %v39_v30 = vadd.f32 %v38_v26, %v23_v21  ;;  %v78_v32 = vadd.f32 %v77_v28, %v63_v23 }
  0x10   :  { %v40_v34 = vadd.f32 %v39_v30, %v24_v25  ;;  %v79_v36 = vadd.f32 %v78_v32, %v64_v27 }
  0x12   :  { %v41_v38 = vadd.f32 %v40_v34, %v25_v29  ;;  %v80_v40 = vadd.f32 %v79_v36, %v65_v31 }
  0x14   :  { %v42_v42 = vadd.f32 %v41_v38, %v26_v33  ;;  %v81_v44 = vadd.f32 %v80_v40, %v66_v35 }
  0x16   :  { %v43_v46 = vadd.f32 %v42_v42, %v27_v37  ;;  %v82_v48 = vadd.f32 %v81_v44, %v67_v39 }
  0x18   :  { %v44_v50 = vadd.f32 %v43_v46, %v28_v41  ;;  %v83_v52 = vadd.f32 %v82_v48, %v68_v43 }
  0x1a   :  { %v45_v54 = vadd.f32 %v44_v50, %v29_v45  ;;  %v84_v56 = vadd.f32 %v83_v52, %v69_v47 }
  0x1c   :  { %v46_v57 = vadd.f32 %v45_v54, %v30_v49  ;;  %v85_v59 = vadd.f32 %v84_v56, %v70_v51 }
  0x1e   :  { %v47_v60 = vadd.f32 %v46_v57, %v31_v53  ;;  %v86_v61 = vadd.f32 %v85_v59, %v71_v55 }
  0x20   :  { %v48_v62 = vrot.slane %v47_v60, 4  ;;  %v87_v63 = vadd.f32 %v86_v61, %v72_v58 }
  0x22   :  { %v49_v0 = vadd.f32 %v48_v62, %v47_v60  ;;  %v88_v1 = vrot.slane %v87_v63, 4 }
  0x24   :  { %v50_v2 = vrot.slane %v49_v0, 2  ;;  %v89_v3 = vadd.f32 %v88_v1, %v87_v63 }
  0x26   :  { %v51_v4 = vadd.f32 %v50_v2, %v49_v0  ;;  %v90_v5 = vrot.slane %v89_v3, 2 }
  0x28   :  { %v52_v6 = vrot.slane %v51_v4, 1  ;;  %v91_v8 = vadd.f32 %v90_v5, %v89_v3 }
  0x2a   :  { %v53_v9 = vadd.f32 %v52_v6, %v51_v4  ;;  %v92_v10 = vrot.slane %v91_v8, 1 }
  0x2c   :  { %v54_v11 = vadd.f32 %v53_v9, %v32_v7  ;;  %v93_v13 = vadd.f32 %v92_v10, %v91_v8 }
  0x2e   :  { %55 = vst [vmem:[%s187_s1] sm:$0x1] %v54_v11  ;;  %v94_v14 = vadd.f32 %v93_v13, %v56_v12 }
  0x30   :  { %95 = vst [vmem:[%s188_s2] sm:$0x1] %v94_v14 }

// kernel: bottleneck_forward.15
= control target key start
LH: loop header
LB: loop body
LE: loop exit
PB: predicated region body
PF: predicated region fallthrough
CT: control target
= control target key end

     0   :  { %s2269_s12 = smov 0   ;;  %s2558_s0 = inlined_call_operand.vmem [shape: bf16[8,9,9,32], index: 0, kind: input, shape index: {}]   ;;  %s2559_s1 = inlined_call_operand.vmem [shape: bf16[9,32,32], index: 1, kind: input, shape index: {}]   ;;  %s2560_s2 = inlined_call_operand.vmem [shape: f32[1,32], index: 2, kind: input, shape index: {}]   ;;  %s2561_s3 = inlined_call_operand.vmem [shape: f32[2,64,32], index: 3, kind: output, shape index: {}]  }
   0x1 LB: > { %s2275_s13 = sadd.s32 4294967295, %s2247_s12   ;;  %p1757_p0 = scmp.ge.s32.totalorder %s2247_s12, 1  ;;  %s2247_s12 = sphi %s2269_s12, %s13_s12  }
   0x2   : > { %p139_p1 = scmp.lt.s32.totalorder %s2247_s12, 3 }
   0x4   : > { %p140_p2 = pnand %p1757_p0, %p139_p1 }
   0x5   : > { %v2199_v0 = vld [vmem:[%s2559_s1 + $0x10] sm:$0xff] (!%p140_p2)   ;;  %s1758_s16 = sshll.u32 (!%p140_p2), %s2275_s13, 2  ;;  %v2286_v1 = vld [vmem:[%s2559_s1 + $0x40] sm:$0xff] (!%p140_p2)   ;;  %v2201_v2 = vld [vmem:[%s2559_s1 + $0x18] sm:$0xff] (!%p140_p2)   ;;  %vm235_vm0 = vcmask (!%p140_p2), 261120   ;;  %p171_p4 = scmp.lt.s32.totalorder (!%p140_p2), %s2275_s13, 1 }
   0x6   : > { %143 = sbr.rel (%p140_p2) target bundleno = 314 (0x13a), region = 32  ;;  %p165_p3 = scmp.lt.s32.totalorder (!%p140_p2), %s1758_s16, 7  ;;  %2014 = vmatprep.subr.bf16.mxu1 (!%p140_p2), %v2199_v0  ;;  %2062 = vmatprep.subr.bf16.mxu0 (!%p140_p2), %v2286_v1  ;;  %v2295_v3 = vld [vmem:[%s2559_s1 + $0x48] sm:$0xff] (!%p140_p2)   ;;  %v2204_v4 = vld [vmem:[%s2559_s1] sm:$0xff] (!%p140_p2)   ;;  %v2206_v5 = vld [vmem:[%s2559_s1 + $0x50] sm:$0xff] (!%p140_p2)  }
   0x7   : > { %2015 = vmatpush3.bf16.msra.mxu1 (!%p140_p2), %v2199_v0  ;;  %2063 = vmatpush3.bf16.msra.mxu0 (!%p140_p2), %v2286_v1  ;;  %v2209_v8 = vld [vmem:[%s2559_s1 + $0x58] sm:$0xff] (!%p140_p2)   ;;  %v2211_v9 = vld [vmem:[%s2559_s1 + $0x8] sm:$0xff] (!%p140_p2)   ;;  %vm438_vm1 = vsmask.f32 (!%p140_p2), 3328  ;;  %vm439_vm2 = vsmask.f32 (!%p140_p2), 7440 }
   0x8   : > { %2016 = vmatprep.subr.bf16.mxu1 (!%p140_p2), %v2201_v2  ;;  %2064 = vmatprep.subr.bf16.mxu0 (!%p140_p2), %v2295_v3  ;;  %v2335_v23 = vld [vmem:[%s2559_s1 + $0x60] sm:$0xff] (!%p140_p2)   ;;  %vm2346_vm3 = vmor (!%p140_p2), %vm438_vm1, %vm439_vm2  ;;  %v2219_v63 = vld [vmem:[%s2559_s1 + $0x28] sm:$0xff] (!%p140_p2)  }
   0x9   : > { %v2215_v27 = vld [vmem:[%s2559_s1 + $0x20] sm:$0xff] (!%p140_p2)  }
   0xb   : > { %2017 = vmatpush3.bf16.msra.mxu1 (!%p140_p2), %v2201_v2  ;;  %2065 = vmatpush3.bf16.msra.mxu0 (!%p140_p2), %v2295_v3 }
   0xc   : > { %2026 = vmatprep.subr.bf16.mxu1 (!%p140_p2), %v2204_v4  ;;  %2074 = vmatprep.subr.bf16.mxu0 (!%p140_p2), %v2206_v5 }
   0xd   : > { %s2565_s16 = smov (!%p165_p3, %s1758_s16), 7  ;;  %s2567_s13 = smov (!%p171_p4, %s2275_s13), 1 }
   0xe   : > { %s2190_s25 = smul.u32 72, %s2565_s16  ;;  %s1959_s4 = sshll.u32 %s2567_s13, 6 }
   0xf   : > { %s2537_s8 = scalar_lea.vmem %s2561_s3, %s1959_s4 }
  0x10   : > { %s2308_s30 = scalar_lea.vmem %s2558_s0, %s2190_s25 }
  0x11   : > { %v2203_v6 = vld [vmem:[%s2308_s30 + $0x48] ss:$8 sps:$4 sm:$0xff]   ;;  %v2205_v7 = vld [vmem:[%s2308_s30 + $0xd8] ss:$8 sps:$4 sm:$0xff]   ;;  %v1853_v15 = vld [vmem:[%s2308_s30 + $0x94] sm:$0x1] }
  0x12   : > { %2018 = vmatprep.mubr.msk.bf16.mxu1 %vm235_vm0, %v2203_v6  ;;  %v2207_v10 = vld [vmem:[%s2308_s30 + $0x58] ss:$8 sps:$4 sm:$0xff]   ;;  %2066 = vmatprep.mubr.msk.bf16.mxu0 %vm235_vm0, %v2205_v7  ;;  %v2208_v11 = vld [vmem:[%s2308_s30 + $0xe8] ss:$8 sps:$4 sm:$0xff]   ;;  %v1855_v19 = vld [vmem:[%s2308_s30 + $0x9c] sm:$0x1] }
  0x13   : > { %2019 = vmatmul.mubr.msk.bf16.vlgmr.msra.gmra.mrb[0].mxu1 %vm235_vm0, %v2207_v10  ;;  %v2210_v12 = vld [vmem:[%s2308_s30 + $0x68] ss:$8 sps:$4 sm:$0xff]   ;;  %2067 = vmatmul.mubr.msk.bf16.vlgmr.msra.gmra.mrb[0].mxu0 %vm235_vm0, %v2208_v11  ;;  %v2212_v13 = vld [vmem:[%s2308_s30 + $0x78] ss:$8 sps:$4 sm:$0xff]   ;;  %v955_v20 = vshll.u32 %v1853_v15, 16  ;;  %v969_v26 = vshll.u32 %v1855_v19, 16 }
  0x14   : > { %2027 = vmatpush3.bf16.msra.mxu1 %v2204_v4  ;;  %2075 = vmatpush3.bf16.msra.mxu0 %v2206_v5  ;;  %v1852_v14 = vld [vmem:[%s2308_s30 + $0x90] sm:$0xf]  ;;  %v1854_v16 = vld [vmem:[%s2308_s30 + $0x98] sm:$0xf]  ;;  %v1856_v33 = vld [vmem:[%s2308_s30 + $0xa0] sm:$0xf] }
  0x15   : > { %2022 = vmatprep.mubr.msk.bf16.mxu1 %vm235_vm0, %v2210_v12  ;;  %2076 = vmatprep.subr.bf16.mxu0 %v2209_v8  ;;  %v946_v17 = vshrl.u32 %v1852_v14, 16  ;;  %v949_v18 = vshll.u32 %v1852_v14, 16  ;;  %v960_v21 = vshrl.u32 %v1854_v16, 16  ;;  %v963_v22 = vshll.u32 %v1854_v16, 16  ;;  %v1857_v34 = vld [vmem:[%s2308_s30 + $0xa4] sm:$0x1] }
  0x16   : > { %2028 = vmatprep.subr.bf16.mxu1 %v2211_v9  ;;  %v957_v31 = vrot.slane %v955_v20, 5  ;;  %v971_v32 = vrot.slane %v969_v26, 5  ;;  %v1858_v37 = vld [vmem:[%s2308_s30 + $0xa8] sm:$0xf]  ;;  %v1859_v38 = vld [vmem:[%s2308_s30 + $0xac] sm:$0x1] }
  0x17   : > { %v948_v24 = vrot.slane %v946_v17, 4  ;;  %v951_v25 = vrot.slane %v949_v18, 5  ;;  %v962_v28 = vrot.slane %v960_v21, 4  ;;  %v965_v29 = vrot.slane %v963_v22, 5  ;;  %v2214_v52 = vld [vmem:[%s2308_s30] ss:$8 sps:$4 sm:$0xff]  }
  0x18   : > { %2029 = vmatpush3.bf16.msra.mxu1 %v2211_v9  ;;  %2077 = vmatpush3.bf16.msra.mxu0 %v2209_v8  ;;  %v974_v39 = vshrl.u32 %v1856_v33, 16  ;;  %v977_v40 = vshll.u32 %v1856_v33, 16  ;;  %v983_v42 = vshll.u32 %v1857_v34, 16  ;;  %v988_v43 = vshrl.u32 %v1858_v37, 16  ;;  %v2216_v59 = vld [vmem:[%s2308_s30 + $0x10] ss:$8 sps:$4 sm:$0xff]  }
  0x19   : > { %v952_v30 = vor.u32 %v951_v25, %v948_v24  ;;  %2086 = vmatprep.subr.bf16.mxu0 %v2335_v23  ;;  %2038 = vmatprep.subr.bf16.mxu1 %v2215_v27  ;;  %v966_v36 = vor.u32 %v965_v29, %v962_v28  ;;  %v991_v44 = vshll.u32 %v1858_v37, 16  ;;  %v997_v48 = vshll.u32 %v1859_v38, 16  ;;  %v1860_v61 = vld [vmem:[%s2308_s30 + $0xb0] sm:$0xf]  ;;  %v1861_v62 = vld [vmem:[%s2308_s30 + $0xb4] sm:$0x1] }
  0x1a   : > { %v976_v46 = vrot.slane %v974_v39, 4  ;;  %v979_v47 = vrot.slane %v977_v40, 5  ;;  %v990_v50 = vrot.slane %v988_v43, 4  ;;  %v985_v55 = vrot.slane %v983_v42, 5  ;;  %v1862_v2 = vld [vmem:[%s2308_s30 + $0xb8] sm:$0xf] }
  0x1b   : > { %2023 = vmatmul.mubr.msk.bf16.gmra.mrb[4].mxu1 %vm235_vm0, %v2212_v13  ;;  %v953_v41 = vrot.slane %v952_v30, 4  ;;  %v967_v45 = vrot.slane %v966_v36, 4  ;;  %v993_v51 = vrot.slane %v991_v44, 5  ;;  %v999_v56 = vrot.slane %v997_v48, 5  ;;  %v1863_v4 = vld [vmem:[%s2308_s30 + $0xbc] sm:$0x1] }
  0x1c   : > { %v980_v54 = vor.u32 %v979_v47, %v976_v46  ;;  %2030 = vmatprep.mubr.msk.bf16.mxu1 %vm235_vm0, %v2214_v52  ;;  %v1002_v5 = vshrl.u32 %v1860_v61, 16  ;;  %v1005_v7 = vshll.u32 %v1860_v61, 16  ;;  %v1011_v8 = vshll.u32 %v1861_v62, 16  ;;  %v2217_v14 = vld [vmem:[%s2559_s1 + $0x68] sm:$0xff]   ;;  %v1864_v19 = vld [vmem:[%s2308_s30 + $0xc0] sm:$0xf] }
  0x1d   : > { %v958_v49 = vsel %vm2346_vm3, %v953_v41, %v957_v31  ;;  %v972_v53 = vsel %vm2346_vm3, %v967_v45, %v971_v32  ;;  %v994_v58 = vor.u32 %v993_v51, %v990_v50  ;;  %v1016_v9 = vshrl.u32 %v1862_v2, 16  ;;  %v2379_v20 = vld [vmem:[%s2559_s1 + $0x30] sm:$0xff]   ;;  %v1865_v24 = vld [vmem:[%s2308_s30 + $0xc4] sm:$0x1]  ;;  %v1866_v25 = vld [vmem:[%s2308_s30 + $0xc8] sm:$0xf] }
  0x1e   : > { %v1872_v57 = vcombine.low %v958_v49, %v972_v53  ;;  %v981_v60 = vrot.slane %v980_v54, 4  ;;  %v1004_v11 = vrot.slane %v1002_v5, 4  ;;  %v1019_v12 = vshll.u32 %v1862_v2, 16  ;;  %v2389_v36 = vld [vmem:[%s2559_s1 + $0x70] sm:$0xff]   ;;  %v2218_v44 = vld [vmem:[%s2308_s30 + $0x20] ss:$8 sps:$4 sm:$0xff]  }
  0x1f   : > { %v995_v0 = vrot.slane %v994_v58, 4  ;;  %v1025_v13 = vshll.u32 %v1863_v4, 16  ;;  %v1007_v16 = vrot.slane %v1005_v7, 5  ;;  %v1013_v17 = vrot.slane %v1011_v8, 5  ;;  %v2220_v49 = vld [vmem:[%s2308_s30 + $0x30] ss:$8 sps:$4 sm:$0xff]  }
  0x20   : > { %2078 = vmatprep.mubr.msk.bf16.mxu0 %vm235_vm0, %v1872_v57  ;;  %v986_v6 = vsel %vm2346_vm3, %v981_v60, %v985_v55  ;;  %v1018_v18 = vrot.slane %v1016_v9, 4  ;;  %v1021_v21 = vrot.slane %v1019_v12, 5  ;;  %v1030_v28 = vshrl.u32 %v1864_v19, 16  ;;  %v2221_v54 = vld [vmem:[%s2308_s30 + $0x8] ss:$8 sps:$4 sm:$0xff]  }
  0x21   : > { %v1000_v10 = vsel %vm2346_vm3, %v995_v0, %v999_v56  ;;  %v1027_v22 = vrot.slane %v1025_v13, 5  ;;  %v1008_v26 = vor.u32 %v1007_v16, %v1004_v11  ;;  %v1033_v29 = vshll.u32 %v1864_v19, 16  ;;  %v422_v56 = vld [vmem:[%s2308_s30] sm:$0xf]  ;;  %v423_v57 = vld [vmem:[%s2308_s30 + $0x4] sm:$0x1] }
  0x22   : > { %v1873_v15 = vcombine.low %v986_v6, %v1000_v10  ;;  %v1039_v30 = vshll.u32 %v1865_v24, 16  ;;  %v1022_v31 = vor.u32 %v1021_v21, %v1018_v18  ;;  %v1044_v32 = vshrl.u32 %v1866_v25, 16  ;;  %v424_v58 = vld [vmem:[%s2308_s30 + $0x8] sm:$0xf]  ;;  %v425_v60 = vld [vmem:[%s2308_s30 + $0xc] sm:$0x1] }
  0x23   : > { %2031 = vmatmul.mubr.msk.bf16.vlgmr.msra.gmra.mrb[0].mxu1 %vm235_vm0, %v2216_v59  ;;  %v1047_v33 = vshll.u32 %v1866_v25, 16  ;;  %v1009_v37 = vrot.slane %v1008_v26, 4  ;;  %v1032_v38 = vrot.slane %v1030_v28, 4  ;;  %v1035_v39 = vrot.slane %v1033_v29, 5  ;;  %v426_v11 = vld [vmem:[%s2308_s30 + $0x10] sm:$0xf] }
  0x24   : > { %2039 = vmatpush3.bf16.msra.mxu1 %v2215_v27  ;;  %2079 = vmatmul.mubr.msk.bf16.vlgmr.msra.gmra.mrb[0].mxu0 %vm235_vm0, %v1873_v15  ;;  %v1867_v27 = vld [vmem:[%s2308_s30 + $0xcc] sm:$0x1]  ;;  %v1041_v40 = vrot.slane %v1039_v30, 5  ;;  %v1046_v41 = vrot.slane %v1044_v32, 4  ;;  %v442_v61 = vshrl.u32 %v422_v56, 16  ;;  %v445_v62 = vshll.u32 %v422_v56, 16 }
  0x25   : > { %2040 = vmatprep.subr.bf16.mxu1 %v2219_v63  ;;  %2087 = vmatpush3.bf16.msra.mxu0 %v2335_v23  ;;  %v1053_v34 = vshll.u32 %v1867_v27, 16  ;;  %v1023_v23 = vrot.slane %v1022_v31, 4  ;;  %v1049_v42 = vrot.slane %v1047_v33, 5  ;;  %v1014_v45 = vsel %vm2346_vm3, %v1009_v37, %v1013_v17  ;;  %v2223_v12 = vld [vmem:[%s2308_s30 + $0x18] ss:$8 sps:$4 sm:$0xff]  }
  0x26   : > { %2088 = vmatprep.subr.bf16.mxu0 %v2217_v14  ;;  %v1036_v46 = vor.u32 %v1035_v39, %v1032_v38  ;;  %2034 = vmatprep.mubr.msk.bf16.mxu1 %vm235_vm0, %v2218_v44  ;;  %v456_v0 = vshrl.u32 %v424_v58, 16  ;;  %v459_v2 = vshll.u32 %v424_v58, 16  ;;  %v465_v4 = vshll.u32 %v425_v60, 16  ;;  %v428_v15 = vld [vmem:[%s2308_s30 + $0x18] sm:$0xf]  ;;  %v2432_v44 = vld [vmem:[%s2559_s1 + $0x80] sm:$0xff]  }
  0x27   : > { %v1055_v43 = vrot.slane %v1053_v34, 5  ;;  %v1028_v47 = vsel %vm2346_vm3, %v1023_v23, %v1027_v22  ;;  %v1050_v48 = vor.u32 %v1049_v42, %v1046_v41  ;;  %v444_v5 = vrot.slane %v442_v61, 4  ;;  %v429_v16 = vld [vmem:[%s2308_s30 + $0x1c] sm:$0x1]  ;;  %v2225_v30 = vld [vmem:[%s2308_s30 + $0x28] ss:$8 sps:$4 sm:$0xff]  }
  0x28   : > { %2041 = vmatpush3.bf16.msra.mxu1 %v2219_v63  ;;  %v1874_v50 = vcombine.low %v1014_v45, %v1028_v47  ;;  %v1037_v51 = vrot.slane %v1036_v46, 4  ;;  %v451_v63 = vshll.u32 %v423_v57, 16  ;;  %v447_v6 = vrot.slane %v445_v62, 5  ;;  %v2226_v37 = vld [vmem:[%s2559_s1 + $0x78] sm:$0xff]   ;;  %v430_v42 = vld [vmem:[%s2308_s30 + $0x20] sm:$0xf] }
  0x29   : > { %2050 = vmatprep.subr.bf16.mxu1 %v2379_v20  ;;  %2089 = vmatpush3.bf16.msra.mxu0 %v2217_v14  ;;  %v1051_v52 = vrot.slane %v1050_v48, 4  ;;  %v458_v8 = vrot.slane %v456_v0, 4  ;;  %v461_v9 = vrot.slane %v459_v2, 5  ;;  %v467_v10 = vrot.slane %v465_v4, 5  ;;  %v427_v14 = vld [vmem:[%s2308_s30 + $0x14] sm:$0x1] }
  0x2a   : > { %2098 = vmatprep.subr.bf16.mxu0 %v2389_v36  ;;  %2082 = vmatprep.mubr.msk.bf16.mxu0 %vm235_vm0, %v1874_v50  ;;  %v1042_v53 = vsel %vm2346_vm3, %v1037_v51, %v1041_v40  ;;  %v453_v7 = vrot.slane %v451_v63, 5  ;;  %v448_v13 = vor.u32 %v447_v6, %v444_v5  ;;  %v470_v18 = vshrl.u32 %v426_v11, 16  ;;  %v432_v46 = vld [vmem:[%s2308_s30 + $0x28] sm:$0xf]  ;;  %v433_v47 = vld [vmem:[%s2308_s30 + $0x2c] sm:$0x1] }
  0x2b   : > { %2035 = vmatmul.mubr.msk.bf16.gmra.mrb[4].mxu1 %vm235_vm0, %v2220_v49  ;;  %v1056_v55 = vsel %vm2346_vm3, %v1051_v52, %v1055_v43  ;;  %v462_v17 = vor.u32 %v461_v9, %v458_v8  ;;  %v473_v19 = vshll.u32 %v426_v11, 16  ;;  %v479_v21 = vshll.u32 %v427_v14, 16  ;;  %v431_v43 = vld [vmem:[%s2308_s30 + $0x24] sm:$0x1]  ;;  %v2227_v50 = vld [vmem:[%s2308_s30 + $0x38] ss:$8 sps:$4 sm:$0xff]  }
  0x2c   : > { %v1875_v59 = vcombine.low %v1042_v53, %v1056_v55  ;;  %v449_v22 = vrot.slane %v448_v13, 4  ;;  %v484_v24 = vshrl.u32 %v428_v15, 16  ;;  %v487_v25 = vshll.u32 %v428_v15, 16  ;;  %v2228_v61 = vld [vmem:[%s2559_s1 + $0x38] sm:$0xff]   ;;  %v434_v62 = vld [vmem:[%s2308_s30 + $0x30] sm:$0xf] }
  0x2d   : > { %v493_v26 = vshll.u32 %v429_v16, 16  ;;  %v463_v27 = vrot.slane %v462_v17, 4  ;;  %v472_v28 = vrot.slane %v470_v18, 4  ;;  %v475_v29 = vrot.slane %v473_v19, 5  ;;  %v435_v4 = vld [vmem:[%s2308_s30 + $0x34] sm:$0x1] }
  0x2e   : > { %2083 = vmatmul.mubr.msk.bf16.gmra.mrb[4].mxu0 %vm235_vm0, %v1875_v59  ;;  %v454_v31 = vsel %vm2346_vm3, %v449_v22, %v453_v7  ;;  %v481_v32 = vrot.slane %v479_v21, 5  ;;  %v486_v33 = vrot.slane %v484_v24, 4  ;;  %v489_v34 = vrot.slane %v487_v25, 5  ;;  %v436_v5 = vld [vmem:[%s2308_s30 + $0x38] sm:$0xf] }
  0x2f   : > { %2090 = vmatprep.mubr.msk.bf16.mxu0 %vm235_vm0, %v2221_v54  ;;  %v468_v38 = vsel %vm2346_vm3, %v463_v27, %v467_v10  ;;  %v476_v39 = vor.u32 %v475_v29, %v472_v28  ;;  %v495_v41 = vrot.slane %v493_v26, 5  ;;  %v498_v48 = vshrl.u32 %v430_v42, 16  ;;  %v437_v7 = vld [vmem:[%s2308_s30 + $0x3c] sm:$0x1]  ;;  %v2229_v24 = vld [vmem:[%s2308_s30 + $0x50] ss:$8 sps:$4 sm:$0xff]  }
  0x30   : > { %v1798_v40 = vcombine.low %v454_v31, %v468_v38  ;;  %v490_v23 = vor.u32 %v489_v34, %v486_v33  ;;  %v501_v51 = vshll.u32 %v430_v42, 16  ;;  %v507_v52 = vshll.u32 %v431_v43, 16  ;;  %v2231_v31 = vld [vmem:[%s2308_s30 + $0x60] ss:$8 sps:$4 sm:$0xff]   ;;  %v1927_v42 = vld [vmem:[%s2308_s30 + $0xc] sm:$0x1] }
  0x31   : > { %v477_v45 = vrot.slane %v476_v39, 4  ;;  %v512_v53 = vshrl.u32 %v432_v46, 16  ;;  %v500_v54 = vrot.slane %v498_v48, 4  ;;  %v515_v55 = vshll.u32 %v432_v46, 16  ;;  %v2235_v33 = vld [vmem:[%s2559_s1 + $0x88] sm:$0xff]  }
  0x32   : > { %2042 = vmatprep.mubr.msk.bf16.mxu1 %vm235_vm0, %v1798_v40  ;;  %v491_v49 = vrot.slane %v490_v23, 4  ;;  %v521_v56 = vshll.u32 %v433_v47, 16  ;;  %v503_v58 = vrot.slane %v501_v51, 5  ;;  %v509_v59 = vrot.slane %v507_v52, 5  ;;  %v2234_v39 = vld [vmem:[%s2308_s30 + $0x70] ss:$8 sps:$4 sm:$0xff]  }
  0x33   : > { %v514_v60 = vrot.slane %v512_v53, 4  ;;  %v517_v0 = vrot.slane %v515_v55, 5  ;;  %v526_v8 = vshrl.u32 %v434_v62, 16  ;;  %v529_v9 = vshll.u32 %v434_v62, 16  ;;  %v2236_v23 = vld [vmem:[%s2308_s30 + $0x80] ss:$8 sps:$4 sm:$0xff]  }
  0x34   : > { %v496_v57 = vsel %vm2346_vm3, %v491_v49, %v495_v41  ;;  %v523_v2 = vrot.slane %v521_v56, 5  ;;  %v504_v6 = vor.u32 %v503_v58, %v500_v54  ;;  %v535_v10 = vshll.u32 %v435_v4, 16  ;;  %v1926_v41 = vld [vmem:[%s2308_s30 + $0x8] sm:$0xf]  ;;  %v1928_v43 = vld [vmem:[%s2308_s30 + $0x10] sm:$0xf] }
  0x35   : > { %v518_v11 = vor.u32 %v517_v0, %v514_v60  ;;  %v543_v13 = vshll.u32 %v436_v5, 16  ;;  %v549_v14 = vshll.u32 %v437_v7, 16  ;;  %v528_v16 = vrot.slane %v526_v8, 4  ;;  %v1929_v46 = vld [vmem:[%s2308_s30 + $0x14] sm:$0x1] }
  0x36   : > { %2091 = vmatmul.mubr.msk.bf16.vlgmr.msra.gmra.mrb[0].mxu0 %vm235_vm0, %v2223_v12  ;;  %v540_v12 = vshrl.u32 %v436_v5, 16  ;;  %v505_v15 = vrot.slane %v504_v6, 4  ;;  %v531_v17 = vrot.slane %v529_v9, 5  ;;  %v537_v19 = vrot.slane %v535_v10, 5  ;;  %v1930_v53 = vld [vmem:[%s2308_s30 + $0x18] sm:$0xf] }
  0x37   : > { %2099 = vmatpush3.bf16.msra.mxu0 %v2389_v36  ;;  %2094 = vmatprep.mubr.msk.bf16.mxu0 %vm235_vm0, %v2225_v30  ;;  %v482_v36 = vsel %vm2346_vm3, %v477_v45, %v481_v32  ;;  %v519_v18 = vrot.slane %v518_v11, 4  ;;  %v545_v22 = vrot.slane %v543_v13, 5  ;;  %v551_v28 = vrot.slane %v549_v14, 5  ;;  %v2233_v45 = vld [vmem:[%s2308_s30 + $0xa0] ss:$8 sps:$4 sm:$0xff]  }
  0x38   : > { %2100 = vmatprep.subr.bf16.mxu0 %v2226_v37  ;;  %v1799_v63 = vcombine.low %v482_v36, %v496_v57  ;;  %v542_v21 = vrot.slane %v540_v12, 4  ;;  %v510_v25 = vsel %vm2346_vm3, %v505_v15, %v509_v59  ;;  %v532_v26 = vor.u32 %v531_v17, %v528_v16  ;;  %v1931_v36 = vld [vmem:[%s2308_s30 + $0x1c] sm:$0x1]  ;;  %v1932_v58 = vld [vmem:[%s2308_s30 + $0x20] sm:$0xf] }
  0x39   : > { %v1450_v47 = vshrl.u32 %v1926_v41, 16  ;;  %v1453_v48 = vshll.u32 %v1926_v41, 16  ;;  %v1464_v49 = vshrl.u32 %v1928_v43, 16  ;;  %v1467_v51 = vshll.u32 %v1928_v43, 16  ;;  %v1934_v17 = vld [vmem:[%s2308_s30 + $0x28] sm:$0xf] }
  0x3a   : > { %2043 = vmatmul.mubr.msk.bf16.vlgmr.msra.gmra.mrb[0].mxu1 %vm235_vm0, %v1799_v63  ;;  %v546_v27 = vor.u32 %v545_v22, %v542_v21  ;;  %v533_v30 = vrot.slane %v532_v26, 4  ;;  %v1473_v52 = vshll.u32 %v1929_v46, 16  ;;  %v1478_v62 = vshrl.u32 %v1930_v53, 16  ;;  %v1938_v43 = vld [vmem:[%s2308_s30 + $0x38] sm:$0xf] }
  0x3b   : > { %2101 = vmatpush3.bf16.msra.mxu0 %v2226_v37  ;;  %2051 = vmatpush3.bf16.msra.mxu1 %v2379_v20  ;;  %v524_v20 = vsel %vm2346_vm3, %v519_v18, %v523_v2  ;;  %v2232_v37 = vld [vmem:[%s2308_s30 + $0x90] ss:$8 sps:$4 sm:$0xff]   ;;  %v1452_v54 = vrot.slane %v1450_v47, 4  ;;  %v1455_v55 = vrot.slane %v1453_v48, 5  ;;  %v1466_v57 = vrot.slane %v1464_v49, 4 }
  0x3c   : > { %2110 = vmatprep.subr.bf16.mxu0 %v2432_v44  ;;  %2052 = vmatprep.subr.bf16.mxu1 %v2228_v61  ;;  %v1800_v29 = vcombine.low %v510_v25, %v524_v20  ;;  %v547_v32 = vrot.slane %v546_v27, 4  ;;  %v538_v34 = vsel %vm2346_vm3, %v533_v30, %v537_v19  ;;  %v1469_v59 = vrot.slane %v1467_v51, 5  ;;  %v1935_v18 = vld [vmem:[%s2308_s30 + $0x2c] sm:$0x1]  ;;  %v2238_v19 = vld [vmem:[%s2308_s30 + $0xc0] ss:$8 sps:$4 sm:$0xff]  }
  0x3d   : > { %v1475_v60 = vrot.slane %v1473_v52, 5  ;;  %v1481_v63 = vshll.u32 %v1930_v53, 16  ;;  %v1456_v0 = vor.u32 %v1455_v55, %v1452_v54  ;;  %v1487_v2 = vshll.u32 %v1931_v36, 16  ;;  %v1937_v25 = vld [vmem:[%s2308_s30 + $0x34] sm:$0x1] }
  0x3e   : > { %2095 = vmatmul.mubr.msk.bf16.gmra.mrb[4].mxu0 %vm235_vm0, %v2227_v50  ;;  %2046 = vmatprep.mubr.msk.bf16.mxu1 %vm235_vm0, %v1800_v29  ;;  %v552_v38 = vsel %vm2346_vm3, %v547_v32, %v551_v28  ;;  %v2237_v50 = vld [vmem:[%s2308_s30 + $0xb0] ss:$8 sps:$4 sm:$0xff]   ;;  %v1492_v4 = vshrl.u32 %v1932_v58, 16  ;;  %v1495_v5 = vshll.u32 %v1932_v58, 16  ;;  %v1470_v6 = vor.u32 %v1469_v59, %v1466_v57  ;;  %v1940_v48 = vld [vmem:[%s2308_s30 + $0x40] sm:$0xf] }
  0x3f   : > { %2102 = vmatprep.mubr.msk.bf16.mxu0 %vm235_vm0, %v2229_v24  ;;  %2053 = vmatpush3.bf16.msra.mxu1 %v2228_v61  ;;  %v1801_v40 = vcombine.low %v538_v34, %v552_v38  ;;  %v1933_v61 = vld [vmem:[%s2308_s30 + $0x24] sm:$0x1]  ;;  %v1480_v7 = vrot.slane %v1478_v62, 4  ;;  %v1483_v8 = vrot.slane %v1481_v63, 5  ;;  %v1457_v10 = vrot.slane %v1456_v0, 4 }
  0x40   : > { %2122 = vmatprep.subr.bf16.mxu1 %v2286_v1  ;;  %v1501_v9 = vshll.u32 %v1933_v61, 16  ;;  %v1489_v11 = vrot.slane %v1487_v2, 5  ;;  %v1494_v12 = vrot.slane %v1492_v4, 4  ;;  %v1497_v13 = vrot.slane %v1495_v5, 5  ;;  %v1936_v24 = vld [vmem:[%s2308_s30 + $0x30] sm:$0xf] }
  0x41   : > { %v1471_v14 = vrot.slane %v1470_v6, 4  ;;  %v1484_v15 = vor.u32 %v1483_v8, %v1480_v7  ;;  %v1506_v26 = vshrl.u32 %v1934_v17, 16  ;;  %v1509_v20 = vshll.u32 %v1934_v17, 16  ;;  %v2240_v8 = vld [vmem:[%s2308_s30 + $0x108] ss:$8 sps:$4 sm:$0xff]  }
  0x42   : > { %2047 = vmatmul.mubr.msk.bf16.gmra.mrb[4].mxu1 %vm235_vm0, %v1801_v40  ;;  %v1503_v16 = vrot.slane %v1501_v9, 5  ;;  %v1498_v22 = vor.u32 %v1497_v13, %v1494_v12  ;;  %v1515_v28 = vshll.u32 %v1935_v18, 16  ;;  %v1520_v29 = vshrl.u32 %v1936_v24, 16  ;;  %v1956_v17 = vld [vmem:[%s2560_s2] ss:$0 sm:$0xff] }
  0x43   : > { %2054 = vmatprep.mubr.msk.bf16.mxu1 %vm235_vm0, %v2232_v37  ;;  %v1485_v27 = vrot.slane %v1484_v15, 4  ;;  %v1508_v32 = vrot.slane %v1506_v26, 4  ;;  %v2239_v37 = vld [vmem:[%s2308_s30 + $0xf8] ss:$8 sps:$4 sm:$0xff]   ;;  %v1537_v51 = vshll.u32 %v1938_v43, 16  ;;  %v1548_v54 = vshrl.u32 %v1940_v48, 16 }
  0x44   : > { %v1522_v38 = vrot.slane %v1520_v29, 4  ;;  %v1517_v41 = vrot.slane %v1515_v28, 5  ;;  %v1551_v55 = vshll.u32 %v1940_v48, 16 }
  0x45   : > { %v1490_v34 = vsel %vm2346_vm3, %v1485_v27, %v1489_v11 }
  0x46   : > { %2103 = vmatmul.mubr.msk.bf16.vlgmr.msra.gmra.mrb[0].mxu0 %vm235_vm0, %v2231_v31  ;;  %v1499_v31 = vrot.slane %v1498_v22, 4  ;;  %v1553_v61 = vrot.slane %v1551_v55, 5 }
  0x47   : > { %2111 = vmatpush3.bf16.msra.mxu0 %v2432_v44  ;;  %2106 = vmatprep.mubr.msk.bf16.mxu0 %vm235_vm0, %v2234_v39  ;;  %v1459_v44 = vshll.u32 %v1927_v42, 16  ;;  %v1523_v39 = vshll.u32 %v1936_v24, 16  ;;  %v1529_v42 = vshll.u32 %v1937_v25, 16 }
  0x48   : > { %2112 = vmatprep.subr.bf16.mxu0 %v2235_v33  ;;  %v1504_v40 = vsel %vm2346_vm3, %v1499_v31, %v1503_v16 }
  0x49   : > { %v1461_v56 = vrot.slane %v1459_v44, 5  ;;  %v1947_v46 = vcombine.low %v1490_v34, %v1504_v40  ;;  %v1525_v47 = vrot.slane %v1523_v39, 5  ;;  %v1534_v44 = vshrl.u32 %v1938_v43, 16 }
  0x4a   : > { %2055 = vmatmul.mubr.msk.bf16.vlgmr.msra.gmra.mrb[0].mxu1 %vm235_vm0, %v2233_v45  ;;  %v1939_v45 = vld [vmem:[%s2308_s30 + $0x3c] sm:$0x1] }
  0x4b   : > { %2113 = vmatpush3.bf16.msra.mxu0 %v2235_v33  ;;  %2124 = vmatpush3.bf16.msra.mxu1 %v2286_v1  ;;  %v1462_v21 = vsel %vm2346_vm3, %v1457_v10, %v1461_v56  ;;  %v1476_v1 = vsel %vm2346_vm3, %v1471_v14, %v1475_v60  ;;  %v1511_v33 = vrot.slane %v1509_v20, 5  ;;  %v1543_v52 = vshll.u32 %v1939_v45, 16 }
  0x4c   : > { %2058 = vmatprep.mubr.msk.bf16.mxu1 %vm235_vm0, %v2237_v50  ;;  %2123 = vmatprep.subr.bf16.mxu1 %v2295_v3  ;;  %v1946_v30 = vcombine.low %v1462_v21, %v1476_v1  ;;  %v1531_v50 = vrot.slane %v1529_v42, 5  ;;  %v1526_v53 = vor.u32 %v1525_v47, %v1522_v38  ;;  %v1536_v36 = vrot.slane %v1534_v44, 4 }
  0x4d   : > { %v1539_v56 = vrot.slane %v1537_v51, 5  ;;  %v1550_v60 = vrot.slane %v1548_v54, 4  ;;  %v1545_v63 = vrot.slane %v1543_v52, 5 }
  0x4e   : > { %2107 = vmatmul.mubr.msk.bf16.gmra.mrb[4].mxu0 %vm235_vm0, %v2236_v23  ;;  %v1512_v23 = vor.u32 %v1511_v33, %v1508_v32  ;;  %v1527_v59 = vrot.slane %v1526_v53, 4 }
  0x4f   : > { %2125 = vmatpush3.bf16.msra.mxu1 %v2295_v3  ;;  %2114 = vmatprep.mubr.msk.bf16.mxu0 %vm235_vm0, %v1946_v30  ;;  %v1941_v3 = vld [vmem:[%s2308_s30 + $0x44] sm:$0x1]  ;;  %v1540_v62 = vor.u32 %v1539_v56, %v1536_v36  ;;  %v1554_v2 = vor.u32 %v1553_v61, %v1550_v60 }
  0x50   : > { %v1513_v49 = vrot.slane %v1512_v23, 4  ;;  %v1557_v57 = vshll.u32 %v1941_v3, 16  ;;  %v1532_v0 = vsel %vm2346_vm3, %v1527_v59, %v1531_v50 }
  0x51   : > { %v1541_v6 = vrot.slane %v1540_v62, 4  ;;  %v1555_v7 = vrot.slane %v1554_v2, 4 }
  0x52   : > { %2059 = vmatmul.mubr.msk.bf16.gmra.mrb[4].mxu1 %vm235_vm0, %v2238_v19  ;;  %v1518_v58 = vsel %vm2346_vm3, %v1513_v49, %v1517_v41  ;;  %v1559_v4 = vrot.slane %v1557_v57, 5 }
  0x53   : > { %2070 = vmatprep.mubr.msk.bf16.mxu1 %vm235_vm0, %v2239_v37  ;;  %v1948_v5 = vcombine.low %v1518_v58, %v1532_v0  ;;  %v1546_v9 = vsel %vm2346_vm3, %v1541_v6, %v1545_v63 }
  0x54   : > { %v1560_v10 = vsel %vm2346_vm3, %v1555_v7, %v1559_v4 }
  0x55   : > { %v1949_v11 = vcombine.low %v1546_v9, %v1560_v10 }
  0x56   : > { %2115 = vmatmul.mubr.msk.bf16.vlgmr.msra.gmra.mrb[0].mxu0 %vm235_vm0, %v1947_v46 }
  0x57   : > { %2118 = vmatprep.mubr.msk.bf16.mxu0 %vm235_vm0, %v1948_v5 }
  0x5e   : > { %2071 = vmatmul.mubr.msk.bf16.vlgmr.msra.gmra.mrb[4].mxu1 %vm235_vm0, %v2240_v8  ;;  %2119 = vmatmul.mubr.msk.bf16.gmra.mrb[4].mxu0 %vm235_vm0, %v1949_v11 }
 0x11d   : > { %v2056_v12 = vpop.f32.mrb[0].mxu1 }
 0x11e   : > { %v759_v13 = vpop.f32.mrb[1].mxu1 }
 0x11f   : > { %v2057_v14 = vpop.f32.mrb[2].mxu1 }
 0x120   : > { %v762_v15 = vpop.f32.mrb[3].mxu1 }
 0x129   : > { %v2116_v16 = vpop.f32.mrb[0].mxu0 }
 0x12a   : > { %v2126_v18 = vadd.f32 %v2116_v16, %v2056_v12  ;;  %v1636_v35 = vpop.f32.mrb[1].mxu0 }
 0x12b   : > { %v2127_v19 = vadd.f32 %v1636_v35, %v759_v13  ;;  %v2117_v21 = vpop.f32.mrb[2].mxu0 }
 0x12c   : > { %v1684_v22 = vadd.f32 %v2126_v18, %v1956_v17  ;;  %v2128_v24 = vadd.f32 %v2117_v21, %v2057_v14  ;;  %v1639_v25 = vpop.f32.mrb[3].mxu0 }
 0x12d   : > { %v1682_v26 = vadd.f32 %v2127_v19, %v1956_v17  ;;  %v2129_v20 = vadd.f32 %v1639_v25, %v762_v15 }
 0x12e   : > { %1692 = vst.msk [vmem:[%s2537_s8 + $0x10] sm:$0xff] %vm235_vm0, %v1684_v22  ;;  %v1685_v1 = vadd.f32 %v2128_v24, %v1956_v17 }
 0x12f   : > { %1690 = vst.msk [vmem:[%s2537_s8] sm:$0xff] %vm235_vm0, %v1682_v26  ;;  %v1683_v27 = vadd.f32 %v2129_v20, %v1956_v17 }
 0x130   : > { %1693 = vst.msk [vmem:[%s2537_s8 + $0x18] sm:$0xff] %vm235_vm0, %v1685_v1 }
 0x131   : > { %1691 = vst.msk [vmem:[%s2537_s8 + $0x8] sm:$0xff] %vm235_vm0, %v1683_v27  ;;  %v2072_v28 = vpop.f32.mrb[4].mxu1  ;;  %v2120_v29 = vpop.f32.mrb[4].mxu0 }
 0x132   : > { %v2130_v30 = vadd.f32 %v2120_v29, %v2072_v28  ;;  %v906_v31 = vpop.f32.mrb[5].mxu1  ;;  %v1652_v32 = vpop.f32.mrb[5].mxu0 }
 0x133   : > { %v2131_v33 = vadd.f32 %v1652_v32, %v906_v31  ;;  %v2073_v34 = vpop.f32.mrb[6].mxu1  ;;  %v2121_v37 = vpop.f32.mrb[6].mxu0 }
 0x134   : > { %v1688_v38 = vadd.f32 %v2130_v30, %v1956_v17  ;;  %v2132_v39 = vadd.f32 %v2121_v37, %v2073_v34  ;;  %v909_v40 = vpop.f32.mrb[7].mxu1  ;;  %v1655_v23 = vpop.f32.mrb[7].mxu0 }
 0x135   : > { %v1686_v41 = vadd.f32 %v2131_v33, %v1956_v17  ;;  %v2133_v42 = vadd.f32 %v1655_v23, %v909_v40 }
 0x136   : > { %1696 = vst.msk [vmem:[%s2537_s8 + $0x30] sm:$0xff] %vm235_vm0, %v1688_v38  ;;  %v1689_v43 = vadd.f32 %v2132_v39, %v1956_v17 }
 0x137   : > { %1694 = vst.msk [vmem:[%s2537_s8 + $0x20] sm:$0xff] %vm235_vm0, %v1686_v41  ;;  %v1687_v45 = vadd.f32 %v2133_v42, %v1956_v17 }
 0x138   : > { %1697 = vst.msk [vmem:[%s2537_s8 + $0x38] sm:$0xff] %vm235_vm0, %v1689_v43 }
 0x139   : > { %1695 = vst.msk [vmem:[%s2537_s8 + $0x28] sm:$0xff] %vm235_vm0, %v1687_v45 }
 0x13a PF: > { %s13_s12 = sadd.s32 1, %s2247_s12  }
 0x13b   : > { %p10_p5 = scmp.ge.s32.totalorder %s13_s12, 4  }
 0x13d   :  { %12 = sbr.rel (!%p10_p5) target bundleno = 1 (0x1), region = 75 }

// kernel: bottleneck_forward.19
= control target key start
LH: loop header
LB: loop body
LE: loop exit
PB: predicated region body
PF: predicated region fallthrough
CT: control target
= control target key end

     0   :  { %vm139_vm0 = vcmask 523264   ;;  %s547_s1 = inlined_call_operand.vmem [shape: bf16[64,128], index: 1, kind: input, shape index: {}]   ;;  %s548_s0 = inlined_call_operand.vmem [shape: bf16[128,64], index: 0, kind: input, shape index: {}]   ;;  %s549_s2 = inlined_call_operand.vmem [shape: f32[1,128], index: 2, kind: input, shape index: {}]   ;;  %s550_s3 = inlined_call_operand.vmem [shape: f32[128,128], index: 3, kind: output, shape index: {}]  }
   0x1   :  { %v420_v0 = vld [vmem:[%s547_s1] sm:$0xff]   ;;  %v421_v1 = vld [vmem:[%s547_s1 + $0x8] sm:$0xff]   ;;  %v422_v2 = vld [vmem:[%s547_s1 + $0x10] sm:$0xff]  }
   0x2   :  { %388 = vmatprep.subr.bf16.mxu0 %v420_v0  ;;  %412 = vmatprep.subr.bf16.mxu1 %v420_v0  ;;  %v424_v3 = vld [vmem:[%s548_s0] sm:$0xff]   ;;  %v423_v5 = vld [vmem:[%s547_s1 + $0x18] sm:$0xff]   ;;  %v426_v6 = vld [vmem:[%s548_s0 + $0x8] sm:$0xff]  }
   0x3   :  { %389 = vmatpush3.bf16.msra.mxu0 %v420_v0  ;;  %416 = vmatpush3.bf16.msra.mxu1 %v420_v0  ;;  %v425_v4 = vld [vmem:[%s548_s0 + $0x20] sm:$0xff]   ;;  %v427_v7 = vld [vmem:[%s548_s0 + $0x28] sm:$0xff]   ;;  %v428_v8 = vld [vmem:[%s548_s0 + $0x10] sm:$0xff]  }
   0x4   :  { %390 = vmatprep.subr.bf16.mxu0 %v421_v1  ;;  %413 = vmatprep.subr.bf16.mxu1 %v421_v1  ;;  %v429_v9 = vld [vmem:[%s548_s0 + $0x30] sm:$0xff]   ;;  %v430_v10 = vld [vmem:[%s548_s0 + $0x18] sm:$0xff]   ;;  %v375_v12 = vld [vmem:[%s549_s2] ss:$0 sm:$0xff] }
   0x5   :  { %396 = vmatprep.mubr.msk.bf16.mxu0 %vm139_vm0, %v424_v3  ;;  %404 = vmatprep.mubr.msk.bf16.mxu1 %vm139_vm0, %v425_v4  ;;  %v431_v11 = vld [vmem:[%s548_s0 + $0x38] sm:$0xff]  }
   0x7   :  { %391 = vmatpush3.bf16.msra.mxu0 %v421_v1  ;;  %417 = vmatpush3.bf16.msra.mxu1 %v421_v1 }
   0x8   :  { %392 = vmatprep.subr.bf16.mxu0 %v422_v2  ;;  %414 = vmatprep.subr.bf16.mxu1 %v422_v2 }
   0xb   :  { %393 = vmatpush3.bf16.msra.mxu0 %v422_v2  ;;  %418 = vmatpush3.bf16.msra.mxu1 %v422_v2 }
   0xc   :  { %394 = vmatprep.subr.bf16.mxu0 %v423_v5  ;;  %415 = vmatprep.subr.bf16.mxu1 %v423_v5 }
   0xf   :  { %395 = vmatpush3.bf16.msra.mxu0 %v423_v5  ;;  %419 = vmatpush3.bf16.msra.mxu1 %v423_v5 }
  0x12   :  { %397 = vmatmul.mubr.msk.bf16.vlgmr.msra.gmra.mrb[0].mxu0 %vm139_vm0, %v426_v6  ;;  %405 = vmatmul.mubr.msk.bf16.vlgmr.msra.gmra.mrb[0].mxu1 %vm139_vm0, %v427_v7 }
  0x13   :  { %400 = vmatprep.mubr.msk.bf16.mxu0 %vm139_vm0, %v428_v8  ;;  %408 = vmatprep.mubr.msk.bf16.mxu1 %vm139_vm0, %v429_v9 }
  0x1a   :  { %401 = vmatmul.mubr.msk.bf16.gmra.mrb[4].mxu0 %vm139_vm0, %v430_v10  ;;  %409 = vmatmul.mubr.msk.bf16.gmra.mrb[4].mxu1 %vm139_vm0, %v431_v11 }
  0xe5   :  { %v398_v13 = vpop.f32.mrb[0].mxu0  ;;  %v406_v14 = vpop.f32.mrb[0].mxu1 }
  0xe6   :  { %v321_v15 = vadd.f32 %v398_v13, %v375_v12  ;;  %v329_v16 = vadd.f32 %v406_v14, %v375_v12  ;;  %v198_v17 = vpop.f32.mrb[1].mxu0  ;;  %v230_v18 = vpop.f32.mrb[1].mxu1 }
  0xe7   :  { %v319_v19 = vadd.f32 %v375_v12, %v198_v17  ;;  %v327_v20 = vadd.f32 %v375_v12, %v230_v18  ;;  %v399_v21 = vpop.f32.mrb[2].mxu0  ;;  %v407_v22 = vpop.f32.mrb[2].mxu1 }
  0xe8   :  { %337 = vst [vmem:[%s550_s3 + $0x10] sm:$0xff] %v321_v15  ;;  %345 = vst [vmem:[%s550_s3 + $0x50] sm:$0xff] %v329_v16  ;;  %v322_v23 = vadd.f32 %v399_v21, %v375_v12  ;;  %v330_v24 = vadd.f32 %v407_v22, %v375_v12  ;;  %v201_v25 = vpop.f32.mrb[3].mxu0  ;;  %v233_v26 = vpop.f32.mrb[3].mxu1 }
  0xe9   :  { %335 = vst [vmem:[%s550_s3] sm:$0xff] %v319_v19  ;;  %343 = vst [vmem:[%s550_s3 + $0x40] sm:$0xff] %v327_v20  ;;  %v320_v27 = vadd.f32 %v375_v12, %v201_v25  ;;  %v328_v28 = vadd.f32 %v375_v12, %v233_v26 }
  0xea   :  { %338 = vst [vmem:[%s550_s3 + $0x18] sm:$0xff] %v322_v23  ;;  %346 = vst [vmem:[%s550_s3 + $0x58] sm:$0xff] %v330_v24 }
  0xeb   :  { %336 = vst [vmem:[%s550_s3 + $0x8] sm:$0xff] %v320_v27  ;;  %344 = vst [vmem:[%s550_s3 + $0x48] sm:$0xff] %v328_v28 }
  0xed   :  { %v402_v29 = vpop.f32.mrb[4].mxu0  ;;  %v410_v30 = vpop.f32.mrb[4].mxu1 }
  0xee   :  { %v325_v31 = vadd.f32 %v402_v29, %v375_v12  ;;  %v333_v32 = vadd.f32 %v410_v30, %v375_v12  ;;  %v214_v33 = vpop.f32.mrb[5].mxu0  ;;  %v246_v34 = vpop.f32.mrb[5].mxu1 }
  0xef   :  { %v323_v35 = vadd.f32 %v375_v12, %v214_v33  ;;  %v331_v36 = vadd.f32 %v375_v12, %v246_v34  ;;  %v403_v37 = vpop.f32.mrb[6].mxu0  ;;  %v411_v38 = vpop.f32.mrb[6].mxu1 }
  0xf0   :  { %341 = vst [vmem:[%s550_s3 + $0x30] sm:$0xff] %v325_v31  ;;  %349 = vst [vmem:[%s550_s3 + $0x70] sm:$0xff] %v333_v32  ;;  %v326_v39 = vadd.f32 %v403_v37, %v375_v12  ;;  %v334_v40 = vadd.f32 %v411_v38, %v375_v12  ;;  %v217_v41 = vpop.f32.mrb[7].mxu0  ;;  %v249_v42 = vpop.f32.mrb[7].mxu1 }
  0xf1   :  { %339 = vst [vmem:[%s550_s3 + $0x20] sm:$0xff] %v323_v35  ;;  %347 = vst [vmem:[%s550_s3 + $0x60] sm:$0xff] %v331_v36  ;;  %v324_v43 = vadd.f32 %v375_v12, %v217_v41  ;;  %v332_v44 = vadd.f32 %v375_v12, %v249_v42 }
  0xf2   :  { %342 = vst [vmem:[%s550_s3 + $0x38] sm:$0xff] %v326_v39  ;;  %350 = vst [vmem:[%s550_s3 + $0x78] sm:$0xff] %v334_v40 }
  0xf3   :  { %340 = vst [vmem:[%s550_s3 + $0x28] sm:$0xff] %v324_v43  ;;  %348 = vst [vmem:[%s550_s3 + $0x68] sm:$0xff] %v332_v44 }

// kernel: bottleneck_forward.23
= control target key start
LH: loop header
LB: loop body
LE: loop exit
PB: predicated region body
PF: predicated region fallthrough
CT: control target
= control target key end

     0   :  { %v55_v8 = vlaneseq  ;;  %s401_s0 = inlined_call_operand.vmem [shape: f32[128,128], index: 0, kind: input, shape index: {}]   ;;  %s402_s1 = inlined_call_operand.vmem [shape: f32[1,128], index: 1, kind: input, shape index: {}]   ;;  %s403_s2 = inlined_call_operand.vmem [shape: f32[1,128], index: 2, kind: input, shape index: {}]   ;;  %s404_s3 = inlined_call_operand.vmem [shape: f32[1,128], index: 3, kind: input, shape index: {}]   ;;  %s405_s4 = inlined_call_operand.vmem [shape: f32[1,128], index: 4, kind: input, shape index: {}]   ;;  %s406_s5 = inlined_call_operand.vmem [shape: f32[128,128], index: 5, kind: input, shape index: {}]   ;;  %s407_s6 = inlined_call_operand.hbm [shape: f32[128,128], index: 6, kind: output, shape index: {}]  }
   0x1   :  { %v24_v0 = vld [vmem:[%s402_s1] sm:$0x1] }
   0x2   :  { %v26_v1 = vld [vmem:[%s403_s2] sm:$0x1]  ;;  %v25_v2 = vmul.f32 0.0078125, %v24_v0 }
   0x3   :  { %v27_v3 = vmul.f32 0.0078125, %v26_v1 }
   0x4   :  { %v28_v4 = vmul.f32 %v25_v2, %v25_v2 }
   0x6   :  { %v29_v5 = vsub.f32 %v27_v3, %v28_v4 }
   0x8   :  { %v30_v6 = vmax.f32 %v29_v5, 0.0 }
   0xa   :  { %v32_v7 = vadd.f32 1e-05, %v30_v6 }
   0xc   :  { %181 = vrsqrt.f32 %v32_v7 }
   0xd   :  { %11 = vsyncpa [#allocation3], 0  ;;  %v56_v9 = vshrl.u32 %v55_v8, 7  ;;  %v31_v10 = vld [vmem:[%s404_s3] sm:$0x1]  ;;  %v39_v16 = vld [vmem:[%s401_s0 + $0x8] sm:$0xff] }
   0xe   :  { %v35_v14 = vld [vmem:[%s405_s4] sm:$0x1]  ;;  %v40_v17 = vld [vmem:[%s401_s0 + $0x10] sm:$0xff]  ;;  %v41_v18 = vld [vmem:[%s401_s0 + $0x18] sm:$0xff]  ;;  %s207_s9 = smov [#allocation2]  }
   0xf   :  { %v57_v11 = vsub.s32 0, %v56_v9  ;;  %v38_v15 = vld [vmem:[%s401_s0] sm:$0xff]  ;;  %v43_v22 = vld [vmem:[%s401_s0 + $0x28] sm:$0xff]  ;;  %v44_v23 = vld [vmem:[%s401_s0 + $0x30] sm:$0xff]  ;;  %s167_s10 = sshll.u32 %s207_s9, 4  ;;  %s168_s10 = int_to_ptr.vmem [resolvable:$true] %s167_s10 }
  0x10   :  { %v42_v19 = vld [vmem:[%s401_s0 + $0x20] sm:$0xff]  ;;  %v45_v24 = vld [vmem:[%s401_s0 + $0x38] sm:$0xff]  ;;  %v47_v26 = vld [vmem:[%s401_s0 + $0x48] sm:$0xff]  ;;  %p188_p1 = scmp.lt.s32.totalorder %s168_s10, %s168_s10 }
  0x11   :  { %v46_v25 = vld [vmem:[%s401_s0 + $0x40] sm:$0xff]  ;;  %v48_v27 = vld [vmem:[%s401_s0 + $0x50] sm:$0xff]  ;;  %v49_v32 = vld [vmem:[%s401_s0 + $0x58] sm:$0xff] }
  0x12   :  { %v50_v33 = vld [vmem:[%s401_s0 + $0x60] sm:$0xff]  ;;  %v51_v34 = vld [vmem:[%s401_s0 + $0x68] sm:$0xff]  ;;  %v100_v45 = vld [vmem:[%s406_s5 + $0x10] sm:$0xff] }
  0x13   :  { %v98_v40 = vld [vmem:[%s406_s5] sm:$0xff]  ;;  %v99_v41 = vld [vmem:[%s406_s5 + $0x8] sm:$0xff]  ;;  %v101_v46 = vld [vmem:[%s406_s5 + $0x18] sm:$0xff] }
  0x14   :  { %v102_v47 = vld [vmem:[%s406_s5 + $0x20] sm:$0xff]  ;;  %v103_v56 = vld [vmem:[%s406_s5 + $0x28] sm:$0xff]  ;;  %v104_v57 = vld [vmem:[%s406_s5 + $0x30] sm:$0xff] }
  0x15   :  { %v105_v58 = vld [vmem:[%s406_s5 + $0x38] sm:$0xff]  ;;  %v106_v7 = vld [vmem:[%s406_s5 + $0x40] sm:$0xff]  ;;  %v107_v8 = vld [vmem:[%s406_s5 + $0x48] sm:$0xff] }
  0x16   :  { %v182_v12 = vpop.eup %181 }
  0x17   :  { %v34_v13 = vmul.f32 %v182_v12, %v31_v10 }
  0x19   :  { %v36_v20 = vmul.f32 %v34_v13, %v25_v2  ;;  %v272_v21 = vrot.slane %v34_v13, %v57_v11  ;;  %v52_v13 = vld [vmem:[%s401_s0 + $0x70] sm:$0xff] }
  0x1b   :  { %v37_v28 = vsub.f32 %v35_v14, %v36_v20  ;;  %v60_v29 = vmul.f32 %v272_v21, %v38_v15  ;;  %v61_v30 = vmul.f32 %v272_v21, %v39_v16  ;;  %v62_v31 = vmul.f32 %v272_v21, %v40_v17  ;;  %v53_v14 = vld [vmem:[%s401_s0 + $0x78] sm:$0xff] }
  0x1c   :  { %v63_v35 = vmul.f32 %v272_v21, %v41_v18  ;;  %v64_v36 = vmul.f32 %v272_v21, %v42_v19  ;;  %v65_v37 = vmul.f32 %v272_v21, %v43_v22  ;;  %v66_v38 = vmul.f32 %v272_v21, %v44_v23  ;;  %v108_v19 = vld [vmem:[%s406_s5 + $0x50] sm:$0xff]  ;;  %v109_v20 = vld [vmem:[%s406_s5 + $0x58] sm:$0xff] }
  0x1d   :  { %v308_v39 = vrot.slane %v37_v28, %v57_v11  ;;  %v67_v42 = vmul.f32 %v272_v21, %v45_v24  ;;  %v68_v43 = vmul.f32 %v272_v21, %v46_v25  ;;  %v69_v44 = vmul.f32 %v272_v21, %v47_v26  ;;  %v110_v26 = vld [vmem:[%s406_s5 + $0x60] sm:$0xff] }
  0x1e   :  { %v70_v48 = vmul.f32 %v272_v21, %v48_v27  ;;  %v71_v49 = vmul.f32 %v272_v21, %v49_v32  ;;  %v72_v50 = vmul.f32 %v272_v21, %v50_v33  ;;  %v73_v51 = vmul.f32 %v272_v21, %v51_v34  ;;  %v111_v27 = vld [vmem:[%s406_s5 + $0x68] sm:$0xff] }
  0x1f   :  { %v82_v52 = vadd.f32 %v308_v39, %v60_v29  ;;  %v83_v53 = vadd.f32 %v308_v39, %v61_v30  ;;  %v84_v54 = vadd.f32 %v308_v39, %v62_v31  ;;  %v85_v55 = vadd.f32 %v308_v39, %v63_v35 }
  0x20   :  { %v86_v59 = vadd.f32 %v308_v39, %v64_v36  ;;  %v87_v60 = vadd.f32 %v308_v39, %v65_v37  ;;  %v88_v61 = vadd.f32 %v308_v39, %v66_v38  ;;  %v89_v62 = vadd.f32 %v308_v39, %v67_v42  ;;  %v112_v36 = vld [vmem:[%s406_s5 + $0x70] sm:$0xff]  ;;  %v113_v37 = vld [vmem:[%s406_s5 + $0x78] sm:$0xff]  ;;  %s183_s5 = scalar_lea.vmem %s168_s10, 2048 }
  0x21   :  { %v114_v63 = vadd.f32 %v98_v40, %v82_v52  ;;  %v115_v0 = vadd.f32 %v99_v41, %v83_v53  ;;  %v116_v1 = vadd.f32 %v100_v45, %v84_v54  ;;  %v117_v2 = vadd.f32 %v101_v46, %v85_v55  ;;  %p184_p0 = scmp.ne.s32.totalorder %s168_s10, %s183_s5  ;;  %p189_p2 = scmp.lt.s32.totalorder %s183_s5, %s183_s5 }
  0x22   :  { %v118_v3 = vadd.f32 %v102_v47, %v86_v59  ;;  %v119_v4 = vadd.f32 %v103_v56, %v87_v60  ;;  %v120_v5 = vadd.f32 %v104_v57, %v88_v61  ;;  %v121_v6 = vadd.f32 %v105_v58, %v89_v62 }
  0x23   :  { %v130_v9 = vmax.f32 %v114_v63, 0.0  ;;  %v131_v10 = vmax.f32 %v115_v0, 0.0  ;;  %v132_v11 = vmax.f32 %v116_v1, 0.0  ;;  %v133_v12 = vmax.f32 %v117_v2, 0.0  ;;  %p190_p3 = por %p189_p2, %p188_p1 }
  0x24   :  { %v134_v15 = vmax.f32 %v118_v3, 0.0  ;;  %v135_v16 = vmax.f32 %v119_v4, 0.0  ;;  %v136_v17 = vmax.f32 %v120_v5, 0.0  ;;  %v137_v18 = vmax.f32 %v121_v6, 0.0 }
  0x25   :  { %146 = vst [vmem:[#allocation2] sm:$0xff] %v130_v9  ;;  %147 = vst [vmem:[#allocation2 + $0x8] sm:$0xff] %v131_v10  ;;  %v90_v22 = vadd.f32 %v308_v39, %v68_v43  ;;  %v91_v23 = vadd.f32 %v308_v39, %v69_v44  ;;  %v92_v24 = vadd.f32 %v308_v39, %v70_v48  ;;  %p191_p4 = pnand %p190_p3, %p184_p0 }
  0x26   :  { %148 = vst [vmem:[#allocation2 + $0x10] sm:$0xff] %v132_v11  ;;  %149 = vst [vmem:[#allocation2 + $0x18] sm:$0xff] %v133_v12  ;;  %v93_v25 = vadd.f32 %v308_v39, %v71_v49  ;;  %v94_v28 = vadd.f32 %v308_v39, %v72_v50  ;;  %v95_v29 = vadd.f32 %v308_v39, %v73_v51 }
  0x27   :  { %150 = vst [vmem:[#allocation2 + $0x20] sm:$0xff] %v134_v15  ;;  %151 = vst [vmem:[#allocation2 + $0x28] sm:$0xff] %v135_v16  ;;  %v74_v30 = vmul.f32 %v272_v21, %v52_v13  ;;  %v75_v31 = vmul.f32 %v272_v21, %v53_v14  ;;  %v122_v32 = vadd.f32 %v106_v7, %v90_v22 }
  0x28   :  { %152 = vst [vmem:[#allocation2 + $0x30] sm:$0xff] %v136_v17  ;;  %153 = vst [vmem:[#allocation2 + $0x38] sm:$0xff] %v137_v18  ;;  %v123_v33 = vadd.f32 %v107_v8, %v91_v23  ;;  %v124_v34 = vadd.f32 %v108_v19, %v92_v24  ;;  %v125_v35 = vadd.f32 %v109_v20, %v93_v25 }
  0x29   :  { %v126_v38 = vadd.f32 %v110_v26, %v94_v28  ;;  %v127_v40 = vadd.f32 %v111_v27, %v95_v29  ;;  %v96_v41 = vadd.f32 %v308_v39, %v74_v30  ;;  %v97_v42 = vadd.f32 %v308_v39, %v75_v31 }
  0x2a   :  { %v138_v43 = vmax.f32 %v122_v32, 0.0  ;;  %v139_v21 = vmax.f32 %v123_v33, 0.0  ;;  %v140_v44 = vmax.f32 %v124_v34, 0.0  ;;  %v141_v45 = vmax.f32 %v125_v35, 0.0 }
  0x2b   :  { %v142_v46 = vmax.f32 %v126_v38, 0.0  ;;  %v143_v47 = vmax.f32 %v127_v40, 0.0  ;;  %v128_v48 = vadd.f32 %v112_v36, %v96_v41  ;;  %v129_v49 = vadd.f32 %v113_v37, %v97_v42 }
  0x2c   :  { %154 = vst [vmem:[#allocation2 + $0x40] sm:$0xff] %v138_v43  ;;  %155 = vst [vmem:[#allocation2 + $0x48] sm:$0xff] %v139_v21 }
  0x2d   :  { %156 = vst [vmem:[#allocation2 + $0x50] sm:$0xff] %v140_v44  ;;  %157 = vst [vmem:[#allocation2 + $0x58] sm:$0xff] %v141_v45  ;;  %v144_v50 = vmax.f32 %v128_v48, 0.0  ;;  %v145_v51 = vmax.f32 %v129_v49, 0.0 }
  0x2e   :  { %158 = vst [vmem:[#allocation2 + $0x60] sm:$0xff] %v142_v46  ;;  %159 = vst [vmem:[#allocation2 + $0x68] sm:$0xff] %v143_v47 }
  0x2f   :  { %160 = vst [vmem:[#allocation2 + $0x70] sm:$0xff] %v144_v50  ;;  %161 = vst [vmem:[#allocation2 + $0x78] sm:$0xff] %v145_v51 }
  0x30   :  { %194 = shalt.err (!%p191_p4)
}
  0x31   :  { %s195_s12 = scalar_lea.hbm %s407_s6, 2048 }
  0x32   :  { %p196_p5 = scmp.ne.s32.totalorder %s407_s6, %s195_s12  ;;  %p199_p6 = scmp.lt.u32.totalorder %s195_s12, %s407_s6 }
  0x34   :  { %p201_p7 = pnand %p199_p6, %p196_p5 }
  0x36   :  { %204 = shalt.err (!%p201_p7)
}
  0x37   :  { %s208_s17 = smov 128   ;;  %s209_s18 = smov 8  }
  0x38   :  { %173 = dma.vmem_to_hbm [thread:$0]  %s168_s10, 2048, %s407_s6, [#allocation3], %s208_s17, %s208_s17, %s209_s18  }
  0x39   :  { %205 = dma.done.wait [#allocation3], 2048  }
  0x3a   :  { %206 = vsyncadd [#allocation3], 4294965248 }
  0x3b   :  { %177 = vsyncpa [#allocation3], 1 }

// kernel: bottleneck_forward.21
= control target key start
LH: loop header
LB: loop body
LE: loop exit
PB: predicated region body
PF: predicated region fallthrough
CT: control target
= control target key end

     0   :  { %v51_v8 = vlaneseq  ;;  %s254_s1 = inlined_call_operand.vmem [shape: f32[1,128], index: 1, kind: input, shape index: {}]   ;;  %s255_s2 = inlined_call_operand.vmem [shape: f32[1,128], index: 2, kind: input, shape index: {}]   ;;  %s256_s3 = inlined_call_operand.vmem [shape: f32[1,128], index: 3, kind: input, shape index: {}]   ;;  %s257_s0 = inlined_call_operand.vmem [shape: f32[128,128], index: 0, kind: input, shape index: {}]   ;;  %s258_s4 = inlined_call_operand.vmem [shape: f32[1,128], index: 4, kind: input, shape index: {}]   ;;  %s259_s5 = inlined_call_operand.vmem [shape: f32[128,128], index: 5, kind: output, shape index: {}]  }
   0x1   :  { %v20_v0 = vld [vmem:[%s254_s1] sm:$0x1]  ;;  %v35_v16 = vld [vmem:[%s257_s0 + $0x8] sm:$0xff]  ;;  %v36_v17 = vld [vmem:[%s257_s0 + $0x10] sm:$0xff] }
   0x2   :  { %v22_v1 = vld [vmem:[%s255_s2] sm:$0x1]  ;;  %v21_v2 = vmul.f32 0.0078125, %v20_v0  ;;  %v52_v9 = vshrl.u32 %v51_v8, 7  ;;  %v37_v18 = vld [vmem:[%s257_s0 + $0x18] sm:$0xff]  ;;  %v39_v22 = vld [vmem:[%s257_s0 + $0x28] sm:$0xff] }
   0x3   :  { %v23_v3 = vmul.f32 0.0078125, %v22_v1  ;;  %v27_v10 = vld [vmem:[%s256_s3] sm:$0x1]  ;;  %v40_v23 = vld [vmem:[%s257_s0 + $0x30] sm:$0xff]  ;;  %v41_v24 = vld [vmem:[%s257_s0 + $0x38] sm:$0xff] }
   0x4   :  { %v24_v4 = vmul.f32 %v21_v2, %v21_v2  ;;  %v53_v11 = vsub.s32 0, %v52_v9  ;;  %v31_v14 = vld [vmem:[%s258_s4] sm:$0x1]  ;;  %v43_v26 = vld [vmem:[%s257_s0 + $0x48] sm:$0xff]  ;;  %v44_v27 = vld [vmem:[%s257_s0 + $0x50] sm:$0xff] }
   0x5   :  { %v34_v15 = vld [vmem:[%s257_s0] sm:$0xff]  ;;  %v45_v32 = vld [vmem:[%s257_s0 + $0x58] sm:$0xff]  ;;  %v47_v34 = vld [vmem:[%s257_s0 + $0x68] sm:$0xff] }
   0x6   :  { %v25_v5 = vsub.f32 %v23_v3, %v24_v4  ;;  %v38_v19 = vld [vmem:[%s257_s0 + $0x20] sm:$0xff]  ;;  %v48_v51 = vld [vmem:[%s257_s0 + $0x70] sm:$0xff]  ;;  %v49_v52 = vld [vmem:[%s257_s0 + $0x78] sm:$0xff] }
   0x7   :  { %v42_v25 = vld [vmem:[%s257_s0 + $0x40] sm:$0xff] }
   0x8   :  { %v26_v6 = vmax.f32 %v25_v5, 0.0  ;;  %v46_v33 = vld [vmem:[%s257_s0 + $0x60] sm:$0xff] }
   0xa   :  { %v28_v7 = vadd.f32 1e-05, %v26_v6 }
   0xc   :  { %114 = vrsqrt.f32 %v28_v7 }
  0x16   :  { %v115_v12 = vpop.eup %114 }
  0x17   :  { %v30_v13 = vmul.f32 %v115_v12, %v27_v10 }
  0x19   :  { %v32_v20 = vmul.f32 %v30_v13, %v21_v2  ;;  %v54_v21 = vrot.slane %v30_v13, %v53_v11 }
  0x1b   :  { %v33_v28 = vsub.f32 %v31_v14, %v32_v20  ;;  %v56_v29 = vmul.f32 %v54_v21, %v34_v15  ;;  %v57_v30 = vmul.f32 %v54_v21, %v35_v16  ;;  %v58_v31 = vmul.f32 %v54_v21, %v36_v17 }
  0x1c   :  { %v59_v35 = vmul.f32 %v54_v21, %v37_v18  ;;  %v60_v36 = vmul.f32 %v54_v21, %v38_v19  ;;  %v61_v37 = vmul.f32 %v54_v21, %v39_v22  ;;  %v62_v38 = vmul.f32 %v54_v21, %v40_v23 }
  0x1d   :  { %v76_v39 = vrot.slane %v33_v28, %v53_v11  ;;  %v63_v40 = vmul.f32 %v54_v21, %v41_v24  ;;  %v64_v41 = vmul.f32 %v54_v21, %v42_v25  ;;  %v65_v42 = vmul.f32 %v54_v21, %v43_v26 }
  0x1e   :  { %v66_v43 = vmul.f32 %v54_v21, %v44_v27  ;;  %v67_v44 = vmul.f32 %v54_v21, %v45_v32  ;;  %v68_v45 = vmul.f32 %v54_v21, %v46_v33  ;;  %v69_v46 = vmul.f32 %v54_v21, %v47_v34 }
  0x1f   :  { %v78_v47 = vadd.f32 %v76_v39, %v56_v29  ;;  %v79_v48 = vadd.f32 %v76_v39, %v57_v30  ;;  %v80_v49 = vadd.f32 %v76_v39, %v58_v31  ;;  %v81_v50 = vadd.f32 %v76_v39, %v59_v35 }
  0x20   :  { %v82_v53 = vadd.f32 %v76_v39, %v60_v36  ;;  %v83_v54 = vadd.f32 %v76_v39, %v61_v37  ;;  %v84_v55 = vadd.f32 %v76_v39, %v62_v38  ;;  %v85_v56 = vadd.f32 %v76_v39, %v63_v40 }
  0x21   :  { %94 = vst [vmem:[%s259_s5] sm:$0xff] %v78_v47  ;;  %95 = vst [vmem:[%s259_s5 + $0x8] sm:$0xff] %v79_v48  ;;  %v86_v57 = vadd.f32 %v76_v39, %v64_v41  ;;  %v87_v58 = vadd.f32 %v76_v39, %v65_v42  ;;  %v88_v59 = vadd.f32 %v76_v39, %v66_v43 }
  0x22   :  { %96 = vst [vmem:[%s259_s5 + $0x10] sm:$0xff] %v80_v49  ;;  %97 = vst [vmem:[%s259_s5 + $0x18] sm:$0xff] %v81_v50  ;;  %v89_v60 = vadd.f32 %v76_v39, %v67_v44  ;;  %v90_v61 = vadd.f32 %v76_v39, %v68_v45  ;;  %v91_v62 = vadd.f32 %v76_v39, %v69_v46 }
  0x23   :  { %98 = vst [vmem:[%s259_s5 + $0x20] sm:$0xff] %v82_v53  ;;  %99 = vst [vmem:[%s259_s5 + $0x28] sm:$0xff] %v83_v54  ;;  %v70_v63 = vmul.f32 %v54_v21, %v48_v51  ;;  %v71_v0 = vmul.f32 %v54_v21, %v49_v52 }
  0x24   :  { %100 = vst [vmem:[%s259_s5 + $0x30] sm:$0xff] %v84_v55  ;;  %101 = vst [vmem:[%s259_s5 + $0x38] sm:$0xff] %v85_v56 }
  0x25   :  { %102 = vst [vmem:[%s259_s5 + $0x40] sm:$0xff] %v86_v57  ;;  %103 = vst [vmem:[%s259_s5 + $0x48] sm:$0xff] %v87_v58  ;;  %v92_v1 = vadd.f32 %v76_v39, %v70_v63  ;;  %v93_v2 = vadd.f32 %v76_v39, %v71_v0 }
  0x26   :  { %104 = vst [vmem:[%s259_s5 + $0x50] sm:$0xff] %v88_v59  ;;  %105 = vst [vmem:[%s259_s5 + $0x58] sm:$0xff] %v89_v60 }
  0x27   :  { %106 = vst [vmem:[%s259_s5 + $0x60] sm:$0xff] %v90_v61  ;;  %107 = vst [vmem:[%s259_s5 + $0x68] sm:$0xff] %v91_v62 }
  0x28   :  { %108 = vst [vmem:[%s259_s5 + $0x70] sm:$0xff] %v92_v1  ;;  %109 = vst [vmem:[%s259_s5 + $0x78] sm:$0xff] %v93_v2 }

</bundles_post_ra>
